<compile_context>
chip_gen: v7x
topology: tpu7x:2x2x1
jax: 0.10.0
libtpu: 0.0.40
codegen_flags: <defaults>
</compile_context>

<pallas_src>
import functools

import jax
import jax.numpy as jnp
from jax.experimental import pallas as pl
from jax.experimental.pallas import tpu as pltpu


_DEFAULT_ROW_TILE = 512     # rows per block for projection / FFN kernels
_DEFAULT_Q_TILE = 512       # queries per block for flash attention
_DEFAULT_KV_TILE = 512      # keys per block for flash attention
_COMPUTE_DTYPE = jnp.bfloat16   # MXU-native operand dtype on v5e / v6e / v7x


# ----------------------------- small helpers --------------------------------

@functools.lru_cache(maxsize=1)
def _vmem_limit():
    """Hardware-aware scoped-VMEM request: ~48 MiB on 128 MiB chips, ~38 MiB on v7x."""
    try:
        cap = int(pltpu.get_tpu_info().vmem_capacity_bytes)
    except Exception:
        return 32 * 1024 * 1024          # conservative fallback
    return min(48 * 1024 * 1024, int(cap * 0.6))


def _round_up(n, m):
    return ((n + m - 1) // m) * m


def _choose_tile(n, max_tile, align=16):
    """Tile size (multiple of `align`); caller pads n up to a multiple of the tile."""
    max_tile = max(align, (max_tile // align) * align)
    if n <= max_tile:
        return _round_up(n, align) if (n % align) else n
    for t in range(max_tile, align - 1, -align):
        if n % t == 0:
            return t
    return max_tile      # no aligned divisor: caller pads (never one giant block)


def _layernorm_f32(x_f32, g, b, eps):
    mu = jnp.mean(x_f32, axis=-1, keepdims=True)
    var = jnp.mean(jnp.square(x_f32 - mu), axis=-1, keepdims=True)
    return (x_f32 - mu) * jax.lax.rsqrt(var + eps) * g + b


def _row_call(kernel, row_ins, param_ins, out_dims, out_dtypes, row_tile):
    """Row-tiled pallas_call: row inputs/outputs tiled over M, params VMEM-resident."""
    M = row_ins[0].shape[0]
    TM = _choose_tile(M, row_tile)
    Mp = _round_up(M, TM)
    if Mp != M:
        row_ins = [jnp.pad(a, ((0, Mp - M), (0, 0))) for a in row_ins]
    grid = (Mp // TM,)
    in_specs = [pl.BlockSpec((TM, a.shape[1]), lambda i: (i, 0)) for a in row_ins]
    in_specs += [pl.BlockSpec(a.shape, lambda i: (0, 0)) for a in param_ins]
    out_specs = [pl.BlockSpec((TM, d), lambda i: (i, 0)) for d in out_dims]
    out_shape = [jax.ShapeDtypeStruct((Mp, d), dt) for d, dt in zip(out_dims, out_dtypes)]
    outs = pl.pallas_call(
        kernel,
        grid=grid,
        in_specs=in_specs,
        out_specs=out_specs,
        out_shape=out_shape,
        compiler_params=pltpu.CompilerParams(
            dimension_semantics=("parallel",),
            vmem_limit_bytes=_vmem_limit()),
    )(*row_ins, *param_ins)
    if Mp != M:
        outs = [o[:M] for o in outs]
    return outs


# ----------------------------- fused projection kernels ----------------------

def _self_qkv_impl(x_ref, pos_ref, g_ref, b_ref, wqk_ref, bqk_ref, wv_ref, bv_ref,
                   q_ref, k_ref, v_ref, eps):
    D = q_ref.shape[-1]
    ln_f32 = _layernorm_f32(x_ref[...].astype(jnp.float32), g_ref[...], b_ref[...], eps)
    ln = ln_f32.astype(_COMPUTE_DTYPE)
    if pos_ref is None:
        qk_in = ln
    else:
        qk_in = (ln_f32 + pos_ref[...].astype(jnp.float32)).astype(_COMPUTE_DTYPE)
    # q and k share the same input -> one matmul against the concatenated (D, 2D) weight.
    qk = jnp.dot(qk_in, wqk_ref[...], preferred_element_type=jnp.float32) + bqk_ref[...]
    v = jnp.dot(ln, wv_ref[...], preferred_element_type=jnp.float32) + bv_ref[...]
    q_ref[...] = qk[:, :D].astype(q_ref.dtype)
    k_ref[...] = qk[:, D:].astype(k_ref.dtype)
    v_ref[...] = v.astype(v_ref.dtype)


def _self_qkv_kernel(x_ref, g_ref, b_ref, wqk_ref, bqk_ref, wv_ref, bv_ref,
                     q_ref, k_ref, v_ref, *, eps):
    _self_qkv_impl(x_ref, None, g_ref, b_ref, wqk_ref, bqk_ref, wv_ref, bv_ref,
                   q_ref, k_ref, v_ref, eps)


def _self_qkv_pos_kernel(x_ref, pos_ref, g_ref, b_ref, wqk_ref, bqk_ref, wv_ref, bv_ref,
                         q_ref, k_ref, v_ref, *, eps):
    _self_qkv_impl(x_ref, pos_ref, g_ref, b_ref, wqk_ref, bqk_ref, wv_ref, bv_ref,
                   q_ref, k_ref, v_ref, eps)


def _cross_q_impl(x_ref, pos_ref, g_ref, b_ref, wq_ref, bq_ref, q_ref, eps):
    ln_f32 = _layernorm_f32(x_ref[...].astype(jnp.float32), g_ref[...], b_ref[...], eps)
    if pos_ref is None:
        q_in = ln_f32.astype(_COMPUTE_DTYPE)
    else:
        q_in = (ln_f32 + pos_ref[...].astype(jnp.float32)).astype(_COMPUTE_DTYPE)
    q = jnp.dot(q_in, wq_ref[...], preferred_element_type=jnp.float32) + bq_ref[...]
    q_ref[...] = q.astype(q_ref.dtype)


def _cross_q_kernel(x_ref, g_ref, b_ref, wq_ref, bq_ref, q_ref, *, eps):
    _cross_q_impl(x_ref, None, g_ref, b_ref, wq_ref, bq_ref, q_ref, eps)


def _cross_q_pos_kernel(x_ref, pos_ref, g_ref, b_ref, wq_ref, bq_ref, q_ref, *, eps):
    _cross_q_impl(x_ref, pos_ref, g_ref, b_ref, wq_ref, bq_ref, q_ref, eps)


def _cross_kv_impl(mem_ref, pos_ref, wk_ref, bk_ref, wv_ref, bv_ref, k_ref, v_ref):
    mem_f32 = mem_ref[...].astype(jnp.float32)
    if pos_ref is None:
        k_in = mem_f32.astype(_COMPUTE_DTYPE)
    else:
        k_in = (mem_f32 + pos_ref[...].astype(jnp.float32)).astype(_COMPUTE_DTYPE)
    v_in = mem_f32.astype(_COMPUTE_DTYPE)
    k = jnp.dot(k_in, wk_ref[...], preferred_element_type=jnp.float32) + bk_ref[...]
    v = jnp.dot(v_in, wv_ref[...], preferred_element_type=jnp.float32) + bv_ref[...]
    k_ref[...] = k.astype(k_ref.dtype)
    v_ref[...] = v.astype(v_ref.dtype)


def _cross_kv_kernel(mem_ref, wk_ref, bk_ref, wv_ref, bv_ref, k_ref, v_ref):
    _cross_kv_impl(mem_ref, None, wk_ref, bk_ref, wv_ref, bv_ref, k_ref, v_ref)


def _cross_kv_pos_kernel(mem_ref, pos_ref, wk_ref, bk_ref, wv_ref, bv_ref, k_ref, v_ref):
    _cross_kv_impl(mem_ref, pos_ref, wk_ref, bk_ref, wv_ref, bv_ref, k_ref, v_ref)


def _ln_ffn_res_kernel(x_ref, g_ref, b_ref, w1_ref, b1_ref, w2_ref, b2_ref, o_ref, *, eps):
    x_f32 = x_ref[...].astype(jnp.float32)
    ln = _layernorm_f32(x_f32, g_ref[...], b_ref[...], eps).astype(_COMPUTE_DTYPE)
    h = jnp.dot(ln, w1_ref[...], preferred_element_type=jnp.float32) + b1_ref[...]
    h = jnp.maximum(h, 0.0).astype(_COMPUTE_DTYPE)        # ReLU, bf16 into 2nd matmul
    y = jnp.dot(h, w2_ref[...], preferred_element_type=jnp.float32) + b2_ref[...]
    o_ref[...] = (x_f32 + y).astype(o_ref.dtype)           # residual folded in


# ----------------------------- flash attention core --------------------------

def _flash_attn_kernel(q_ref, k_ref, v_ref, res_ref, wo_ref, bo_ref, o_ref,
                       m_sc, l_sc, acc_sc, *, num_heads, kv_len):
    kv_i = pl.program_id(2)

    @pl.when(kv_i == 0)
    def _():
        m_sc[...] = jnp.full(m_sc.shape, -jnp.inf, jnp.float32)
        l_sc[...] = jnp.zeros(l_sc.shape, jnp.float32)
        acc_sc[...] = jnp.zeros(acc_sc.shape, jnp.float32)

    q = q_ref[0]        # (TQ, D)  bf16, softmax scale already folded into the weights
    k = k_ref[0]        # (TK, D)  bf16
    v = v_ref[0]        # (TK, D)  bf16
    TQ, D = q.shape
    TK = k.shape[0]
    dh = D // num_heads

    need_mask = (kv_len % TK) != 0
    if need_mask:
        col = jax.lax.broadcasted_iota(jnp.int32, (TQ, TK), 1)
        valid = (kv_i * TK + col) < kv_len

    nt_dims = (((1,), (1,)), ((), ()))    # contract last dims ("NT" form, no transpose)
    for h in range(num_heads):            # static loop; heads stay lane-resident in VMEM
        sl = slice(h * dh, (h + 1) * dh)
        s = jax.lax.dot_general(q[:, sl].astype(_COMPUTE_DTYPE),
                                k[:, sl].astype(_COMPUTE_DTYPE),
                                nt_dims, preferred_element_type=jnp.float32)   # (TQ, TK)
        if need_mask:
            s = jnp.where(valid, s, -jnp.inf)
        m_prev = m_sc[h]                                                       # (TQ, 1)
        m_new = jnp.maximum(m_prev, jnp.max(s, axis=-1, keepdims=True))
        alpha = jnp.exp(m_prev - m_new)
        p = jnp.exp(s - m_new)
        l_sc[h] = alpha * l_sc[h] + jnp.sum(p, axis=-1, keepdims=True)
        acc_sc[h] = alpha * acc_sc[h] + jnp.dot(
            p.astype(_COMPUTE_DTYPE), v[:, sl].astype(_COMPUTE_DTYPE),
            preferred_element_type=jnp.float32)
        m_sc[h] = m_new

    @pl.when(kv_i == pl.num_programs(2) - 1)
    def _():
        outs = [acc_sc[h] / l_sc[h] for h in range(num_heads)]
        attn = jnp.concatenate(outs, axis=-1) if num_heads > 1 else outs[0]    # (TQ, D)
        # fused output projection + residual (no HBM round-trip of the attention output)
        y = jnp.dot(attn.astype(_COMPUTE_DTYPE), wo_ref[...],
                    preferred_element_type=jnp.float32) + bo_ref[...]
        o_ref[0] = (res_ref[0].astype(jnp.float32) + y).astype(o_ref.dtype)


def _flash_attention_proj_res(q, k, v, res, wo, bo, num_heads, q_tile, kv_tile):
    """q,k,v: (B,L*,D) bf16; res: (B,Lq,D). Returns res + Attn(q,k,v) @ wo + bo."""
    B, Lq, D = q.shape
    Lk = k.shape[1]
    dh = D // num_heads
    TQ = _choose_tile(Lq, q_tile)
    TK = _choose_tile(Lk, kv_tile)
    Lq_p = _round_up(Lq, TQ)
    Lk_p = _round_up(Lk, TK)
    if Lq_p != Lq:
        q = jnp.pad(q, ((0, 0), (0, Lq_p - Lq), (0, 0)))
        res = jnp.pad(res, ((0, 0), (0, Lq_p - Lq), (0, 0)))
    if Lk_p != Lk:
        k = jnp.pad(k, ((0, 0), (0, Lk_p - Lk), (0, 0)))
        v = jnp.pad(v, ((0, 0), (0, Lk_p - Lk), (0, 0)))
    n_q = Lq_p // TQ
    n_kv = Lk_p // TK

    kern = functools.partial(_flash_attn_kernel, num_heads=num_heads, kv_len=Lk)
    out = pl.pallas_call(
        kern,
        grid=(B, n_q, n_kv),
        in_specs=[
            pl.BlockSpec((1, TQ, D), lambda b, i, j: (b, i, 0)),   # q
            pl.BlockSpec((1, TK, D), lambda b, i, j: (b, j, 0)),   # k
            pl.BlockSpec((1, TK, D), lambda b, i, j: (b, j, 0)),   # v
            pl.BlockSpec((1, TQ, D), lambda b, i, j: (b, i, 0)),   # residual
            pl.BlockSpec((D, D), lambda b, i, j: (0, 0)),          # wo (resident)
            pl.BlockSpec((1, D), lambda b, i, j: (0, 0)),          # bo (resident)
        ],
        out_specs=pl.BlockSpec((1, TQ, D), lambda b, i, j: (b, i, 0)),
        out_shape=jax.ShapeDtypeStruct((B, Lq_p, D), res.dtype),
        scratch_shapes=[
            pltpu.VMEM((num_heads, TQ, 1), jnp.float32),    # running max
            pltpu.VMEM((num_heads, TQ, 1), jnp.float32),    # running denominator
            pltpu.VMEM((num_heads, TQ, dh), jnp.float32),   # running numerator
        ],
        compiler_params=pltpu.CompilerParams(
            dimension_semantics=("parallel", "parallel", "arbitrary"),
            vmem_limit_bytes=_vmem_limit()),
    )(q, k, v, res, wo, bo)
    return out[:, :Lq] if Lq_p != Lq else out


# ----------------------------- the layer --------------------------------------

def prepare_params(params, num_heads):
    """One-time (outside jit) weight layout prep: transpose torch (Dout,Din) weights,
    concatenate self-attn q/k projections, fold the 1/sqrt(dh) softmax scale into the
    q projection weight & bias, cast matmul weights to bf16, reshape biases/LN to (1,D)."""
    def t(w):
        return jnp.asarray(w, jnp.float32).T

    cdt = _COMPUTE_DTYPE
    d_model = params["norm1_g"].shape[0]
    dh = d_model // num_heads
    scale = 1.0 / (dh ** 0.5)
    sa, ca = params["self_attn"], params["cross_attn"]
    return dict(
        # self-attention block
        sa_norm_g=params["norm1_g"].reshape(1, -1),
        sa_norm_b=params["norm1_b"].reshape(1, -1),
        sa_wqk=jnp.concatenate([t(sa["wq"]) * scale, t(sa["wk"])], axis=1).astype(cdt),
        sa_bqk=jnp.concatenate([sa["bq"] * scale, sa["bk"]]).reshape(1, -1),
        sa_wv=t(sa["wv"]).astype(cdt), sa_bv=sa["bv"].reshape(1, -1),
        sa_wo=t(sa["wo"]).astype(cdt), sa_bo=sa["bo"].reshape(1, -1),
        # cross-attention block
        ca_norm_g=params["norm2_g"].reshape(1, -1),
        ca_norm_b=params["norm2_b"].reshape(1, -1),
        ca_wq=(t(ca["wq"]) * scale).astype(cdt), ca_bq=(ca["bq"] * scale).reshape(1, -1),
        ca_wk=t(ca["wk"]).astype(cdt), ca_bk=ca["bk"].reshape(1, -1),
        ca_wv=t(ca["wv"]).astype(cdt), ca_bv=ca["bv"].reshape(1, -1),
        ca_wo=t(ca["wo"]).astype(cdt), ca_bo=ca["bo"].reshape(1, -1),
        # feed-forward block
        ffn_norm_g=params["norm3_g"].reshape(1, -1),
        ffn_norm_b=params["norm3_b"].reshape(1, -1),
        w1=t(params["w1"]).astype(cdt), b1=params["b1"].reshape(1, -1),
        w2=t(params["w2"]).astype(cdt), b2=params["b2"].reshape(1, -1),
    )


def memory_attention_layer(tgt, memory, pos, query_pos, pp, cfg):
    """cfg: num_heads, pos_enc_* flags, optional row_tile / q_tile / kv_tile."""
    B, Lt, D = tgt.shape
    Lm = memory.shape[1]
    nh = cfg["num_heads"]
    row_tile = cfg.get("row_tile", _DEFAULT_ROW_TILE)
    q_tile = cfg.get("q_tile", _DEFAULT_Q_TILE)
    kv_tile = cfg.get("kv_tile", _DEFAULT_KV_TILE)
    eps = 1e-5
    cdt = _COMPUTE_DTYPE
    out_dtype = tgt.dtype

    tgt2d = tgt.reshape(B * Lt, D)
    qpos2d = query_pos.reshape(B * Lt, D)
    mem2d = memory.reshape(B * Lm, D)
    pos2d = pos.reshape(B * Lm, D)

    # ---- self-attention: LN + fused qk/v proj -> flash attn (+ out-proj + residual)
    sa_params = [pp["sa_norm_g"], pp["sa_norm_b"], pp["sa_wqk"], pp["sa_bqk"],
                 pp["sa_wv"], pp["sa_bv"]]
    if cfg["pos_enc_at_attn"]:
        q2d, k2d, v2d = _row_call(functools.partial(_self_qkv_pos_kernel, eps=eps),
                                  [tgt2d, qpos2d], sa_params, [D, D, D],
                                  [cdt, cdt, cdt], row_tile)
    else:
        q2d, k2d, v2d = _row_call(functools.partial(_self_qkv_kernel, eps=eps),
                                  [tgt2d], sa_params, [D, D, D],
                                  [cdt, cdt, cdt], row_tile)
    tgt3 = _flash_attention_proj_res(
        q2d.reshape(B, Lt, D), k2d.reshape(B, Lt, D), v2d.reshape(B, Lt, D),
        tgt2d.reshape(B, Lt, D), pp["sa_wo"], pp["sa_bo"], nh, q_tile, kv_tile)
    tgt2d = tgt3.reshape(B * Lt, D)

    # ---- cross-attention
    cq_params = [pp["ca_norm_g"], pp["ca_norm_b"], pp["ca_wq"], pp["ca_bq"]]
    if cfg["pos_enc_at_cross_attn_queries"]:
        (q2d,) = _row_call(functools.partial(_cross_q_pos_kernel, eps=eps),
                           [tgt2d, qpos2d], cq_params, [D], [cdt], row_tile)
    else:
        (q2d,) = _row_call(functools.partial(_cross_q_kernel, eps=eps),
                           [tgt2d], cq_params, [D], [cdt], row_tile)

    ckv_params = [pp["ca_wk"], pp["ca_bk"], pp["ca_wv"], pp["ca_bv"]]
    if cfg["pos_enc_at_cross_attn_keys"]:
        k2d, v2d = _row_call(_cross_kv_pos_kernel, [mem2d, pos2d], ckv_params,
                             [D, D], [cdt, cdt], row_tile)
    else:
        k2d, v2d = _row_call(_cross_kv_kernel, [mem2d], ckv_params,
                             [D, D], [cdt, cdt], row_tile)

    tgt3 = _flash_attention_proj_res(
        q2d.reshape(B, Lt, D), k2d.reshape(B, Lm, D), v2d.reshape(B, Lm, D),
        tgt2d.reshape(B, Lt, D), pp["ca_wo"], pp["ca_bo"], nh, q_tile, kv_tile)
    tgt2d = tgt3.reshape(B * Lt, D)

    # ---- feed-forward: LN + linear1 + ReLU + linear2 + residual (one kernel)
    (tgt2d,) = _row_call(functools.partial(_ln_ffn_res_kernel, eps=eps),
                         [tgt2d],
                         [pp["ffn_norm_g"], pp["ffn_norm_b"],
                          pp["w1"], pp["b1"], pp["w2"], pp["b2"]],
                         [D], [out_dtype], row_tile)
    return tgt2d.reshape(B, Lt, D)


# ----------------------------- pure-JAX reference ------------------------------

def _ref_layernorm(x, g, b, eps=1e-5):
    m = x.mean(-1, keepdims=True)
    v = ((x - m) ** 2).mean(-1, keepdims=True)
    return (x - m) * jax.lax.rsqrt(v + eps) * g + b


def _ref_mha(q, k, v, p, nh):
    B, Lq, D = q.shape
    Lk = k.shape[1]
    dh = D // nh
    qp = q @ p["wq"].T + p["bq"]
    kp = k @ p["wk"].T + p["bk"]
    vp = v @ p["wv"].T + p["bv"]
    qh = qp.reshape(B, Lq, nh, dh).transpose(0, 2, 1, 3)
    kh = kp.reshape(B, Lk, nh, dh).transpose(0, 2, 1, 3)
    vh = vp.reshape(B, Lk, nh, dh).transpose(0, 2, 1, 3)
    s = jnp.einsum("bhqd,bhkd->bhqk", qh, kh) / (dh ** 0.5)
    a = jax.nn.softmax(s, axis=-1)
    o = jnp.einsum("bhqk,bhkd->bhqd", a, vh).transpose(0, 2, 1, 3).reshape(B, Lq, D)
    return o @ p["wo"].T + p["bo"]


def _ref_layer(tgt, memory, pos, query_pos, params, cfg):
    nh = cfg["num_heads"]
    t2 = _ref_layernorm(tgt, params["norm1_g"], params["norm1_b"])
    qk = t2 + query_pos if cfg["pos_enc_at_attn"] else t2
    tgt = tgt + _ref_mha(qk, qk, t2, params["self_attn"], nh)
    t2 = _ref_layernorm(tgt, params["norm2_g"], params["norm2_b"])
    q = t2 + query_pos if cfg["pos_enc_at_cross_attn_queries"] else t2
    k = memory + pos if cfg["pos_enc_at_cross_attn_keys"] else memory
    tgt = tgt + _ref_mha(q, k, memory, params["cross_attn"], nh)
    t2 = _ref_layernorm(tgt, params["norm3_g"], params["norm3_b"])
    h = jnp.maximum(t2 @ params["w1"].T + params["b1"], 0.0)
    tgt = tgt + (h @ params["w2"].T + params["b2"])
    return tgt


# ----------------------------- main --------------------------------------------

def _init_params(key, d_model, dim_ff):
    ks = iter(jax.random.split(key, 32))

    def w(shape):
        return jax.random.normal(next(ks), shape, jnp.float32) * 0.02

    def attn_params():
        return dict(
            wq=w((d_model, d_model)), bq=jnp.zeros((d_model,), jnp.float32),
            wk=w((d_model, d_model)), bk=jnp.zeros((d_model,), jnp.float32),
            wv=w((d_model, d_model)), bv=jnp.zeros((d_model,), jnp.float32),
            wo=w((d_model, d_model)), bo=jnp.zeros((d_model,), jnp.float32),
        )

    return dict(
        self_attn=attn_params(),
        cross_attn=attn_params(),
        w1=w((dim_ff, d_model)), b1=jnp.zeros((dim_ff,), jnp.float32),
        w2=w((d_model, dim_ff)), b2=jnp.zeros((d_model,), jnp.float32),
        norm1_g=jnp.ones((d_model,), jnp.float32), norm1_b=jnp.zeros((d_model,), jnp.float32),
        norm2_g=jnp.ones((d_model,), jnp.float32), norm2_b=jnp.zeros((d_model,), jnp.float32),
        norm3_g=jnp.ones((d_model,), jnp.float32), norm3_b=jnp.zeros((d_model,), jnp.float32),
    )


if __name__ == "__main__":
    d_model, dim_ff, num_heads = 32, 64, 4
    B, Lt, Lm = 2, 8, 32

    cfg = dict(
        num_heads=num_heads,
        pos_enc_at_attn=False,                 # SAMv2 defaults
        pos_enc_at_cross_attn_queries=False,
        pos_enc_at_cross_attn_keys=True,
        # tiny tiles so the row / q / kv pipelines (incl. padded+masked kv tiles)
        # are exercised at toy sizes; use the 512 defaults at real SAMv2 shapes
        row_tile=16,
        q_tile=16,
        kv_tile=16,
    )

    key = jax.random.PRNGKey(0)
    kp, kt, km, kpos, kqp = jax.random.split(key, 5)
    params = _init_params(kp, d_model, dim_ff)
    pp = prepare_params(params, num_heads)   # one-time weight transpose/scale/cast, outside jit

    tgt = jax.random.normal(kt, (B, Lt, d_model), jnp.float32)
    memory = jax.random.normal(km, (B, Lm, d_model), jnp.float32)
    pos = jax.random.normal(kpos, (B, Lm, d_model), jnp.float32)
    query_pos = jax.random.normal(kqp, (B, Lt, d_model), jnp.float32)

    fwd = jax.jit(lambda t, m, p, qp: memory_attention_layer(t, m, p, qp, pp, cfg))
    out = fwd(tgt, memory, pos, query_pos)
    jax.block_until_ready(out)

    ref = _ref_layer(tgt, memory, pos, query_pos, params, cfg)
    # tolerance accounts for bf16 MXU operands (stats/accumulators are kept in f32)
    err = float(jnp.max(jnp.abs(out - ref)))
    assert jnp.allclose(out, ref, atol=2e-2, rtol=2e-2), f"mismatch vs reference: {err}"

    print("KERNEL_OK")
</pallas_src>

<mosaic_0001>
module attributes {stable_mosaic.version = 11 : i64} {
  func.func @_self_qkv_kernel(%arg0: i32, %arg1: memref<16x32xf32, #tpu.memory_space<vmem>>, %arg2: memref<1x32xf32, #tpu.memory_space<vmem>>, %arg3: memref<1x32xf32, #tpu.memory_space<vmem>>, %arg4: memref<32x64xbf16, #tpu.memory_space<vmem>>, %arg5: memref<1x64xf32, #tpu.memory_space<vmem>>, %arg6: memref<32x32xbf16, #tpu.memory_space<vmem>>, %arg7: memref<1x32xf32, #tpu.memory_space<vmem>>, %arg8: memref<16x32xbf16, #tpu.memory_space<vmem>>, %arg9: memref<16x32xbf16, #tpu.memory_space<vmem>>, %arg10: memref<16x32xbf16, #tpu.memory_space<vmem>>) attributes {dimension_semantics = [#tpu.dimension_semantics<parallel>], iteration_bounds = array<i64: 1>, scalar_prefetch = 0 : i64, scratch_operands = 0 : i64, tpu.core_type = #tpu.core_type<tc>, window_params = [{transform_indices = @transform_0, window_bounds = array<i64: 16, 32>}, {pipeline_mode = #tpu.pipeline_mode<synchronous>, transform_indices = @transform_1, window_bounds = array<i64: 1, 32>}, {pipeline_mode = #tpu.pipeline_mode<synchronous>, transform_indices = @transform_2, window_bounds = array<i64: 1, 32>}, {pipeline_mode = #tpu.pipeline_mode<synchronous>, transform_indices = @transform_3, window_bounds = array<i64: 32, 64>}, {pipeline_mode = #tpu.pipeline_mode<synchronous>, transform_indices = @transform_4, window_bounds = array<i64: 1, 64>}, {pipeline_mode = #tpu.pipeline_mode<synchronous>, transform_indices = @transform_5, window_bounds = array<i64: 32, 32>}, {pipeline_mode = #tpu.pipeline_mode<synchronous>, transform_indices = @transform_6, window_bounds = array<i64: 1, 32>}, {transform_indices = @transform_7, window_bounds = array<i64: 16, 32>}, {transform_indices = @transform_8, window_bounds = array<i64: 16, 32>}, {transform_indices = @transform_9, window_bounds = array<i64: 16, 32>}]} {
    %c0 = arith.constant 0 : index
    %c0_0 = arith.constant 0 : index
    %0 = vector.load %arg1[%c0, %c0_0] : memref<16x32xf32, #tpu.memory_space<vmem>>, vector<16x32xf32>
    %c0_1 = arith.constant 0 : index
    %c0_2 = arith.constant 0 : index
    %1 = vector.load %arg2[%c0_1, %c0_2] : memref<1x32xf32, #tpu.memory_space<vmem>>, vector<1x32xf32>
    %c0_3 = arith.constant 0 : index
    %c0_4 = arith.constant 0 : index
    %2 = vector.load %arg3[%c0_3, %c0_4] : memref<1x32xf32, #tpu.memory_space<vmem>>, vector<1x32xf32>
    %cst = arith.constant dense<0.000000e+00> : vector<16xf32>
    %3 = vector.multi_reduction <add>, %0, %cst [1] : vector<16x32xf32> to vector<16xf32>
    %4 = vector.shape_cast %3 : vector<16xf32> to vector<16x1xf32>
    %cst_5 = arith.constant 3.200000e+01 : f32
    %5 = vector.broadcast %cst_5 : f32 to vector<16x1xf32>
    %6 = arith.divf %4, %5 : vector<16x1xf32>
    %7 = vector.broadcast %6 : vector<16x1xf32> to vector<16x32xf32>
    %8 = arith.subf %0, %7 : vector<16x32xf32>
    %9 = arith.mulf %8, %8 : vector<16x32xf32>
    %cst_6 = arith.constant dense<0.000000e+00> : vector<16xf32>
    %10 = vector.multi_reduction <add>, %9, %cst_6 [1] : vector<16x32xf32> to vector<16xf32>
    %11 = vector.shape_cast %10 : vector<16xf32> to vector<16x1xf32>
    %cst_7 = arith.constant 3.200000e+01 : f32
    %12 = vector.broadcast %cst_7 : f32 to vector<16x1xf32>
    %13 = arith.divf %11, %12 : vector<16x1xf32>
    %14 = vector.broadcast %6 : vector<16x1xf32> to vector<16x32xf32>
    %15 = arith.subf %0, %14 : vector<16x32xf32>
    %cst_8 = arith.constant 9.99999974E-6 : f32
    %16 = vector.broadcast %cst_8 : f32 to vector<16x1xf32>
    %17 = arith.addf %13, %16 : vector<16x1xf32>
    %18 = math.rsqrt %17 : vector<16x1xf32>
    %19 = vector.broadcast %18 : vector<16x1xf32> to vector<16x32xf32>
    %20 = arith.mulf %15, %19 : vector<16x32xf32>
    %21 = vector.broadcast %1 : vector<1x32xf32> to vector<16x32xf32>
    %22 = arith.mulf %20, %21 : vector<16x32xf32>
    %23 = vector.broadcast %2 : vector<1x32xf32> to vector<16x32xf32>
    %24 = arith.addf %22, %23 : vector<16x32xf32>
    %25 = arith.truncf %24 : vector<16x32xf32> to vector<16x32xbf16>
    %c0_9 = arith.constant 0 : index
    %c0_10 = arith.constant 0 : index
    %26 = vector.load %arg4[%c0_9, %c0_10] : memref<32x64xbf16, #tpu.memory_space<vmem>>, vector<32x64xbf16>
    %cst_11 = arith.constant dense<0.000000e+00> : vector<16x64xf32>
    %27 = tpu.matmul %25, %26, %cst_11 {dimension_numbers = #tpu.dot_dimension_numbers<[1], [0], [0], [1], [0, 0, 1, 1], [], []>} : vector<16x32xbf16>, vector<32x64xbf16>, vector<16x64xf32> -> vector<16x64xf32>
    %c0_12 = arith.constant 0 : index
    %c0_13 = arith.constant 0 : index
    %28 = vector.load %arg5[%c0_12, %c0_13] : memref<1x64xf32, #tpu.memory_space<vmem>>, vector<1x64xf32>
    %29 = vector.broadcast %28 : vector<1x64xf32> to vector<16x64xf32>
    %30 = arith.addf %27, %29 : vector<16x64xf32>
    %c0_14 = arith.constant 0 : index
    %c0_15 = arith.constant 0 : index
    %31 = vector.load %arg6[%c0_14, %c0_15] : memref<32x32xbf16, #tpu.memory_space<vmem>>, vector<32x32xbf16>
    %cst_16 = arith.constant dense<0.000000e+00> : vector<16x32xf32>
    %32 = tpu.matmul %25, %31, %cst_16 {dimension_numbers = #tpu.dot_dimension_numbers<[1], [0], [0], [1], [0, 0, 1, 1], [], []>} : vector<16x32xbf16>, vector<32x32xbf16>, vector<16x32xf32> -> vector<16x32xf32>
    %c0_17 = arith.constant 0 : index
    %c0_18 = arith.constant 0 : index
    %33 = vector.load %arg7[%c0_17, %c0_18] : memref<1x32xf32, #tpu.memory_space<vmem>>, vector<1x32xf32>
    %34 = vector.broadcast %33 : vector<1x32xf32> to vector<16x32xf32>
    %35 = arith.addf %32, %34 : vector<16x32xf32>
    %36 = vector.extract_strided_slice %30 {offsets = [0, 0], sizes = [16, 32], strides = [1, 1]} : vector<16x64xf32> to vector<16x32xf32>
    %37 = arith.truncf %36 : vector<16x32xf32> to vector<16x32xbf16>
    %c0_19 = arith.constant 0 : index
    %c0_20 = arith.constant 0 : index
    %38 = vector.load %arg8[%c0_19, %c0_20] : memref<16x32xbf16, #tpu.memory_space<vmem>>, vector<16x32xbf16>
    tpu.vector_store %arg8[%c0_19, %c0_20], %37 {strides = array<i32>} : memref<16x32xbf16, #tpu.memory_space<vmem>>, vector<16x32xbf16>,
    %39 = vector.extract_strided_slice %30 {offsets = [0, 32], sizes = [16, 32], strides = [1, 1]} : vector<16x64xf32> to vector<16x32xf32>
    %40 = arith.truncf %39 : vector<16x32xf32> to vector<16x32xbf16>
    %c0_21 = arith.constant 0 : index
    %c0_22 = arith.constant 0 : index
    %41 = vector.load %arg9[%c0_21, %c0_22] : memref<16x32xbf16, #tpu.memory_space<vmem>>, vector<16x32xbf16>
    tpu.vector_store %arg9[%c0_21, %c0_22], %40 {strides = array<i32>} : memref<16x32xbf16, #tpu.memory_space<vmem>>, vector<16x32xbf16>,
    %42 = arith.truncf %35 : vector<16x32xf32> to vector<16x32xbf16>
    %c0_23 = arith.constant 0 : index
    %c0_24 = arith.constant 0 : index
    %43 = vector.load %arg10[%c0_23, %c0_24] : memref<16x32xbf16, #tpu.memory_space<vmem>>, vector<16x32xbf16>
    tpu.vector_store %arg10[%c0_23, %c0_24], %42 {strides = array<i32>} : memref<16x32xbf16, #tpu.memory_space<vmem>>, vector<16x32xbf16>,
    return
  }
  func.func @transform_0(%arg0: i32) -> (i32, i32) {
    %c0_i32 = arith.constant 0 : i32
    %c0_i32_0 = arith.constant 0 : i32
    return %arg0, %c0_i32 : i32, i32
  }
  func.func @transform_1(%arg0: i32) -> (i32, i32) {
    %c0_i32 = arith.constant 0 : i32
    %c0_i32_0 = arith.constant 0 : i32
    %c0_i32_1 = arith.constant 0 : i32
    return %c0_i32, %c0_i32_0 : i32, i32
  }
  func.func @transform_2(%arg0: i32) -> (i32, i32) {
    %c0_i32 = arith.constant 0 : i32
    %c0_i32_0 = arith.constant 0 : i32
    %c0_i32_1 = arith.constant 0 : i32
    return %c0_i32, %c0_i32_0 : i32, i32
  }
  func.func @transform_3(%arg0: i32) -> (i32, i32) {
    %c0_i32 = arith.constant 0 : i32
    %c0_i32_0 = arith.constant 0 : i32
    %c0_i32_1 = arith.constant 0 : i32
    return %c0_i32, %c0_i32_0 : i32, i32
  }
  func.func @transform_4(%arg0: i32) -> (i32, i32) {
    %c0_i32 = arith.constant 0 : i32
    %c0_i32_0 = arith.constant 0 : i32
    %c0_i32_1 = arith.constant 0 : i32
    return %c0_i32, %c0_i32_0 : i32, i32
  }
  func.func @transform_5(%arg0: i32) -> (i32, i32) {
    %c0_i32 = arith.constant 0 : i32
    %c0_i32_0 = arith.constant 0 : i32
    %c0_i32_1 = arith.constant 0 : i32
    return %c0_i32, %c0_i32_0 : i32, i32
  }
  func.func @transform_6(%arg0: i32) -> (i32, i32) {
    %c0_i32 = arith.constant 0 : i32
    %c0_i32_0 = arith.constant 0 : i32
    %c0_i32_1 = arith.constant 0 : i32
    return %c0_i32, %c0_i32_0 : i32, i32
  }
  func.func @transform_7(%arg0: i32) -> (i32, i32) {
    %c0_i32 = arith.constant 0 : i32
    %c0_i32_0 = arith.constant 0 : i32
    return %arg0, %c0_i32 : i32, i32
  }
  func.func @transform_8(%arg0: i32) -> (i32, i32) {
    %c0_i32 = arith.constant 0 : i32
    %c0_i32_0 = arith.constant 0 : i32
    return %arg0, %c0_i32 : i32, i32
  }
  func.func @transform_9(%arg0: i32) -> (i32, i32) {
    %c0_i32 = arith.constant 0 : i32
    %c0_i32_0 = arith.constant 0 : i32
    return %arg0, %c0_i32 : i32, i32
  }
}

module attributes {stable_mosaic.version = 11 : i64} {
  func.func @_cross_q_kernel(%arg0: i32, %arg1: memref<16x32xf32, #tpu.memory_space<vmem>>, %arg2: memref<1x32xf32, #tpu.memory_space<vmem>>, %arg3: memref<1x32xf32, #tpu.memory_space<vmem>>, %arg4: memref<32x32xbf16, #tpu.memory_space<vmem>>, %arg5: memref<1x32xf32, #tpu.memory_space<vmem>>, %arg6: memref<16x32xbf16, #tpu.memory_space<vmem>>) attributes {dimension_semantics = [#tpu.dimension_semantics<parallel>], iteration_bounds = array<i64: 1>, scalar_prefetch = 0 : i64, scratch_operands = 0 : i64, tpu.core_type = #tpu.core_type<tc>, window_params = [{transform_indices = @transform_0, window_bounds = array<i64: 16, 32>}, {pipeline_mode = #tpu.pipeline_mode<synchronous>, transform_indices = @transform_1, window_bounds = array<i64: 1, 32>}, {pipeline_mode = #tpu.pipeline_mode<synchronous>, transform_indices = @transform_2, window_bounds = array<i64: 1, 32>}, {pipeline_mode = #tpu.pipeline_mode<synchronous>, transform_indices = @transform_3, window_bounds = array<i64: 32, 32>}, {pipeline_mode = #tpu.pipeline_mode<synchronous>, transform_indices = @transform_4, window_bounds = array<i64: 1, 32>}, {transform_indices = @transform_5, window_bounds = array<i64: 16, 32>}]} {
    %c0 = arith.constant 0 : index
    %c0_0 = arith.constant 0 : index
    %0 = vector.load %arg1[%c0, %c0_0] : memref<16x32xf32, #tpu.memory_space<vmem>>, vector<16x32xf32>
    %c0_1 = arith.constant 0 : index
    %c0_2 = arith.constant 0 : index
    %1 = vector.load %arg2[%c0_1, %c0_2] : memref<1x32xf32, #tpu.memory_space<vmem>>, vector<1x32xf32>
    %c0_3 = arith.constant 0 : index
    %c0_4 = arith.constant 0 : index
    %2 = vector.load %arg3[%c0_3, %c0_4] : memref<1x32xf32, #tpu.memory_space<vmem>>, vector<1x32xf32>
    %cst = arith.constant dense<0.000000e+00> : vector<16xf32>
    %3 = vector.multi_reduction <add>, %0, %cst [1] : vector<16x32xf32> to vector<16xf32>
    %4 = vector.shape_cast %3 : vector<16xf32> to vector<16x1xf32>
    %cst_5 = arith.constant 3.200000e+01 : f32
    %5 = vector.broadcast %cst_5 : f32 to vector<16x1xf32>
    %6 = arith.divf %4, %5 : vector<16x1xf32>
    %7 = vector.broadcast %6 : vector<16x1xf32> to vector<16x32xf32>
    %8 = arith.subf %0, %7 : vector<16x32xf32>
    %9 = arith.mulf %8, %8 : vector<16x32xf32>
    %cst_6 = arith.constant dense<0.000000e+00> : vector<16xf32>
    %10 = vector.multi_reduction <add>, %9, %cst_6 [1] : vector<16x32xf32> to vector<16xf32>
    %11 = vector.shape_cast %10 : vector<16xf32> to vector<16x1xf32>
    %cst_7 = arith.constant 3.200000e+01 : f32
    %12 = vector.broadcast %cst_7 : f32 to vector<16x1xf32>
    %13 = arith.divf %11, %12 : vector<16x1xf32>
    %14 = vector.broadcast %6 : vector<16x1xf32> to vector<16x32xf32>
    %15 = arith.subf %0, %14 : vector<16x32xf32>
    %cst_8 = arith.constant 9.99999974E-6 : f32
    %16 = vector.broadcast %cst_8 : f32 to vector<16x1xf32>
    %17 = arith.addf %13, %16 : vector<16x1xf32>
    %18 = math.rsqrt %17 : vector<16x1xf32>
    %19 = vector.broadcast %18 : vector<16x1xf32> to vector<16x32xf32>
    %20 = arith.mulf %15, %19 : vector<16x32xf32>
    %21 = vector.broadcast %1 : vector<1x32xf32> to vector<16x32xf32>
    %22 = arith.mulf %20, %21 : vector<16x32xf32>
    %23 = vector.broadcast %2 : vector<1x32xf32> to vector<16x32xf32>
    %24 = arith.addf %22, %23 : vector<16x32xf32>
    %25 = arith.truncf %24 : vector<16x32xf32> to vector<16x32xbf16>
    %c0_9 = arith.constant 0 : index
    %c0_10 = arith.constant 0 : index
    %26 = vector.load %arg4[%c0_9, %c0_10] : memref<32x32xbf16, #tpu.memory_space<vmem>>, vector<32x32xbf16>
    %cst_11 = arith.constant dense<0.000000e+00> : vector<16x32xf32>
    %27 = tpu.matmul %25, %26, %cst_11 {dimension_numbers = #tpu.dot_dimension_numbers<[1], [0], [0], [1], [0, 0, 1, 1], [], []>} : vector<16x32xbf16>, vector<32x32xbf16>, vector<16x32xf32> -> vector<16x32xf32>
    %c0_12 = arith.constant 0 : index
    %c0_13 = arith.constant 0 : index
    %28 = vector.load %arg5[%c0_12, %c0_13] : memref<1x32xf32, #tpu.memory_space<vmem>>, vector<1x32xf32>
    %29 = vector.broadcast %28 : vector<1x32xf32> to vector<16x32xf32>
    %30 = arith.addf %27, %29 : vector<16x32xf32>
    %31 = arith.truncf %30 : vector<16x32xf32> to vector<16x32xbf16>
    %c0_14 = arith.constant 0 : index
    %c0_15 = arith.constant 0 : index
    %32 = vector.load %arg6[%c0_14, %c0_15] : memref<16x32xbf16, #tpu.memory_space<vmem>>, vector<16x32xbf16>
    tpu.vector_store %arg6[%c0_14, %c0_15], %31 {strides = array<i32>} : memref<16x32xbf16, #tpu.memory_space<vmem>>, vector<16x32xbf16>,
    return
  }
  func.func @transform_0(%arg0: i32) -> (i32, i32) {
    %c0_i32 = arith.constant 0 : i32
    %c0_i32_0 = arith.constant 0 : i32
    return %arg0, %c0_i32 : i32, i32
  }
  func.func @transform_1(%arg0: i32) -> (i32, i32) {
    %c0_i32 = arith.constant 0 : i32
    %c0_i32_0 = arith.constant 0 : i32
    %c0_i32_1 = arith.constant 0 : i32
    return %c0_i32, %c0_i32_0 : i32, i32
  }
  func.func @transform_2(%arg0: i32) -> (i32, i32) {
    %c0_i32 = arith.constant 0 : i32
    %c0_i32_0 = arith.constant 0 : i32
    %c0_i32_1 = arith.constant 0 : i32
    return %c0_i32, %c0_i32_0 : i32, i32
  }
  func.func @transform_3(%arg0: i32) -> (i32, i32) {
    %c0_i32 = arith.constant 0 : i32
    %c0_i32_0 = arith.constant 0 : i32
    %c0_i32_1 = arith.constant 0 : i32
    return %c0_i32, %c0_i32_0 : i32, i32
  }
  func.func @transform_4(%arg0: i32) -> (i32, i32) {
    %c0_i32 = arith.constant 0 : i32
    %c0_i32_0 = arith.constant 0 : i32
    %c0_i32_1 = arith.constant 0 : i32
    return %c0_i32, %c0_i32_0 : i32, i32
  }
  func.func @transform_5(%arg0: i32) -> (i32, i32) {
    %c0_i32 = arith.constant 0 : i32
    %c0_i32_0 = arith.constant 0 : i32
    return %arg0, %c0_i32 : i32, i32
  }
}

module attributes {stable_mosaic.version = 11 : i64} {
  func.func @_flash_attn_kernel(%arg0: i32, %arg1: i32, %arg2: i32, %arg3: memref<1x16x32xbf16, #tpu.memory_space<vmem>>, %arg4: memref<1x16x32xbf16, #tpu.memory_space<vmem>>, %arg5: memref<1x16x32xbf16, #tpu.memory_space<vmem>>, %arg6: memref<1x16x32xf32, #tpu.memory_space<vmem>>, %arg7: memref<32x32xbf16, #tpu.memory_space<vmem>>, %arg8: memref<1x32xf32, #tpu.memory_space<vmem>>, %arg9: memref<1x16x32xf32, #tpu.memory_space<vmem>>, %arg10: memref<4x16x1xf32, #tpu.memory_space<vmem>>, %arg11: memref<4x16x1xf32, #tpu.memory_space<vmem>>, %arg12: memref<4x16x8xf32, #tpu.memory_space<vmem>>) attributes {dimension_semantics = [#tpu.dimension_semantics<parallel>, #tpu.dimension_semantics<parallel>, #tpu.dimension_semantics<arbitrary>], iteration_bounds = array<i64: 2, 1, 1>, scalar_prefetch = 0 : i64, scratch_operands = 3 : i64, tpu.core_type = #tpu.core_type<tc>, window_params = [{transform_indices = @transform_0, window_bounds = array<i64: 1, 16, 32>}, {transform_indices = @transform_1, window_bounds = array<i64: 1, 16, 32>}, {transform_indices = @transform_2, window_bounds = array<i64: 1, 16, 32>}, {transform_indices = @transform_3, window_bounds = array<i64: 1, 16, 32>}, {pipeline_mode = #tpu.pipeline_mode<synchronous>, transform_indices = @transform_4, window_bounds = array<i64: 32, 32>}, {pipeline_mode = #tpu.pipeline_mode<synchronous>, transform_indices = @transform_5, window_bounds = array<i64: 1, 32>}, {transform_indices = @transform_6, window_bounds = array<i64: 1, 16, 32>}]} {
    %c0_i32 = arith.constant 0 : i32
    %0 = arith.cmpi eq, %arg2, %c0_i32 : i32
    %1 = arith.extui %0 : i1 to i32
    %c0_i32_0 = arith.constant 0 : i32
    %2 = arith.cmpi ne, %1, %c0_i32_0 : i32
    scf.if %2 {
      %cst_99 = arith.constant 0xFF800000 : f32
      %170 = vector.broadcast %cst_99 : f32 to vector<4x16x1xf32>
      %c0_100 = arith.constant 0 : index
      %c0_101 = arith.constant 0 : index
      %c0_102 = arith.constant 0 : index
      %171 = vector.load %arg10[%c0_100, %c0_101, %c0_102] : memref<4x16x1xf32, #tpu.memory_space<vmem>>, vector<4x16x1xf32>
      tpu.vector_store %arg10[%c0_100, %c0_101, %c0_102], %170 {strides = array<i32>} : memref<4x16x1xf32, #tpu.memory_space<vmem>>, vector<4x16x1xf32>,
      %cst_103 = arith.constant 0.000000e+00 : f32
      %172 = vector.broadcast %cst_103 : f32 to vector<4x16x1xf32>
      %c0_104 = arith.constant 0 : index
      %c0_105 = arith.constant 0 : index
      %c0_106 = arith.constant 0 : index
      %173 = vector.load %arg11[%c0_104, %c0_105, %c0_106] : memref<4x16x1xf32, #tpu.memory_space<vmem>>, vector<4x16x1xf32>
      tpu.vector_store %arg11[%c0_104, %c0_105, %c0_106], %172 {strides = array<i32>} : memref<4x16x1xf32, #tpu.memory_space<vmem>>, vector<4x16x1xf32>,
      %cst_107 = arith.constant 0.000000e+00 : f32
      %174 = vector.broadcast %cst_107 : f32 to vector<4x16x8xf32>
      %c0_108 = arith.constant 0 : index
      %c0_109 = arith.constant 0 : index
      %c0_110 = arith.constant 0 : index
      %175 = vector.load %arg12[%c0_108, %c0_109, %c0_110] : memref<4x16x8xf32, #tpu.memory_space<vmem>>, vector<4x16x8xf32>
      tpu.vector_store %arg12[%c0_108, %c0_109, %c0_110], %174 {strides = array<i32>} : memref<4x16x8xf32, #tpu.memory_space<vmem>>, vector<4x16x8xf32>,
    } else {
    }
    %c0 = arith.constant 0 : index
    %c0_1 = arith.constant 0 : index
    %c0_2 = arith.constant 0 : index
    %3 = vector.load %arg3[%c0, %c0_1, %c0_2] : memref<1x16x32xbf16, #tpu.memory_space<vmem>>, vector<1x16x32xbf16>
    %4 = vector.shape_cast %3 : vector<1x16x32xbf16> to vector<16x32xbf16>
    %c0_3 = arith.constant 0 : index
    %c0_4 = arith.constant 0 : index
    %c0_5 = arith.constant 0 : index
    %5 = vector.load %arg4[%c0_3, %c0_4, %c0_5] : memref<1x16x32xbf16, #tpu.memory_space<vmem>>, vector<1x16x32xbf16>
    %6 = vector.shape_cast %5 : vector<1x16x32xbf16> to vector<16x32xbf16>
    %c0_6 = arith.constant 0 : index
    %c0_7 = arith.constant 0 : index
    %c0_8 = arith.constant 0 : index
    %7 = vector.load %arg5[%c0_6, %c0_7, %c0_8] : memref<1x16x32xbf16, #tpu.memory_space<vmem>>, vector<1x16x32xbf16>
    %8 = vector.shape_cast %7 : vector<1x16x32xbf16> to vector<16x32xbf16>
    %9 = tpu.iota {dimensions = array<i32: 1>} : vector<16x16xi32>
    %c16_i32 = arith.constant 16 : i32
    %10 = arith.muli %arg2, %c16_i32 : i32
    %11 = vector.broadcast %10 : i32 to vector<16x16xi32>
    %12 = arith.addi %11, %9 : vector<16x16xi32>
    %c8_i32 = arith.constant 8 : i32
    %13 = vector.broadcast %c8_i32 : i32 to vector<16x16xi32>
    %14 = arith.cmpi slt, %12, %13 : vector<16x16xi32>
    %15 = vector.extract_strided_slice %4 {offsets = [0, 0], sizes = [16, 8], strides = [1, 1]} : vector<16x32xbf16> to vector<16x8xbf16>
    %16 = vector.extract_strided_slice %6 {offsets = [0, 0], sizes = [16, 8], strides = [1, 1]} : vector<16x32xbf16> to vector<16x8xbf16>
    %cst = arith.constant dense<0.000000e+00> : vector<16x16xf32>
    %17 = tpu.matmul %15, %16, %cst {dimension_numbers = #tpu.dot_dimension_numbers<[1], [1], [0], [0], [0, 0, 1, 0], [], []>} : vector<16x8xbf16>, vector<16x8xbf16>, vector<16x16xf32> -> vector<16x16xf32>
    %cst_9 = arith.constant 0xFF800000 : f32
    %18 = vector.broadcast %cst_9 : f32 to vector<16x16xf32>
    %19 = arith.select %14, %17, %18 : vector<16x16xi1>, vector<16x16xf32>
    %c0_10 = arith.constant 0 : index
    %c0_11 = arith.constant 0 : index
    %c0_12 = arith.constant 0 : index
    %20 = vector.load %arg10[%c0_10, %c0_11, %c0_12] : memref<4x16x1xf32, #tpu.memory_space<vmem>>, vector<1x16x1xf32>
    %21 = vector.shape_cast %20 : vector<1x16x1xf32> to vector<16x1xf32>
    %cst_13 = arith.constant dense<0xFF800000> : vector<16xf32>
    %22 = vector.multi_reduction <maximumf>, %19, %cst_13 [1] : vector<16x16xf32> to vector<16xf32>
    %23 = vector.shape_cast %22 : vector<16xf32> to vector<16x1xf32>
    %24 = arith.maximumf %21, %23 : vector<16x1xf32>
    %25 = arith.subf %21, %24 : vector<16x1xf32>
    %26 = math.exp %25 : vector<16x1xf32>
    %27 = vector.broadcast %24 : vector<16x1xf32> to vector<16x16xf32>
    %28 = arith.subf %19, %27 : vector<16x16xf32>
    %29 = math.exp %28 : vector<16x16xf32>
    %c0_14 = arith.constant 0 : index
    %c0_15 = arith.constant 0 : index
    %c0_16 = arith.constant 0 : index
    %30 = vector.load %arg11[%c0_14, %c0_15, %c0_16] : memref<4x16x1xf32, #tpu.memory_space<vmem>>, vector<1x16x1xf32>
    %31 = vector.shape_cast %30 : vector<1x16x1xf32> to vector<16x1xf32>
    %32 = arith.mulf %26, %31 : vector<16x1xf32>
    %cst_17 = arith.constant dense<0.000000e+00> : vector<16xf32>
    %33 = vector.multi_reduction <add>, %29, %cst_17 [1] : vector<16x16xf32> to vector<16xf32>
    %34 = vector.shape_cast %33 : vector<16xf32> to vector<16x1xf32>
    %35 = arith.addf %32, %34 : vector<16x1xf32>
    %c0_18 = arith.constant 0 : index
    %c0_19 = arith.constant 0 : index
    %c0_20 = arith.constant 0 : index
    %36 = vector.load %arg11[%c0_18, %c0_19, %c0_20] : memref<4x16x1xf32, #tpu.memory_space<vmem>>, vector<1x16x1xf32>
    %37 = vector.shape_cast %36 : vector<1x16x1xf32> to vector<16x1xf32>
    %38 = vector.shape_cast %35 : vector<16x1xf32> to vector<1x16x1xf32>
    tpu.vector_store %arg11[%c0_18, %c0_19, %c0_20], %38 {strides = array<i32>} : memref<4x16x1xf32, #tpu.memory_space<vmem>>, vector<1x16x1xf32>,
    %c0_21 = arith.constant 0 : index
    %c0_22 = arith.constant 0 : index
    %c0_23 = arith.constant 0 : index
    %39 = vector.load %arg12[%c0_21, %c0_22, %c0_23] : memref<4x16x8xf32, #tpu.memory_space<vmem>>, vector<1x16x8xf32>
    %40 = vector.shape_cast %39 : vector<1x16x8xf32> to vector<16x8xf32>
    %41 = vector.broadcast %26 : vector<16x1xf32> to vector<16x8xf32>
    %42 = arith.mulf %41, %40 : vector<16x8xf32>
    %43 = arith.truncf %29 : vector<16x16xf32> to vector<16x16xbf16>
    %44 = vector.extract_strided_slice %8 {offsets = [0, 0], sizes = [16, 8], strides = [1, 1]} : vector<16x32xbf16> to vector<16x8xbf16>
    %cst_24 = arith.constant dense<0.000000e+00> : vector<16x8xf32>
    %45 = tpu.matmul %43, %44, %cst_24 {dimension_numbers = #tpu.dot_dimension_numbers<[1], [0], [0], [1], [0, 0, 1, 1], [], []>} : vector<16x16xbf16>, vector<16x8xbf16>, vector<16x8xf32> -> vector<16x8xf32>
    %46 = arith.addf %42, %45 : vector<16x8xf32>
    %c0_25 = arith.constant 0 : index
    %c0_26 = arith.constant 0 : index
    %c0_27 = arith.constant 0 : index
    %47 = vector.load %arg12[%c0_25, %c0_26, %c0_27] : memref<4x16x8xf32, #tpu.memory_space<vmem>>, vector<1x16x8xf32>
    %48 = vector.shape_cast %47 : vector<1x16x8xf32> to vector<16x8xf32>
    %49 = vector.shape_cast %46 : vector<16x8xf32> to vector<1x16x8xf32>
    tpu.vector_store %arg12[%c0_25, %c0_26, %c0_27], %49 {strides = array<i32>} : memref<4x16x8xf32, #tpu.memory_space<vmem>>, vector<1x16x8xf32>,
    %c0_28 = arith.constant 0 : index
    %c0_29 = arith.constant 0 : index
    %c0_30 = arith.constant 0 : index
    %50 = vector.load %arg10[%c0_28, %c0_29, %c0_30] : memref<4x16x1xf32, #tpu.memory_space<vmem>>, vector<1x16x1xf32>
    %51 = vector.shape_cast %50 : vector<1x16x1xf32> to vector<16x1xf32>
    %52 = vector.shape_cast %24 : vector<16x1xf32> to vector<1x16x1xf32>
    tpu.vector_store %arg10[%c0_28, %c0_29, %c0_30], %52 {strides = array<i32>} : memref<4x16x1xf32, #tpu.memory_space<vmem>>, vector<1x16x1xf32>,
    %53 = vector.extract_strided_slice %4 {offsets = [0, 8], sizes = [16, 8], strides = [1, 1]} : vector<16x32xbf16> to vector<16x8xbf16>
    %54 = vector.extract_strided_slice %6 {offsets = [0, 8], sizes = [16, 8], strides = [1, 1]} : vector<16x32xbf16> to vector<16x8xbf16>
    %cst_31 = arith.constant dense<0.000000e+00> : vector<16x16xf32>
    %55 = tpu.matmul %53, %54, %cst_31 {dimension_numbers = #tpu.dot_dimension_numbers<[1], [1], [0], [0], [0, 0, 1, 0], [], []>} : vector<16x8xbf16>, vector<16x8xbf16>, vector<16x16xf32> -> vector<16x16xf32>
    %cst_32 = arith.constant 0xFF800000 : f32
    %56 = vector.broadcast %cst_32 : f32 to vector<16x16xf32>
    %57 = arith.select %14, %55, %56 : vector<16x16xi1>, vector<16x16xf32>
    %c1 = arith.constant 1 : index
    %c0_33 = arith.constant 0 : index
    %c0_34 = arith.constant 0 : index
    %58 = vector.load %arg10[%c1, %c0_33, %c0_34] : memref<4x16x1xf32, #tpu.memory_space<vmem>>, vector<1x16x1xf32>
    %59 = vector.shape_cast %58 : vector<1x16x1xf32> to vector<16x1xf32>
    %cst_35 = arith.constant dense<0xFF800000> : vector<16xf32>
    %60 = vector.multi_reduction <maximumf>, %57, %cst_35 [1] : vector<16x16xf32> to vector<16xf32>
    %61 = vector.shape_cast %60 : vector<16xf32> to vector<16x1xf32>
    %62 = arith.maximumf %59, %61 : vector<16x1xf32>
    %63 = arith.subf %59, %62 : vector<16x1xf32>
    %64 = math.exp %63 : vector<16x1xf32>
    %65 = vector.broadcast %62 : vector<16x1xf32> to vector<16x16xf32>
    %66 = arith.subf %57, %65 : vector<16x16xf32>
    %67 = math.exp %66 : vector<16x16xf32>
    %c1_36 = arith.constant 1 : index
    %c0_37 = arith.constant 0 : index
    %c0_38 = arith.constant 0 : index
    %68 = vector.load %arg11[%c1_36, %c0_37, %c0_38] : memref<4x16x1xf32, #tpu.memory_space<vmem>>, vector<1x16x1xf32>
    %69 = vector.shape_cast %68 : vector<1x16x1xf32> to vector<16x1xf32>
    %70 = arith.mulf %64, %69 : vector<16x1xf32>
    %cst_39 = arith.constant dense<0.000000e+00> : vector<16xf32>
    %71 = vector.multi_reduction <add>, %67, %cst_39 [1] : vector<16x16xf32> to vector<16xf32>
    %72 = vector.shape_cast %71 : vector<16xf32> to vector<16x1xf32>
    %73 = arith.addf %70, %72 : vector<16x1xf32>
    %c1_40 = arith.constant 1 : index
    %c0_41 = arith.constant 0 : index
    %c0_42 = arith.constant 0 : index
    %74 = vector.load %arg11[%c1_40, %c0_41, %c0_42] : memref<4x16x1xf32, #tpu.memory_space<vmem>>, vector<1x16x1xf32>
    %75 = vector.shape_cast %74 : vector<1x16x1xf32> to vector<16x1xf32>
    %76 = vector.shape_cast %73 : vector<16x1xf32> to vector<1x16x1xf32>
    tpu.vector_store %arg11[%c1_40, %c0_41, %c0_42], %76 {strides = array<i32>} : memref<4x16x1xf32, #tpu.memory_space<vmem>>, vector<1x16x1xf32>,
    %c1_43 = arith.constant 1 : index
    %c0_44 = arith.constant 0 : index
    %c0_45 = arith.constant 0 : index
    %77 = vector.load %arg12[%c1_43, %c0_44, %c0_45] : memref<4x16x8xf32, #tpu.memory_space<vmem>>, vector<1x16x8xf32>
    %78 = vector.shape_cast %77 : vector<1x16x8xf32> to vector<16x8xf32>
    %79 = vector.broadcast %64 : vector<16x1xf32> to vector<16x8xf32>
    %80 = arith.mulf %79, %78 : vector<16x8xf32>
    %81 = arith.truncf %67 : vector<16x16xf32> to vector<16x16xbf16>
    %82 = vector.extract_strided_slice %8 {offsets = [0, 8], sizes = [16, 8], strides = [1, 1]} : vector<16x32xbf16> to vector<16x8xbf16>
    %cst_46 = arith.constant dense<0.000000e+00> : vector<16x8xf32>
    %83 = tpu.matmul %81, %82, %cst_46 {dimension_numbers = #tpu.dot_dimension_numbers<[1], [0], [0], [1], [0, 0, 1, 1], [], []>} : vector<16x16xbf16>, vector<16x8xbf16>, vector<16x8xf32> -> vector<16x8xf32>
    %84 = arith.addf %80, %83 : vector<16x8xf32>
    %c1_47 = arith.constant 1 : index
    %c0_48 = arith.constant 0 : index
    %c0_49 = arith.constant 0 : index
    %85 = vector.load %arg12[%c1_47, %c0_48, %c0_49] : memref<4x16x8xf32, #tpu.memory_space<vmem>>, vector<1x16x8xf32>
    %86 = vector.shape_cast %85 : vector<1x16x8xf32> to vector<16x8xf32>
    %87 = vector.shape_cast %84 : vector<16x8xf32> to vector<1x16x8xf32>
    tpu.vector_store %arg12[%c1_47, %c0_48, %c0_49], %87 {strides = array<i32>} : memref<4x16x8xf32, #tpu.memory_space<vmem>>, vector<1x16x8xf32>,
    %c1_50 = arith.constant 1 : index
    %c0_51 = arith.constant 0 : index
    %c0_52 = arith.constant 0 : index
    %88 = vector.load %arg10[%c1_50, %c0_51, %c0_52] : memref<4x16x1xf32, #tpu.memory_space<vmem>>, vector<1x16x1xf32>
    %89 = vector.shape_cast %88 : vector<1x16x1xf32> to vector<16x1xf32>
    %90 = vector.shape_cast %62 : vector<16x1xf32> to vector<1x16x1xf32>
    tpu.vector_store %arg10[%c1_50, %c0_51, %c0_52], %90 {strides = array<i32>} : memref<4x16x1xf32, #tpu.memory_space<vmem>>, vector<1x16x1xf32>,
    %91 = vector.extract_strided_slice %4 {offsets = [0, 16], sizes = [16, 8], strides = [1, 1]} : vector<16x32xbf16> to vector<16x8xbf16>
    %92 = vector.extract_strided_slice %6 {offsets = [0, 16], sizes = [16, 8], strides = [1, 1]} : vector<16x32xbf16> to vector<16x8xbf16>
    %cst_53 = arith.constant dense<0.000000e+00> : vector<16x16xf32>
    %93 = tpu.matmul %91, %92, %cst_53 {dimension_numbers = #tpu.dot_dimension_numbers<[1], [1], [0], [0], [0, 0, 1, 0], [], []>} : vector<16x8xbf16>, vector<16x8xbf16>, vector<16x16xf32> -> vector<16x16xf32>
    %cst_54 = arith.constant 0xFF800000 : f32
    %94 = vector.broadcast %cst_54 : f32 to vector<16x16xf32>
    %95 = arith.select %14, %93, %94 : vector<16x16xi1>, vector<16x16xf32>
    %c2 = arith.constant 2 : index
    %c0_55 = arith.constant 0 : index
    %c0_56 = arith.constant 0 : index
    %96 = vector.load %arg10[%c2, %c0_55, %c0_56] : memref<4x16x1xf32, #tpu.memory_space<vmem>>, vector<1x16x1xf32>
    %97 = vector.shape_cast %96 : vector<1x16x1xf32> to vector<16x1xf32>
    %cst_57 = arith.constant dense<0xFF800000> : vector<16xf32>
    %98 = vector.multi_reduction <maximumf>, %95, %cst_57 [1] : vector<16x16xf32> to vector<16xf32>
    %99 = vector.shape_cast %98 : vector<16xf32> to vector<16x1xf32>
    %100 = arith.maximumf %97, %99 : vector<16x1xf32>
    %101 = arith.subf %97, %100 : vector<16x1xf32>
    %102 = math.exp %101 : vector<16x1xf32>
    %103 = vector.broadcast %100 : vector<16x1xf32> to vector<16x16xf32>
    %104 = arith.subf %95, %103 : vector<16x16xf32>
    %105 = math.exp %104 : vector<16x16xf32>
    %c2_58 = arith.constant 2 : index
    %c0_59 = arith.constant 0 : index
    %c0_60 = arith.constant 0 : index
    %106 = vector.load %arg11[%c2_58, %c0_59, %c0_60] : memref<4x16x1xf32, #tpu.memory_space<vmem>>, vector<1x16x1xf32>
    %107 = vector.shape_cast %106 : vector<1x16x1xf32> to vector<16x1xf32>
    %108 = arith.mulf %102, %107 : vector<16x1xf32>
    %cst_61 = arith.constant dense<0.000000e+00> : vector<16xf32>
    %109 = vector.multi_reduction <add>, %105, %cst_61 [1] : vector<16x16xf32> to vector<16xf32>
    %110 = vector.shape_cast %109 : vector<16xf32> to vector<16x1xf32>
    %111 = arith.addf %108, %110 : vector<16x1xf32>
    %c2_62 = arith.constant 2 : index
    %c0_63 = arith.constant 0 : index
    %c0_64 = arith.constant 0 : index
    %112 = vector.load %arg11[%c2_62, %c0_63, %c0_64] : memref<4x16x1xf32, #tpu.memory_space<vmem>>, vector<1x16x1xf32>
    %113 = vector.shape_cast %112 : vector<1x16x1xf32> to vector<16x1xf32>
    %114 = vector.shape_cast %111 : vector<16x1xf32> to vector<1x16x1xf32>
    tpu.vector_store %arg11[%c2_62, %c0_63, %c0_64], %114 {strides = array<i32>} : memref<4x16x1xf32, #tpu.memory_space<vmem>>, vector<1x16x1xf32>,
    %c2_65 = arith.constant 2 : index
    %c0_66 = arith.constant 0 : index
    %c0_67 = arith.constant 0 : index
    %115 = vector.load %arg12[%c2_65, %c0_66, %c0_67] : memref<4x16x8xf32, #tpu.memory_space<vmem>>, vector<1x16x8xf32>
    %116 = vector.shape_cast %115 : vector<1x16x8xf32> to vector<16x8xf32>
    %117 = vector.broadcast %102 : vector<16x1xf32> to vector<16x8xf32>
    %118 = arith.mulf %117, %116 : vector<16x8xf32>
    %119 = arith.truncf %105 : vector<16x16xf32> to vector<16x16xbf16>
    %120 = vector.extract_strided_slice %8 {offsets = [0, 16], sizes = [16, 8], strides = [1, 1]} : vector<16x32xbf16> to vector<16x8xbf16>
    %cst_68 = arith.constant dense<0.000000e+00> : vector<16x8xf32>
    %121 = tpu.matmul %119, %120, %cst_68 {dimension_numbers = #tpu.dot_dimension_numbers<[1], [0], [0], [1], [0, 0, 1, 1], [], []>} : vector<16x16xbf16>, vector<16x8xbf16>, vector<16x8xf32> -> vector<16x8xf32>
    %122 = arith.addf %118, %121 : vector<16x8xf32>
    %c2_69 = arith.constant 2 : index
    %c0_70 = arith.constant 0 : index
    %c0_71 = arith.constant 0 : index
    %123 = vector.load %arg12[%c2_69, %c0_70, %c0_71] : memref<4x16x8xf32, #tpu.memory_space<vmem>>, vector<1x16x8xf32>
    %124 = vector.shape_cast %123 : vector<1x16x8xf32> to vector<16x8xf32>
    %125 = vector.shape_cast %122 : vector<16x8xf32> to vector<1x16x8xf32>
    tpu.vector_store %arg12[%c2_69, %c0_70, %c0_71], %125 {strides = array<i32>} : memref<4x16x8xf32, #tpu.memory_space<vmem>>, vector<1x16x8xf32>,
    %c2_72 = arith.constant 2 : index
    %c0_73 = arith.constant 0 : index
    %c0_74 = arith.constant 0 : index
    %126 = vector.load %arg10[%c2_72, %c0_73, %c0_74] : memref<4x16x1xf32, #tpu.memory_space<vmem>>, vector<1x16x1xf32>
    %127 = vector.shape_cast %126 : vector<1x16x1xf32> to vector<16x1xf32>
    %128 = vector.shape_cast %100 : vector<16x1xf32> to vector<1x16x1xf32>
    tpu.vector_store %arg10[%c2_72, %c0_73, %c0_74], %128 {strides = array<i32>} : memref<4x16x1xf32, #tpu.memory_space<vmem>>, vector<1x16x1xf32>,
    %129 = vector.extract_strided_slice %4 {offsets = [0, 24], sizes = [16, 8], strides = [1, 1]} : vector<16x32xbf16> to vector<16x8xbf16>
    %130 = vector.extract_strided_slice %6 {offsets = [0, 24], sizes = [16, 8], strides = [1, 1]} : vector<16x32xbf16> to vector<16x8xbf16>
    %cst_75 = arith.constant dense<0.000000e+00> : vector<16x16xf32>
    %131 = tpu.matmul %129, %130, %cst_75 {dimension_numbers = #tpu.dot_dimension_numbers<[1], [1], [0], [0], [0, 0, 1, 0], [], []>} : vector<16x8xbf16>, vector<16x8xbf16>, vector<16x16xf32> -> vector<16x16xf32>
    %cst_76 = arith.constant 0xFF800000 : f32
    %132 = vector.broadcast %cst_76 : f32 to vector<16x16xf32>
    %133 = arith.select %14, %131, %132 : vector<16x16xi1>, vector<16x16xf32>
    %c3 = arith.constant 3 : index
    %c0_77 = arith.constant 0 : index
    %c0_78 = arith.constant 0 : index
    %134 = vector.load %arg10[%c3, %c0_77, %c0_78] : memref<4x16x1xf32, #tpu.memory_space<vmem>>, vector<1x16x1xf32>
    %135 = vector.shape_cast %134 : vector<1x16x1xf32> to vector<16x1xf32>
    %cst_79 = arith.constant dense<0xFF800000> : vector<16xf32>
    %136 = vector.multi_reduction <maximumf>, %133, %cst_79 [1] : vector<16x16xf32> to vector<16xf32>
    %137 = vector.shape_cast %136 : vector<16xf32> to vector<16x1xf32>
    %138 = arith.maximumf %135, %137 : vector<16x1xf32>
    %139 = arith.subf %135, %138 : vector<16x1xf32>
    %140 = math.exp %139 : vector<16x1xf32>
    %141 = vector.broadcast %138 : vector<16x1xf32> to vector<16x16xf32>
    %142 = arith.subf %133, %141 : vector<16x16xf32>
    %143 = math.exp %142 : vector<16x16xf32>
    %c3_80 = arith.constant 3 : index
    %c0_81 = arith.constant 0 : index
    %c0_82 = arith.constant 0 : index
    %144 = vector.load %arg11[%c3_80, %c0_81, %c0_82] : memref<4x16x1xf32, #tpu.memory_space<vmem>>, vector<1x16x1xf32>
    %145 = vector.shape_cast %144 : vector<1x16x1xf32> to vector<16x1xf32>
    %146 = arith.mulf %140, %145 : vector<16x1xf32>
    %cst_83 = arith.constant dense<0.000000e+00> : vector<16xf32>
    %147 = vector.multi_reduction <add>, %143, %cst_83 [1] : vector<16x16xf32> to vector<16xf32>
    %148 = vector.shape_cast %147 : vector<16xf32> to vector<16x1xf32>
    %149 = arith.addf %146, %148 : vector<16x1xf32>
    %c3_84 = arith.constant 3 : index
    %c0_85 = arith.constant 0 : index
    %c0_86 = arith.constant 0 : index
    %150 = vector.load %arg11[%c3_84, %c0_85, %c0_86] : memref<4x16x1xf32, #tpu.memory_space<vmem>>, vector<1x16x1xf32>
    %151 = vector.shape_cast %150 : vector<1x16x1xf32> to vector<16x1xf32>
    %152 = vector.shape_cast %149 : vector<16x1xf32> to vector<1x16x1xf32>
    tpu.vector_store %arg11[%c3_84, %c0_85, %c0_86], %152 {strides = array<i32>} : memref<4x16x1xf32, #tpu.memory_space<vmem>>, vector<1x16x1xf32>,
    %c3_87 = arith.constant 3 : index
    %c0_88 = arith.constant 0 : index
    %c0_89 = arith.constant 0 : index
    %153 = vector.load %arg12[%c3_87, %c0_88, %c0_89] : memref<4x16x8xf32, #tpu.memory_space<vmem>>, vector<1x16x8xf32>
    %154 = vector.shape_cast %153 : vector<1x16x8xf32> to vector<16x8xf32>
    %155 = vector.broadcast %140 : vector<16x1xf32> to vector<16x8xf32>
    %156 = arith.mulf %155, %154 : vector<16x8xf32>
    %157 = arith.truncf %143 : vector<16x16xf32> to vector<16x16xbf16>
    %158 = vector.extract_strided_slice %8 {offsets = [0, 24], sizes = [16, 8], strides = [1, 1]} : vector<16x32xbf16> to vector<16x8xbf16>
    %cst_90 = arith.constant dense<0.000000e+00> : vector<16x8xf32>
    %159 = tpu.matmul %157, %158, %cst_90 {dimension_numbers = #tpu.dot_dimension_numbers<[1], [0], [0], [1], [0, 0, 1, 1], [], []>} : vector<16x16xbf16>, vector<16x8xbf16>, vector<16x8xf32> -> vector<16x8xf32>
    %160 = arith.addf %156, %159 : vector<16x8xf32>
    %c3_91 = arith.constant 3 : index
    %c0_92 = arith.constant 0 : index
    %c0_93 = arith.constant 0 : index
    %161 = vector.load %arg12[%c3_91, %c0_92, %c0_93] : memref<4x16x8xf32, #tpu.memory_space<vmem>>, vector<1x16x8xf32>
    %162 = vector.shape_cast %161 : vector<1x16x8xf32> to vector<16x8xf32>
    %163 = vector.shape_cast %160 : vector<16x8xf32> to vector<1x16x8xf32>
    tpu.vector_store %arg12[%c3_91, %c0_92, %c0_93], %163 {strides = array<i32>} : memref<4x16x8xf32, #tpu.memory_space<vmem>>, vector<1x16x8xf32>,
    %c3_94 = arith.constant 3 : index
    %c0_95 = arith.constant 0 : index
    %c0_96 = arith.constant 0 : index
    %164 = vector.load %arg10[%c3_94, %c0_95, %c0_96] : memref<4x16x1xf32, #tpu.memory_space<vmem>>, vector<1x16x1xf32>
    %165 = vector.shape_cast %164 : vector<1x16x1xf32> to vector<16x1xf32>
    %166 = vector.shape_cast %138 : vector<16x1xf32> to vector<1x16x1xf32>
    tpu.vector_store %arg10[%c3_94, %c0_95, %c0_96], %166 {strides = array<i32>} : memref<4x16x1xf32, #tpu.memory_space<vmem>>, vector<1x16x1xf32>,
    %c0_i32_97 = arith.constant 0 : i32
    %167 = arith.cmpi eq, %arg2, %c0_i32_97 : i32
    %168 = arith.extui %167 : i1 to i32
    %c0_i32_98 = arith.constant 0 : i32
    %169 = arith.cmpi ne, %168, %c0_i32_98 : i32
    scf.if %169 {
      %c0_99 = arith.constant 0 : index
      %c0_100 = arith.constant 0 : index
      %c0_101 = arith.constant 0 : index
      %170 = vector.load %arg12[%c0_99, %c0_100, %c0_101] : memref<4x16x8xf32, #tpu.memory_space<vmem>>, vector<1x16x8xf32>
      %171 = vector.shape_cast %170 : vector<1x16x8xf32> to vector<16x8xf32>
      %c0_102 = arith.constant 0 : index
      %c0_103 = arith.constant 0 : index
      %c0_104 = arith.constant 0 : index
      %172 = vector.load %arg11[%c0_102, %c0_103, %c0_104] : memref<4x16x1xf32, #tpu.memory_space<vmem>>, vector<1x16x1xf32>
      %173 = vector.shape_cast %172 : vector<1x16x1xf32> to vector<16x1xf32>
      %174 = vector.broadcast %173 : vector<16x1xf32> to vector<16x8xf32>
      %175 = arith.divf %171, %174 : vector<16x8xf32>
      %c1_105 = arith.constant 1 : index
      %c0_106 = arith.constant 0 : index
      %c0_107 = arith.constant 0 : index
      %176 = vector.load %arg12[%c1_105, %c0_106, %c0_107] : memref<4x16x8xf32, #tpu.memory_space<vmem>>, vector<1x16x8xf32>
      %177 = vector.shape_cast %176 : vector<1x16x8xf32> to vector<16x8xf32>
      %c1_108 = arith.constant 1 : index
      %c0_109 = arith.constant 0 : index
      %c0_110 = arith.constant 0 : index
      %178 = vector.load %arg11[%c1_108, %c0_109, %c0_110] : memref<4x16x1xf32, #tpu.memory_space<vmem>>, vector<1x16x1xf32>
      %179 = vector.shape_cast %178 : vector<1x16x1xf32> to vector<16x1xf32>
      %180 = vector.broadcast %179 : vector<16x1xf32> to vector<16x8xf32>
      %181 = arith.divf %177, %180 : vector<16x8xf32>
      %c2_111 = arith.constant 2 : index
      %c0_112 = arith.constant 0 : index
      %c0_113 = arith.constant 0 : index
      %182 = vector.load %arg12[%c2_111, %c0_112, %c0_113] : memref<4x16x8xf32, #tpu.memory_space<vmem>>, vector<1x16x8xf32>
      %183 = vector.shape_cast %182 : vector<1x16x8xf32> to vector<16x8xf32>
      %c2_114 = arith.constant 2 : index
      %c0_115 = arith.constant 0 : index
      %c0_116 = arith.constant 0 : index
      %184 = vector.load %arg11[%c2_114, %c0_115, %c0_116] : memref<4x16x1xf32, #tpu.memory_space<vmem>>, vector<1x16x1xf32>
      %185 = vector.shape_cast %184 : vector<1x16x1xf32> to vector<16x1xf32>
      %186 = vector.broadcast %185 : vector<16x1xf32> to vector<16x8xf32>
      %187 = arith.divf %183, %186 : vector<16x8xf32>
      %c3_117 = arith.constant 3 : index
      %c0_118 = arith.constant 0 : index
      %c0_119 = arith.constant 0 : index
      %188 = vector.load %arg12[%c3_117, %c0_118, %c0_119] : memref<4x16x8xf32, #tpu.memory_space<vmem>>, vector<1x16x8xf32>
      %189 = vector.shape_cast %188 : vector<1x16x8xf32> to vector<16x8xf32>
      %c3_120 = arith.constant 3 : index
      %c0_121 = arith.constant 0 : index
      %c0_122 = arith.constant 0 : index
      %190 = vector.load %arg11[%c3_120, %c0_121, %c0_122] : memref<4x16x1xf32, #tpu.memory_space<vmem>>, vector<1x16x1xf32>
      %191 = vector.shape_cast %190 : vector<1x16x1xf32> to vector<16x1xf32>
      %192 = vector.broadcast %191 : vector<16x1xf32> to vector<16x8xf32>
      %193 = arith.divf %189, %192 : vector<16x8xf32>
      %194 = tpu.concatenate %175, %181, %187, %193 in 1 : vector<16x8xf32>, vector<16x8xf32>, vector<16x8xf32>, vector<16x8xf32> -> vector<16x32xf32>
      %195 = arith.truncf %194 : vector<16x32xf32> to vector<16x32xbf16>
      %c0_123 = arith.constant 0 : index
      %c0_124 = arith.constant 0 : index
      %196 = vector.load %arg7[%c0_123, %c0_124] : memref<32x32xbf16, #tpu.memory_space<vmem>>, vector<32x32xbf16>
      %cst_125 = arith.constant dense<0.000000e+00> : vector<16x32xf32>
      %197 = tpu.matmul %195, %196, %cst_125 {dimension_numbers = #tpu.dot_dimension_numbers<[1], [0], [0], [1], [0, 0, 1, 1], [], []>} : vector<16x32xbf16>, vector<32x32xbf16>, vector<16x32xf32> -> vector<16x32xf32>
      %c0_126 = arith.constant 0 : index
      %c0_127 = arith.constant 0 : index
      %198 = vector.load %arg8[%c0_126, %c0_127] : memref<1x32xf32, #tpu.memory_space<vmem>>, vector<1x32xf32>
      %199 = vector.broadcast %198 : vector<1x32xf32> to vector<16x32xf32>
      %200 = arith.addf %197, %199 : vector<16x32xf32>
      %c0_128 = arith.constant 0 : index
      %c0_129 = arith.constant 0 : index
      %c0_130 = arith.constant 0 : index
      %201 = vector.load %arg6[%c0_128, %c0_129, %c0_130] : memref<1x16x32xf32, #tpu.memory_space<vmem>>, vector<1x16x32xf32>
      %202 = vector.shape_cast %201 : vector<1x16x32xf32> to vector<16x32xf32>
      %203 = arith.addf %202, %200 : vector<16x32xf32>
      %c0_131 = arith.constant 0 : index
      %c0_132 = arith.constant 0 : index
      %c0_133 = arith.constant 0 : index
      %204 = vector.load %arg9[%c0_131, %c0_132, %c0_133] : memref<1x16x32xf32, #tpu.memory_space<vmem>>, vector<1x16x32xf32>
      %205 = vector.shape_cast %204 : vector<1x16x32xf32> to vector<16x32xf32>
      %206 = vector.shape_cast %203 : vector<16x32xf32> to vector<1x16x32xf32>
      tpu.vector_store %arg9[%c0_131, %c0_132, %c0_133], %206 {strides = array<i32>} : memref<1x16x32xf32, #tpu.memory_space<vmem>>, vector<1x16x32xf32>,
    } else {
    }
    return
  }
  func.func @transform_0(%arg0: i32, %arg1: i32, %arg2: i32) -> (i32, i32, i32) {
    %c0_i32 = arith.constant 0 : i32
    %c0_i32_0 = arith.constant 0 : i32
    return %arg0, %arg1, %c0_i32 : i32, i32, i32
  }
  func.func @transform_1(%arg0: i32, %arg1: i32, %arg2: i32) -> (i32, i32, i32) {
    %c0_i32 = arith.constant 0 : i32
    %c0_i32_0 = arith.constant 0 : i32
    return %arg0, %arg2, %c0_i32 : i32, i32, i32
  }
  func.func @transform_2(%arg0: i32, %arg1: i32, %arg2: i32) -> (i32, i32, i32) {
    %c0_i32 = arith.constant 0 : i32
    %c0_i32_0 = arith.constant 0 : i32
    return %arg0, %arg2, %c0_i32 : i32, i32, i32
  }
  func.func @transform_3(%arg0: i32, %arg1: i32, %arg2: i32) -> (i32, i32, i32) {
    %c0_i32 = arith.constant 0 : i32
    %c0_i32_0 = arith.constant 0 : i32
    return %arg0, %arg1, %c0_i32 : i32, i32, i32
  }
  func.func @transform_4(%arg0: i32, %arg1: i32, %arg2: i32) -> (i32, i32) {
    %c0_i32 = arith.constant 0 : i32
    %c0_i32_0 = arith.constant 0 : i32
    %c0_i32_1 = arith.constant 0 : i32
    return %c0_i32, %c0_i32_0 : i32, i32
  }
  func.func @transform_5(%arg0: i32, %arg1: i32, %arg2: i32) -> (i32, i32) {
    %c0_i32 = arith.constant 0 : i32
    %c0_i32_0 = arith.constant 0 : i32
    %c0_i32_1 = arith.constant 0 : i32
    return %c0_i32, %c0_i32_0 : i32, i32
  }
  func.func @transform_6(%arg0: i32, %arg1: i32, %arg2: i32) -> (i32, i32, i32) {
    %c0_i32 = arith.constant 0 : i32
    %c0_i32_0 = arith.constant 0 : i32
    return %arg0, %arg1, %c0_i32 : i32, i32, i32
  }
}

module attributes {stable_mosaic.version = 11 : i64} {
  func.func @_cross_kv_pos_kernel(%arg0: i32, %arg1: memref<16x32xf32, #tpu.memory_space<vmem>>, %arg2: memref<16x32xf32, #tpu.memory_space<vmem>>, %arg3: memref<32x32xbf16, #tpu.memory_space<vmem>>, %arg4: memref<1x32xf32, #tpu.memory_space<vmem>>, %arg5: memref<32x32xbf16, #tpu.memory_space<vmem>>, %arg6: memref<1x32xf32, #tpu.memory_space<vmem>>, %arg7: memref<16x32xbf16, #tpu.memory_space<vmem>>, %arg8: memref<16x32xbf16, #tpu.memory_space<vmem>>) attributes {dimension_semantics = [#tpu.dimension_semantics<parallel>], iteration_bounds = array<i64: 4>, scalar_prefetch = 0 : i64, scratch_operands = 0 : i64, tpu.core_type = #tpu.core_type<tc>, window_params = [{transform_indices = @transform_0, window_bounds = array<i64: 16, 32>}, {transform_indices = @transform_1, window_bounds = array<i64: 16, 32>}, {pipeline_mode = #tpu.pipeline_mode<synchronous>, transform_indices = @transform_2, window_bounds = array<i64: 32, 32>}, {pipeline_mode = #tpu.pipeline_mode<synchronous>, transform_indices = @transform_3, window_bounds = array<i64: 1, 32>}, {pipeline_mode = #tpu.pipeline_mode<synchronous>, transform_indices = @transform_4, window_bounds = array<i64: 32, 32>}, {pipeline_mode = #tpu.pipeline_mode<synchronous>, transform_indices = @transform_5, window_bounds = array<i64: 1, 32>}, {transform_indices = @transform_6, window_bounds = array<i64: 16, 32>}, {transform_indices = @transform_7, window_bounds = array<i64: 16, 32>}]} {
    %c0 = arith.constant 0 : index
    %c0_0 = arith.constant 0 : index
    %0 = vector.load %arg1[%c0, %c0_0] : memref<16x32xf32, #tpu.memory_space<vmem>>, vector<16x32xf32>
    %c0_1 = arith.constant 0 : index
    %c0_2 = arith.constant 0 : index
    %1 = vector.load %arg2[%c0_1, %c0_2] : memref<16x32xf32, #tpu.memory_space<vmem>>, vector<16x32xf32>
    %2 = arith.addf %0, %1 : vector<16x32xf32>
    %3 = arith.truncf %2 : vector<16x32xf32> to vector<16x32xbf16>
    %4 = arith.truncf %0 : vector<16x32xf32> to vector<16x32xbf16>
    %c0_3 = arith.constant 0 : index
    %c0_4 = arith.constant 0 : index
    %5 = vector.load %arg3[%c0_3, %c0_4] : memref<32x32xbf16, #tpu.memory_space<vmem>>, vector<32x32xbf16>
    %cst = arith.constant dense<0.000000e+00> : vector<16x32xf32>
    %6 = tpu.matmul %3, %5, %cst {dimension_numbers = #tpu.dot_dimension_numbers<[1], [0], [0], [1], [0, 0, 1, 1], [], []>} : vector<16x32xbf16>, vector<32x32xbf16>, vector<16x32xf32> -> vector<16x32xf32>
    %c0_5 = arith.constant 0 : index
    %c0_6 = arith.constant 0 : index
    %7 = vector.load %arg4[%c0_5, %c0_6] : memref<1x32xf32, #tpu.memory_space<vmem>>, vector<1x32xf32>
    %8 = vector.broadcast %7 : vector<1x32xf32> to vector<16x32xf32>
    %9 = arith.addf %6, %8 : vector<16x32xf32>
    %c0_7 = arith.constant 0 : index
    %c0_8 = arith.constant 0 : index
    %10 = vector.load %arg5[%c0_7, %c0_8] : memref<32x32xbf16, #tpu.memory_space<vmem>>, vector<32x32xbf16>
    %cst_9 = arith.constant dense<0.000000e+00> : vector<16x32xf32>
    %11 = tpu.matmul %4, %10, %cst_9 {dimension_numbers = #tpu.dot_dimension_numbers<[1], [0], [0], [1], [0, 0, 1, 1], [], []>} : vector<16x32xbf16>, vector<32x32xbf16>, vector<16x32xf32> -> vector<16x32xf32>
    %c0_10 = arith.constant 0 : index
    %c0_11 = arith.constant 0 : index
    %12 = vector.load %arg6[%c0_10, %c0_11] : memref<1x32xf32, #tpu.memory_space<vmem>>, vector<1x32xf32>
    %13 = vector.broadcast %12 : vector<1x32xf32> to vector<16x32xf32>
    %14 = arith.addf %11, %13 : vector<16x32xf32>
    %15 = arith.truncf %9 : vector<16x32xf32> to vector<16x32xbf16>
    %c0_12 = arith.constant 0 : index
    %c0_13 = arith.constant 0 : index
    %16 = vector.load %arg7[%c0_12, %c0_13] : memref<16x32xbf16, #tpu.memory_space<vmem>>, vector<16x32xbf16>
    tpu.vector_store %arg7[%c0_12, %c0_13], %15 {strides = array<i32>} : memref<16x32xbf16, #tpu.memory_space<vmem>>, vector<16x32xbf16>,
    %17 = arith.truncf %14 : vector<16x32xf32> to vector<16x32xbf16>
    %c0_14 = arith.constant 0 : index
    %c0_15 = arith.constant 0 : index
    %18 = vector.load %arg8[%c0_14, %c0_15] : memref<16x32xbf16, #tpu.memory_space<vmem>>, vector<16x32xbf16>
    tpu.vector_store %arg8[%c0_14, %c0_15], %17 {strides = array<i32>} : memref<16x32xbf16, #tpu.memory_space<vmem>>, vector<16x32xbf16>,
    return
  }
  func.func @transform_0(%arg0: i32) -> (i32, i32) {
    %c0_i32 = arith.constant 0 : i32
    %c0_i32_0 = arith.constant 0 : i32
    return %arg0, %c0_i32 : i32, i32
  }
  func.func @transform_1(%arg0: i32) -> (i32, i32) {
    %c0_i32 = arith.constant 0 : i32
    %c0_i32_0 = arith.constant 0 : i32
    return %arg0, %c0_i32 : i32, i32
  }
  func.func @transform_2(%arg0: i32) -> (i32, i32) {
    %c0_i32 = arith.constant 0 : i32
    %c0_i32_0 = arith.constant 0 : i32
    %c0_i32_1 = arith.constant 0 : i32
    return %c0_i32, %c0_i32_0 : i32, i32
  }
  func.func @transform_3(%arg0: i32) -> (i32, i32) {
    %c0_i32 = arith.constant 0 : i32
    %c0_i32_0 = arith.constant 0 : i32
    %c0_i32_1 = arith.constant 0 : i32
    return %c0_i32, %c0_i32_0 : i32, i32
  }
  func.func @transform_4(%arg0: i32) -> (i32, i32) {
    %c0_i32 = arith.constant 0 : i32
    %c0_i32_0 = arith.constant 0 : i32
    %c0_i32_1 = arith.constant 0 : i32
    return %c0_i32, %c0_i32_0 : i32, i32
  }
  func.func @transform_5(%arg0: i32) -> (i32, i32) {
    %c0_i32 = arith.constant 0 : i32
    %c0_i32_0 = arith.constant 0 : i32
    %c0_i32_1 = arith.constant 0 : i32
    return %c0_i32, %c0_i32_0 : i32, i32
  }
  func.func @transform_6(%arg0: i32) -> (i32, i32) {
    %c0_i32 = arith.constant 0 : i32
    %c0_i32_0 = arith.constant 0 : i32
    return %arg0, %c0_i32 : i32, i32
  }
  func.func @transform_7(%arg0: i32) -> (i32, i32) {
    %c0_i32 = arith.constant 0 : i32
    %c0_i32_0 = arith.constant 0 : i32
    return %arg0, %c0_i32 : i32, i32
  }
}

module attributes {stable_mosaic.version = 11 : i64} {
  func.func @_ln_ffn_res_kernel(%arg0: i32, %arg1: memref<16x32xf32, #tpu.memory_space<vmem>>, %arg2: memref<1x32xf32, #tpu.memory_space<vmem>>, %arg3: memref<1x32xf32, #tpu.memory_space<vmem>>, %arg4: memref<32x64xbf16, #tpu.memory_space<vmem>>, %arg5: memref<1x64xf32, #tpu.memory_space<vmem>>, %arg6: memref<64x32xbf16, #tpu.memory_space<vmem>>, %arg7: memref<1x32xf32, #tpu.memory_space<vmem>>, %arg8: memref<16x32xf32, #tpu.memory_space<vmem>>) attributes {dimension_semantics = [#tpu.dimension_semantics<parallel>], iteration_bounds = array<i64: 1>, scalar_prefetch = 0 : i64, scratch_operands = 0 : i64, tpu.core_type = #tpu.core_type<tc>, window_params = [{transform_indices = @transform_0, window_bounds = array<i64: 16, 32>}, {pipeline_mode = #tpu.pipeline_mode<synchronous>, transform_indices = @transform_1, window_bounds = array<i64: 1, 32>}, {pipeline_mode = #tpu.pipeline_mode<synchronous>, transform_indices = @transform_2, window_bounds = array<i64: 1, 32>}, {pipeline_mode = #tpu.pipeline_mode<synchronous>, transform_indices = @transform_3, window_bounds = array<i64: 32, 64>}, {pipeline_mode = #tpu.pipeline_mode<synchronous>, transform_indices = @transform_4, window_bounds = array<i64: 1, 64>}, {pipeline_mode = #tpu.pipeline_mode<synchronous>, transform_indices = @transform_5, window_bounds = array<i64: 64, 32>}, {pipeline_mode = #tpu.pipeline_mode<synchronous>, transform_indices = @transform_6, window_bounds = array<i64: 1, 32>}, {transform_indices = @transform_7, window_bounds = array<i64: 16, 32>}]} {
    %c0 = arith.constant 0 : index
    %c0_0 = arith.constant 0 : index
    %0 = vector.load %arg1[%c0, %c0_0] : memref<16x32xf32, #tpu.memory_space<vmem>>, vector<16x32xf32>
    %c0_1 = arith.constant 0 : index
    %c0_2 = arith.constant 0 : index
    %1 = vector.load %arg2[%c0_1, %c0_2] : memref<1x32xf32, #tpu.memory_space<vmem>>, vector<1x32xf32>
    %c0_3 = arith.constant 0 : index
    %c0_4 = arith.constant 0 : index
    %2 = vector.load %arg3[%c0_3, %c0_4] : memref<1x32xf32, #tpu.memory_space<vmem>>, vector<1x32xf32>
    %cst = arith.constant dense<0.000000e+00> : vector<16xf32>
    %3 = vector.multi_reduction <add>, %0, %cst [1] : vector<16x32xf32> to vector<16xf32>
    %4 = vector.shape_cast %3 : vector<16xf32> to vector<16x1xf32>
    %cst_5 = arith.constant 3.200000e+01 : f32
    %5 = vector.broadcast %cst_5 : f32 to vector<16x1xf32>
    %6 = arith.divf %4, %5 : vector<16x1xf32>
    %7 = vector.broadcast %6 : vector<16x1xf32> to vector<16x32xf32>
    %8 = arith.subf %0, %7 : vector<16x32xf32>
    %9 = arith.mulf %8, %8 : vector<16x32xf32>
    %cst_6 = arith.constant dense<0.000000e+00> : vector<16xf32>
    %10 = vector.multi_reduction <add>, %9, %cst_6 [1] : vector<16x32xf32> to vector<16xf32>
    %11 = vector.shape_cast %10 : vector<16xf32> to vector<16x1xf32>
    %cst_7 = arith.constant 3.200000e+01 : f32
    %12 = vector.broadcast %cst_7 : f32 to vector<16x1xf32>
    %13 = arith.divf %11, %12 : vector<16x1xf32>
    %14 = vector.broadcast %6 : vector<16x1xf32> to vector<16x32xf32>
    %15 = arith.subf %0, %14 : vector<16x32xf32>
    %cst_8 = arith.constant 9.99999974E-6 : f32
    %16 = vector.broadcast %cst_8 : f32 to vector<16x1xf32>
    %17 = arith.addf %13, %16 : vector<16x1xf32>
    %18 = math.rsqrt %17 : vector<16x1xf32>
    %19 = vector.broadcast %18 : vector<16x1xf32> to vector<16x32xf32>
    %20 = arith.mulf %15, %19 : vector<16x32xf32>
    %21 = vector.broadcast %1 : vector<1x32xf32> to vector<16x32xf32>
    %22 = arith.mulf %20, %21 : vector<16x32xf32>
    %23 = vector.broadcast %2 : vector<1x32xf32> to vector<16x32xf32>
    %24 = arith.addf %22, %23 : vector<16x32xf32>
    %25 = arith.truncf %24 : vector<16x32xf32> to vector<16x32xbf16>
    %c0_9 = arith.constant 0 : index
    %c0_10 = arith.constant 0 : index
    %26 = vector.load %arg4[%c0_9, %c0_10] : memref<32x64xbf16, #tpu.memory_space<vmem>>, vector<32x64xbf16>
    %cst_11 = arith.constant dense<0.000000e+00> : vector<16x64xf32>
    %27 = tpu.matmul %25, %26, %cst_11 {dimension_numbers = #tpu.dot_dimension_numbers<[1], [0], [0], [1], [0, 0, 1, 1], [], []>} : vector<16x32xbf16>, vector<32x64xbf16>, vector<16x64xf32> -> vector<16x64xf32>
    %c0_12 = arith.constant 0 : index
    %c0_13 = arith.constant 0 : index
    %28 = vector.load %arg5[%c0_12, %c0_13] : memref<1x64xf32, #tpu.memory_space<vmem>>, vector<1x64xf32>
    %29 = vector.broadcast %28 : vector<1x64xf32> to vector<16x64xf32>
    %30 = arith.addf %27, %29 : vector<16x64xf32>
    %cst_14 = arith.constant 0.000000e+00 : f32
    %31 = vector.broadcast %cst_14 : f32 to vector<16x64xf32>
    %32 = arith.maximumf %30, %31 : vector<16x64xf32>
    %33 = arith.truncf %32 : vector<16x64xf32> to vector<16x64xbf16>
    %c0_15 = arith.constant 0 : index
    %c0_16 = arith.constant 0 : index
    %34 = vector.load %arg6[%c0_15, %c0_16] : memref<64x32xbf16, #tpu.memory_space<vmem>>, vector<64x32xbf16>
    %cst_17 = arith.constant dense<0.000000e+00> : vector<16x32xf32>
    %35 = tpu.matmul %33, %34, %cst_17 {dimension_numbers = #tpu.dot_dimension_numbers<[1], [0], [0], [1], [0, 0, 1, 1], [], []>} : vector<16x64xbf16>, vector<64x32xbf16>, vector<16x32xf32> -> vector<16x32xf32>
    %c0_18 = arith.constant 0 : index
    %c0_19 = arith.constant 0 : index
    %36 = vector.load %arg7[%c0_18, %c0_19] : memref<1x32xf32, #tpu.memory_space<vmem>>, vector<1x32xf32>
    %37 = vector.broadcast %36 : vector<1x32xf32> to vector<16x32xf32>
    %38 = arith.addf %35, %37 : vector<16x32xf32>
    %39 = arith.addf %0, %38 : vector<16x32xf32>
    %c0_20 = arith.constant 0 : index
    %c0_21 = arith.constant 0 : index
    %40 = vector.load %arg8[%c0_20, %c0_21] : memref<16x32xf32, #tpu.memory_space<vmem>>, vector<16x32xf32>
    tpu.vector_store %arg8[%c0_20, %c0_21], %39 {strides = array<i32>} : memref<16x32xf32, #tpu.memory_space<vmem>>, vector<16x32xf32>,
    return
  }
  func.func @transform_0(%arg0: i32) -> (i32, i32) {
    %c0_i32 = arith.constant 0 : i32
    %c0_i32_0 = arith.constant 0 : i32
    return %arg0, %c0_i32 : i32, i32
  }
  func.func @transform_1(%arg0: i32) -> (i32, i32) {
    %c0_i32 = arith.constant 0 : i32
    %c0_i32_0 = arith.constant 0 : i32
    %c0_i32_1 = arith.constant 0 : i32
    return %c0_i32, %c0_i32_0 : i32, i32
  }
  func.func @transform_2(%arg0: i32) -> (i32, i32) {
    %c0_i32 = arith.constant 0 : i32
    %c0_i32_0 = arith.constant 0 : i32
    %c0_i32_1 = arith.constant 0 : i32
    return %c0_i32, %c0_i32_0 : i32, i32
  }
  func.func @transform_3(%arg0: i32) -> (i32, i32) {
    %c0_i32 = arith.constant 0 : i32
    %c0_i32_0 = arith.constant 0 : i32
    %c0_i32_1 = arith.constant 0 : i32
    return %c0_i32, %c0_i32_0 : i32, i32
  }
  func.func @transform_4(%arg0: i32) -> (i32, i32) {
    %c0_i32 = arith.constant 0 : i32
    %c0_i32_0 = arith.constant 0 : i32
    %c0_i32_1 = arith.constant 0 : i32
    return %c0_i32, %c0_i32_0 : i32, i32
  }
  func.func @transform_5(%arg0: i32) -> (i32, i32) {
    %c0_i32 = arith.constant 0 : i32
    %c0_i32_0 = arith.constant 0 : i32
    %c0_i32_1 = arith.constant 0 : i32
    return %c0_i32, %c0_i32_0 : i32, i32
  }
  func.func @transform_6(%arg0: i32) -> (i32, i32) {
    %c0_i32 = arith.constant 0 : i32
    %c0_i32_0 = arith.constant 0 : i32
    %c0_i32_1 = arith.constant 0 : i32
    return %c0_i32, %c0_i32_0 : i32, i32
  }
  func.func @transform_7(%arg0: i32) -> (i32, i32) {
    %c0_i32 = arith.constant 0 : i32
    %c0_i32_0 = arith.constant 0 : i32
    return %arg0, %c0_i32 : i32, i32
  }
}

module attributes {stable_mosaic.version = 11 : i64} {
  func.func @_flash_attn_kernel(%arg0: i32, %arg1: i32, %arg2: i32, %arg3: memref<1x16x32xbf16, #tpu.memory_space<vmem>>, %arg4: memref<1x16x32xbf16, #tpu.memory_space<vmem>>, %arg5: memref<1x16x32xbf16, #tpu.memory_space<vmem>>, %arg6: memref<1x16x32xf32, #tpu.memory_space<vmem>>, %arg7: memref<32x32xbf16, #tpu.memory_space<vmem>>, %arg8: memref<1x32xf32, #tpu.memory_space<vmem>>, %arg9: memref<1x16x32xf32, #tpu.memory_space<vmem>>, %arg10: memref<4x16x1xf32, #tpu.memory_space<vmem>>, %arg11: memref<4x16x1xf32, #tpu.memory_space<vmem>>, %arg12: memref<4x16x8xf32, #tpu.memory_space<vmem>>) attributes {dimension_semantics = [#tpu.dimension_semantics<parallel>, #tpu.dimension_semantics<parallel>, #tpu.dimension_semantics<arbitrary>], iteration_bounds = array<i64: 2, 1, 2>, scalar_prefetch = 0 : i64, scratch_operands = 3 : i64, tpu.core_type = #tpu.core_type<tc>, window_params = [{transform_indices = @transform_0, window_bounds = array<i64: 1, 16, 32>}, {transform_indices = @transform_1, window_bounds = array<i64: 1, 16, 32>}, {transform_indices = @transform_2, window_bounds = array<i64: 1, 16, 32>}, {transform_indices = @transform_3, window_bounds = array<i64: 1, 16, 32>}, {pipeline_mode = #tpu.pipeline_mode<synchronous>, transform_indices = @transform_4, window_bounds = array<i64: 32, 32>}, {pipeline_mode = #tpu.pipeline_mode<synchronous>, transform_indices = @transform_5, window_bounds = array<i64: 1, 32>}, {transform_indices = @transform_6, window_bounds = array<i64: 1, 16, 32>}]} {
    %c0_i32 = arith.constant 0 : i32
    %0 = arith.cmpi eq, %arg2, %c0_i32 : i32
    %1 = arith.extui %0 : i1 to i32
    %c0_i32_0 = arith.constant 0 : i32
    %2 = arith.cmpi ne, %1, %c0_i32_0 : i32
    scf.if %2 {
      %cst_94 = arith.constant 0xFF800000 : f32
      %156 = vector.broadcast %cst_94 : f32 to vector<4x16x1xf32>
      %c0_95 = arith.constant 0 : index
      %c0_96 = arith.constant 0 : index
      %c0_97 = arith.constant 0 : index
      %157 = vector.load %arg10[%c0_95, %c0_96, %c0_97] : memref<4x16x1xf32, #tpu.memory_space<vmem>>, vector<4x16x1xf32>
      tpu.vector_store %arg10[%c0_95, %c0_96, %c0_97], %156 {strides = array<i32>} : memref<4x16x1xf32, #tpu.memory_space<vmem>>, vector<4x16x1xf32>,
      %cst_98 = arith.constant 0.000000e+00 : f32
      %158 = vector.broadcast %cst_98 : f32 to vector<4x16x1xf32>
      %c0_99 = arith.constant 0 : index
      %c0_100 = arith.constant 0 : index
      %c0_101 = arith.constant 0 : index
      %159 = vector.load %arg11[%c0_99, %c0_100, %c0_101] : memref<4x16x1xf32, #tpu.memory_space<vmem>>, vector<4x16x1xf32>
      tpu.vector_store %arg11[%c0_99, %c0_100, %c0_101], %158 {strides = array<i32>} : memref<4x16x1xf32, #tpu.memory_space<vmem>>, vector<4x16x1xf32>,
      %cst_102 = arith.constant 0.000000e+00 : f32
      %160 = vector.broadcast %cst_102 : f32 to vector<4x16x8xf32>
      %c0_103 = arith.constant 0 : index
      %c0_104 = arith.constant 0 : index
      %c0_105 = arith.constant 0 : index
      %161 = vector.load %arg12[%c0_103, %c0_104, %c0_105] : memref<4x16x8xf32, #tpu.memory_space<vmem>>, vector<4x16x8xf32>
      tpu.vector_store %arg12[%c0_103, %c0_104, %c0_105], %160 {strides = array<i32>} : memref<4x16x8xf32, #tpu.memory_space<vmem>>, vector<4x16x8xf32>,
    } else {
    }
    %c0 = arith.constant 0 : index
    %c0_1 = arith.constant 0 : index
    %c0_2 = arith.constant 0 : index
    %3 = vector.load %arg3[%c0, %c0_1, %c0_2] : memref<1x16x32xbf16, #tpu.memory_space<vmem>>, vector<1x16x32xbf16>
    %4 = vector.shape_cast %3 : vector<1x16x32xbf16> to vector<16x32xbf16>
    %c0_3 = arith.constant 0 : index
    %c0_4 = arith.constant 0 : index
    %c0_5 = arith.constant 0 : index
    %5 = vector.load %arg4[%c0_3, %c0_4, %c0_5] : memref<1x16x32xbf16, #tpu.memory_space<vmem>>, vector<1x16x32xbf16>
    %6 = vector.shape_cast %5 : vector<1x16x32xbf16> to vector<16x32xbf16>
    %c0_6 = arith.constant 0 : index
    %c0_7 = arith.constant 0 : index
    %c0_8 = arith.constant 0 : index
    %7 = vector.load %arg5[%c0_6, %c0_7, %c0_8] : memref<1x16x32xbf16, #tpu.memory_space<vmem>>, vector<1x16x32xbf16>
    %8 = vector.shape_cast %7 : vector<1x16x32xbf16> to vector<16x32xbf16>
    %9 = vector.extract_strided_slice %4 {offsets = [0, 0], sizes = [16, 8], strides = [1, 1]} : vector<16x32xbf16> to vector<16x8xbf16>
    %10 = vector.extract_strided_slice %6 {offsets = [0, 0], sizes = [16, 8], strides = [1, 1]} : vector<16x32xbf16> to vector<16x8xbf16>
    %cst = arith.constant dense<0.000000e+00> : vector<16x16xf32>
    %11 = tpu.matmul %9, %10, %cst {dimension_numbers = #tpu.dot_dimension_numbers<[1], [1], [0], [0], [0, 0, 1, 0], [], []>} : vector<16x8xbf16>, vector<16x8xbf16>, vector<16x16xf32> -> vector<16x16xf32>
    %c0_9 = arith.constant 0 : index
    %c0_10 = arith.constant 0 : index
    %c0_11 = arith.constant 0 : index
    %12 = vector.load %arg10[%c0_9, %c0_10, %c0_11] : memref<4x16x1xf32, #tpu.memory_space<vmem>>, vector<1x16x1xf32>
    %13 = vector.shape_cast %12 : vector<1x16x1xf32> to vector<16x1xf32>
    %cst_12 = arith.constant dense<0xFF800000> : vector<16xf32>
    %14 = vector.multi_reduction <maximumf>, %11, %cst_12 [1] : vector<16x16xf32> to vector<16xf32>
    %15 = vector.shape_cast %14 : vector<16xf32> to vector<16x1xf32>
    %16 = arith.maximumf %13, %15 : vector<16x1xf32>
    %17 = arith.subf %13, %16 : vector<16x1xf32>
    %18 = math.exp %17 : vector<16x1xf32>
    %19 = vector.broadcast %16 : vector<16x1xf32> to vector<16x16xf32>
    %20 = arith.subf %11, %19 : vector<16x16xf32>
    %21 = math.exp %20 : vector<16x16xf32>
    %c0_13 = arith.constant 0 : index
    %c0_14 = arith.constant 0 : index
    %c0_15 = arith.constant 0 : index
    %22 = vector.load %arg11[%c0_13, %c0_14, %c0_15] : memref<4x16x1xf32, #tpu.memory_space<vmem>>, vector<1x16x1xf32>
    %23 = vector.shape_cast %22 : vector<1x16x1xf32> to vector<16x1xf32>
    %24 = arith.mulf %18, %23 : vector<16x1xf32>
    %cst_16 = arith.constant dense<0.000000e+00> : vector<16xf32>
    %25 = vector.multi_reduction <add>, %21, %cst_16 [1] : vector<16x16xf32> to vector<16xf32>
    %26 = vector.shape_cast %25 : vector<16xf32> to vector<16x1xf32>
    %27 = arith.addf %24, %26 : vector<16x1xf32>
    %c0_17 = arith.constant 0 : index
    %c0_18 = arith.constant 0 : index
    %c0_19 = arith.constant 0 : index
    %28 = vector.load %arg11[%c0_17, %c0_18, %c0_19] : memref<4x16x1xf32, #tpu.memory_space<vmem>>, vector<1x16x1xf32>
    %29 = vector.shape_cast %28 : vector<1x16x1xf32> to vector<16x1xf32>
    %30 = vector.shape_cast %27 : vector<16x1xf32> to vector<1x16x1xf32>
    tpu.vector_store %arg11[%c0_17, %c0_18, %c0_19], %30 {strides = array<i32>} : memref<4x16x1xf32, #tpu.memory_space<vmem>>, vector<1x16x1xf32>,
    %c0_20 = arith.constant 0 : index
    %c0_21 = arith.constant 0 : index
    %c0_22 = arith.constant 0 : index
    %31 = vector.load %arg12[%c0_20, %c0_21, %c0_22] : memref<4x16x8xf32, #tpu.memory_space<vmem>>, vector<1x16x8xf32>
    %32 = vector.shape_cast %31 : vector<1x16x8xf32> to vector<16x8xf32>
    %33 = vector.broadcast %18 : vector<16x1xf32> to vector<16x8xf32>
    %34 = arith.mulf %33, %32 : vector<16x8xf32>
    %35 = arith.truncf %21 : vector<16x16xf32> to vector<16x16xbf16>
    %36 = vector.extract_strided_slice %8 {offsets = [0, 0], sizes = [16, 8], strides = [1, 1]} : vector<16x32xbf16> to vector<16x8xbf16>
    %cst_23 = arith.constant dense<0.000000e+00> : vector<16x8xf32>
    %37 = tpu.matmul %35, %36, %cst_23 {dimension_numbers = #tpu.dot_dimension_numbers<[1], [0], [0], [1], [0, 0, 1, 1], [], []>} : vector<16x16xbf16>, vector<16x8xbf16>, vector<16x8xf32> -> vector<16x8xf32>
    %38 = arith.addf %34, %37 : vector<16x8xf32>
    %c0_24 = arith.constant 0 : index
    %c0_25 = arith.constant 0 : index
    %c0_26 = arith.constant 0 : index
    %39 = vector.load %arg12[%c0_24, %c0_25, %c0_26] : memref<4x16x8xf32, #tpu.memory_space<vmem>>, vector<1x16x8xf32>
    %40 = vector.shape_cast %39 : vector<1x16x8xf32> to vector<16x8xf32>
    %41 = vector.shape_cast %38 : vector<16x8xf32> to vector<1x16x8xf32>
    tpu.vector_store %arg12[%c0_24, %c0_25, %c0_26], %41 {strides = array<i32>} : memref<4x16x8xf32, #tpu.memory_space<vmem>>, vector<1x16x8xf32>,
    %c0_27 = arith.constant 0 : index
    %c0_28 = arith.constant 0 : index
    %c0_29 = arith.constant 0 : index
    %42 = vector.load %arg10[%c0_27, %c0_28, %c0_29] : memref<4x16x1xf32, #tpu.memory_space<vmem>>, vector<1x16x1xf32>
    %43 = vector.shape_cast %42 : vector<1x16x1xf32> to vector<16x1xf32>
    %44 = vector.shape_cast %16 : vector<16x1xf32> to vector<1x16x1xf32>
    tpu.vector_store %arg10[%c0_27, %c0_28, %c0_29], %44 {strides = array<i32>} : memref<4x16x1xf32, #tpu.memory_space<vmem>>, vector<1x16x1xf32>,
    %45 = vector.extract_strided_slice %4 {offsets = [0, 8], sizes = [16, 8], strides = [1, 1]} : vector<16x32xbf16> to vector<16x8xbf16>
    %46 = vector.extract_strided_slice %6 {offsets = [0, 8], sizes = [16, 8], strides = [1, 1]} : vector<16x32xbf16> to vector<16x8xbf16>
    %cst_30 = arith.constant dense<0.000000e+00> : vector<16x16xf32>
    %47 = tpu.matmul %45, %46, %cst_30 {dimension_numbers = #tpu.dot_dimension_numbers<[1], [1], [0], [0], [0, 0, 1, 0], [], []>} : vector<16x8xbf16>, vector<16x8xbf16>, vector<16x16xf32> -> vector<16x16xf32>
    %c1 = arith.constant 1 : index
    %c0_31 = arith.constant 0 : index
    %c0_32 = arith.constant 0 : index
    %48 = vector.load %arg10[%c1, %c0_31, %c0_32] : memref<4x16x1xf32, #tpu.memory_space<vmem>>, vector<1x16x1xf32>
    %49 = vector.shape_cast %48 : vector<1x16x1xf32> to vector<16x1xf32>
    %cst_33 = arith.constant dense<0xFF800000> : vector<16xf32>
    %50 = vector.multi_reduction <maximumf>, %47, %cst_33 [1] : vector<16x16xf32> to vector<16xf32>
    %51 = vector.shape_cast %50 : vector<16xf32> to vector<16x1xf32>
    %52 = arith.maximumf %49, %51 : vector<16x1xf32>
    %53 = arith.subf %49, %52 : vector<16x1xf32>
    %54 = math.exp %53 : vector<16x1xf32>
    %55 = vector.broadcast %52 : vector<16x1xf32> to vector<16x16xf32>
    %56 = arith.subf %47, %55 : vector<16x16xf32>
    %57 = math.exp %56 : vector<16x16xf32>
    %c1_34 = arith.constant 1 : index
    %c0_35 = arith.constant 0 : index
    %c0_36 = arith.constant 0 : index
    %58 = vector.load %arg11[%c1_34, %c0_35, %c0_36] : memref<4x16x1xf32, #tpu.memory_space<vmem>>, vector<1x16x1xf32>
    %59 = vector.shape_cast %58 : vector<1x16x1xf32> to vector<16x1xf32>
    %60 = arith.mulf %54, %59 : vector<16x1xf32>
    %cst_37 = arith.constant dense<0.000000e+00> : vector<16xf32>
    %61 = vector.multi_reduction <add>, %57, %cst_37 [1] : vector<16x16xf32> to vector<16xf32>
    %62 = vector.shape_cast %61 : vector<16xf32> to vector<16x1xf32>
    %63 = arith.addf %60, %62 : vector<16x1xf32>
    %c1_38 = arith.constant 1 : index
    %c0_39 = arith.constant 0 : index
    %c0_40 = arith.constant 0 : index
    %64 = vector.load %arg11[%c1_38, %c0_39, %c0_40] : memref<4x16x1xf32, #tpu.memory_space<vmem>>, vector<1x16x1xf32>
    %65 = vector.shape_cast %64 : vector<1x16x1xf32> to vector<16x1xf32>
    %66 = vector.shape_cast %63 : vector<16x1xf32> to vector<1x16x1xf32>
    tpu.vector_store %arg11[%c1_38, %c0_39, %c0_40], %66 {strides = array<i32>} : memref<4x16x1xf32, #tpu.memory_space<vmem>>, vector<1x16x1xf32>,
    %c1_41 = arith.constant 1 : index
    %c0_42 = arith.constant 0 : index
    %c0_43 = arith.constant 0 : index
    %67 = vector.load %arg12[%c1_41, %c0_42, %c0_43] : memref<4x16x8xf32, #tpu.memory_space<vmem>>, vector<1x16x8xf32>
    %68 = vector.shape_cast %67 : vector<1x16x8xf32> to vector<16x8xf32>
    %69 = vector.broadcast %54 : vector<16x1xf32> to vector<16x8xf32>
    %70 = arith.mulf %69, %68 : vector<16x8xf32>
    %71 = arith.truncf %57 : vector<16x16xf32> to vector<16x16xbf16>
    %72 = vector.extract_strided_slice %8 {offsets = [0, 8], sizes = [16, 8], strides = [1, 1]} : vector<16x32xbf16> to vector<16x8xbf16>
    %cst_44 = arith.constant dense<0.000000e+00> : vector<16x8xf32>
    %73 = tpu.matmul %71, %72, %cst_44 {dimension_numbers = #tpu.dot_dimension_numbers<[1], [0], [0], [1], [0, 0, 1, 1], [], []>} : vector<16x16xbf16>, vector<16x8xbf16>, vector<16x8xf32> -> vector<16x8xf32>
    %74 = arith.addf %70, %73 : vector<16x8xf32>
    %c1_45 = arith.constant 1 : index
    %c0_46 = arith.constant 0 : index
    %c0_47 = arith.constant 0 : index
    %75 = vector.load %arg12[%c1_45, %c0_46, %c0_47] : memref<4x16x8xf32, #tpu.memory_space<vmem>>, vector<1x16x8xf32>
    %76 = vector.shape_cast %75 : vector<1x16x8xf32> to vector<16x8xf32>
    %77 = vector.shape_cast %74 : vector<16x8xf32> to vector<1x16x8xf32>
    tpu.vector_store %arg12[%c1_45, %c0_46, %c0_47], %77 {strides = array<i32>} : memref<4x16x8xf32, #tpu.memory_space<vmem>>, vector<1x16x8xf32>,
    %c1_48 = arith.constant 1 : index
    %c0_49 = arith.constant 0 : index
    %c0_50 = arith.constant 0 : index
    %78 = vector.load %arg10[%c1_48, %c0_49, %c0_50] : memref<4x16x1xf32, #tpu.memory_space<vmem>>, vector<1x16x1xf32>
    %79 = vector.shape_cast %78 : vector<1x16x1xf32> to vector<16x1xf32>
    %80 = vector.shape_cast %52 : vector<16x1xf32> to vector<1x16x1xf32>
    tpu.vector_store %arg10[%c1_48, %c0_49, %c0_50], %80 {strides = array<i32>} : memref<4x16x1xf32, #tpu.memory_space<vmem>>, vector<1x16x1xf32>,
    %81 = vector.extract_strided_slice %4 {offsets = [0, 16], sizes = [16, 8], strides = [1, 1]} : vector<16x32xbf16> to vector<16x8xbf16>
    %82 = vector.extract_strided_slice %6 {offsets = [0, 16], sizes = [16, 8], strides = [1, 1]} : vector<16x32xbf16> to vector<16x8xbf16>
    %cst_51 = arith.constant dense<0.000000e+00> : vector<16x16xf32>
    %83 = tpu.matmul %81, %82, %cst_51 {dimension_numbers = #tpu.dot_dimension_numbers<[1], [1], [0], [0], [0, 0, 1, 0], [], []>} : vector<16x8xbf16>, vector<16x8xbf16>, vector<16x16xf32> -> vector<16x16xf32>
    %c2 = arith.constant 2 : index
    %c0_52 = arith.constant 0 : index
    %c0_53 = arith.constant 0 : index
    %84 = vector.load %arg10[%c2, %c0_52, %c0_53] : memref<4x16x1xf32, #tpu.memory_space<vmem>>, vector<1x16x1xf32>
    %85 = vector.shape_cast %84 : vector<1x16x1xf32> to vector<16x1xf32>
    %cst_54 = arith.constant dense<0xFF800000> : vector<16xf32>
    %86 = vector.multi_reduction <maximumf>, %83, %cst_54 [1] : vector<16x16xf32> to vector<16xf32>
    %87 = vector.shape_cast %86 : vector<16xf32> to vector<16x1xf32>
    %88 = arith.maximumf %85, %87 : vector<16x1xf32>
    %89 = arith.subf %85, %88 : vector<16x1xf32>
    %90 = math.exp %89 : vector<16x1xf32>
    %91 = vector.broadcast %88 : vector<16x1xf32> to vector<16x16xf32>
    %92 = arith.subf %83, %91 : vector<16x16xf32>
    %93 = math.exp %92 : vector<16x16xf32>
    %c2_55 = arith.constant 2 : index
    %c0_56 = arith.constant 0 : index
    %c0_57 = arith.constant 0 : index
    %94 = vector.load %arg11[%c2_55, %c0_56, %c0_57] : memref<4x16x1xf32, #tpu.memory_space<vmem>>, vector<1x16x1xf32>
    %95 = vector.shape_cast %94 : vector<1x16x1xf32> to vector<16x1xf32>
    %96 = arith.mulf %90, %95 : vector<16x1xf32>
    %cst_58 = arith.constant dense<0.000000e+00> : vector<16xf32>
    %97 = vector.multi_reduction <add>, %93, %cst_58 [1] : vector<16x16xf32> to vector<16xf32>
    %98 = vector.shape_cast %97 : vector<16xf32> to vector<16x1xf32>
    %99 = arith.addf %96, %98 : vector<16x1xf32>
    %c2_59 = arith.constant 2 : index
    %c0_60 = arith.constant 0 : index
    %c0_61 = arith.constant 0 : index
    %100 = vector.load %arg11[%c2_59, %c0_60, %c0_61] : memref<4x16x1xf32, #tpu.memory_space<vmem>>, vector<1x16x1xf32>
    %101 = vector.shape_cast %100 : vector<1x16x1xf32> to vector<16x1xf32>
    %102 = vector.shape_cast %99 : vector<16x1xf32> to vector<1x16x1xf32>
    tpu.vector_store %arg11[%c2_59, %c0_60, %c0_61], %102 {strides = array<i32>} : memref<4x16x1xf32, #tpu.memory_space<vmem>>, vector<1x16x1xf32>,
    %c2_62 = arith.constant 2 : index
    %c0_63 = arith.constant 0 : index
    %c0_64 = arith.constant 0 : index
    %103 = vector.load %arg12[%c2_62, %c0_63, %c0_64] : memref<4x16x8xf32, #tpu.memory_space<vmem>>, vector<1x16x8xf32>
    %104 = vector.shape_cast %103 : vector<1x16x8xf32> to vector<16x8xf32>
    %105 = vector.broadcast %90 : vector<16x1xf32> to vector<16x8xf32>
    %106 = arith.mulf %105, %104 : vector<16x8xf32>
    %107 = arith.truncf %93 : vector<16x16xf32> to vector<16x16xbf16>
    %108 = vector.extract_strided_slice %8 {offsets = [0, 16], sizes = [16, 8], strides = [1, 1]} : vector<16x32xbf16> to vector<16x8xbf16>
    %cst_65 = arith.constant dense<0.000000e+00> : vector<16x8xf32>
    %109 = tpu.matmul %107, %108, %cst_65 {dimension_numbers = #tpu.dot_dimension_numbers<[1], [0], [0], [1], [0, 0, 1, 1], [], []>} : vector<16x16xbf16>, vector<16x8xbf16>, vector<16x8xf32> -> vector<16x8xf32>
    %110 = arith.addf %106, %109 : vector<16x8xf32>
    %c2_66 = arith.constant 2 : index
    %c0_67 = arith.constant 0 : index
    %c0_68 = arith.constant 0 : index
    %111 = vector.load %arg12[%c2_66, %c0_67, %c0_68] : memref<4x16x8xf32, #tpu.memory_space<vmem>>, vector<1x16x8xf32>
    %112 = vector.shape_cast %111 : vector<1x16x8xf32> to vector<16x8xf32>
    %113 = vector.shape_cast %110 : vector<16x8xf32> to vector<1x16x8xf32>
    tpu.vector_store %arg12[%c2_66, %c0_67, %c0_68], %113 {strides = array<i32>} : memref<4x16x8xf32, #tpu.memory_space<vmem>>, vector<1x16x8xf32>,
    %c2_69 = arith.constant 2 : index
    %c0_70 = arith.constant 0 : index
    %c0_71 = arith.constant 0 : index
    %114 = vector.load %arg10[%c2_69, %c0_70, %c0_71] : memref<4x16x1xf32, #tpu.memory_space<vmem>>, vector<1x16x1xf32>
    %115 = vector.shape_cast %114 : vector<1x16x1xf32> to vector<16x1xf32>
    %116 = vector.shape_cast %88 : vector<16x1xf32> to vector<1x16x1xf32>
    tpu.vector_store %arg10[%c2_69, %c0_70, %c0_71], %116 {strides = array<i32>} : memref<4x16x1xf32, #tpu.memory_space<vmem>>, vector<1x16x1xf32>,
    %117 = vector.extract_strided_slice %4 {offsets = [0, 24], sizes = [16, 8], strides = [1, 1]} : vector<16x32xbf16> to vector<16x8xbf16>
    %118 = vector.extract_strided_slice %6 {offsets = [0, 24], sizes = [16, 8], strides = [1, 1]} : vector<16x32xbf16> to vector<16x8xbf16>
    %cst_72 = arith.constant dense<0.000000e+00> : vector<16x16xf32>
    %119 = tpu.matmul %117, %118, %cst_72 {dimension_numbers = #tpu.dot_dimension_numbers<[1], [1], [0], [0], [0, 0, 1, 0], [], []>} : vector<16x8xbf16>, vector<16x8xbf16>, vector<16x16xf32> -> vector<16x16xf32>
    %c3 = arith.constant 3 : index
    %c0_73 = arith.constant 0 : index
    %c0_74 = arith.constant 0 : index
    %120 = vector.load %arg10[%c3, %c0_73, %c0_74] : memref<4x16x1xf32, #tpu.memory_space<vmem>>, vector<1x16x1xf32>
    %121 = vector.shape_cast %120 : vector<1x16x1xf32> to vector<16x1xf32>
    %cst_75 = arith.constant dense<0xFF800000> : vector<16xf32>
    %122 = vector.multi_reduction <maximumf>, %119, %cst_75 [1] : vector<16x16xf32> to vector<16xf32>
    %123 = vector.shape_cast %122 : vector<16xf32> to vector<16x1xf32>
    %124 = arith.maximumf %121, %123 : vector<16x1xf32>
    %125 = arith.subf %121, %124 : vector<16x1xf32>
    %126 = math.exp %125 : vector<16x1xf32>
    %127 = vector.broadcast %124 : vector<16x1xf32> to vector<16x16xf32>
    %128 = arith.subf %119, %127 : vector<16x16xf32>
    %129 = math.exp %128 : vector<16x16xf32>
    %c3_76 = arith.constant 3 : index
    %c0_77 = arith.constant 0 : index
    %c0_78 = arith.constant 0 : index
    %130 = vector.load %arg11[%c3_76, %c0_77, %c0_78] : memref<4x16x1xf32, #tpu.memory_space<vmem>>, vector<1x16x1xf32>
    %131 = vector.shape_cast %130 : vector<1x16x1xf32> to vector<16x1xf32>
    %132 = arith.mulf %126, %131 : vector<16x1xf32>
    %cst_79 = arith.constant dense<0.000000e+00> : vector<16xf32>
    %133 = vector.multi_reduction <add>, %129, %cst_79 [1] : vector<16x16xf32> to vector<16xf32>
    %134 = vector.shape_cast %133 : vector<16xf32> to vector<16x1xf32>
    %135 = arith.addf %132, %134 : vector<16x1xf32>
    %c3_80 = arith.constant 3 : index
    %c0_81 = arith.constant 0 : index
    %c0_82 = arith.constant 0 : index
    %136 = vector.load %arg11[%c3_80, %c0_81, %c0_82] : memref<4x16x1xf32, #tpu.memory_space<vmem>>, vector<1x16x1xf32>
    %137 = vector.shape_cast %136 : vector<1x16x1xf32> to vector<16x1xf32>
    %138 = vector.shape_cast %135 : vector<16x1xf32> to vector<1x16x1xf32>
    tpu.vector_store %arg11[%c3_80, %c0_81, %c0_82], %138 {strides = array<i32>} : memref<4x16x1xf32, #tpu.memory_space<vmem>>, vector<1x16x1xf32>,
    %c3_83 = arith.constant 3 : index
    %c0_84 = arith.constant 0 : index
    %c0_85 = arith.constant 0 : index
    %139 = vector.load %arg12[%c3_83, %c0_84, %c0_85] : memref<4x16x8xf32, #tpu.memory_space<vmem>>, vector<1x16x8xf32>
    %140 = vector.shape_cast %139 : vector<1x16x8xf32> to vector<16x8xf32>
    %141 = vector.broadcast %126 : vector<16x1xf32> to vector<16x8xf32>
    %142 = arith.mulf %141, %140 : vector<16x8xf32>
    %143 = arith.truncf %129 : vector<16x16xf32> to vector<16x16xbf16>
    %144 = vector.extract_strided_slice %8 {offsets = [0, 24], sizes = [16, 8], strides = [1, 1]} : vector<16x32xbf16> to vector<16x8xbf16>
    %cst_86 = arith.constant dense<0.000000e+00> : vector<16x8xf32>
    %145 = tpu.matmul %143, %144, %cst_86 {dimension_numbers = #tpu.dot_dimension_numbers<[1], [0], [0], [1], [0, 0, 1, 1], [], []>} : vector<16x16xbf16>, vector<16x8xbf16>, vector<16x8xf32> -> vector<16x8xf32>
    %146 = arith.addf %142, %145 : vector<16x8xf32>
    %c3_87 = arith.constant 3 : index
    %c0_88 = arith.constant 0 : index
    %c0_89 = arith.constant 0 : index
    %147 = vector.load %arg12[%c3_87, %c0_88, %c0_89] : memref<4x16x8xf32, #tpu.memory_space<vmem>>, vector<1x16x8xf32>
    %148 = vector.shape_cast %147 : vector<1x16x8xf32> to vector<16x8xf32>
    %149 = vector.shape_cast %146 : vector<16x8xf32> to vector<1x16x8xf32>
    tpu.vector_store %arg12[%c3_87, %c0_88, %c0_89], %149 {strides = array<i32>} : memref<4x16x8xf32, #tpu.memory_space<vmem>>, vector<1x16x8xf32>,
    %c3_90 = arith.constant 3 : index
    %c0_91 = arith.constant 0 : index
    %c0_92 = arith.constant 0 : index
    %150 = vector.load %arg10[%c3_90, %c0_91, %c0_92] : memref<4x16x1xf32, #tpu.memory_space<vmem>>, vector<1x16x1xf32>
    %151 = vector.shape_cast %150 : vector<1x16x1xf32> to vector<16x1xf32>
    %152 = vector.shape_cast %124 : vector<16x1xf32> to vector<1x16x1xf32>
    tpu.vector_store %arg10[%c3_90, %c0_91, %c0_92], %152 {strides = array<i32>} : memref<4x16x1xf32, #tpu.memory_space<vmem>>, vector<1x16x1xf32>,
    %c1_i32 = arith.constant 1 : i32
    %153 = arith.cmpi eq, %arg2, %c1_i32 : i32
    %154 = arith.extui %153 : i1 to i32
    %c0_i32_93 = arith.constant 0 : i32
    %155 = arith.cmpi ne, %154, %c0_i32_93 : i32
    scf.if %155 {
      %c0_94 = arith.constant 0 : index
      %c0_95 = arith.constant 0 : index
      %c0_96 = arith.constant 0 : index
      %156 = vector.load %arg12[%c0_94, %c0_95, %c0_96] : memref<4x16x8xf32, #tpu.memory_space<vmem>>, vector<1x16x8xf32>
      %157 = vector.shape_cast %156 : vector<1x16x8xf32> to vector<16x8xf32>
      %c0_97 = arith.constant 0 : index
      %c0_98 = arith.constant 0 : index
      %c0_99 = arith.constant 0 : index
      %158 = vector.load %arg11[%c0_97, %c0_98, %c0_99] : memref<4x16x1xf32, #tpu.memory_space<vmem>>, vector<1x16x1xf32>
      %159 = vector.shape_cast %158 : vector<1x16x1xf32> to vector<16x1xf32>
      %160 = vector.broadcast %159 : vector<16x1xf32> to vector<16x8xf32>
      %161 = arith.divf %157, %160 : vector<16x8xf32>
      %c1_100 = arith.constant 1 : index
      %c0_101 = arith.constant 0 : index
      %c0_102 = arith.constant 0 : index
      %162 = vector.load %arg12[%c1_100, %c0_101, %c0_102] : memref<4x16x8xf32, #tpu.memory_space<vmem>>, vector<1x16x8xf32>
      %163 = vector.shape_cast %162 : vector<1x16x8xf32> to vector<16x8xf32>
      %c1_103 = arith.constant 1 : index
      %c0_104 = arith.constant 0 : index
      %c0_105 = arith.constant 0 : index
      %164 = vector.load %arg11[%c1_103, %c0_104, %c0_105] : memref<4x16x1xf32, #tpu.memory_space<vmem>>, vector<1x16x1xf32>
      %165 = vector.shape_cast %164 : vector<1x16x1xf32> to vector<16x1xf32>
      %166 = vector.broadcast %165 : vector<16x1xf32> to vector<16x8xf32>
      %167 = arith.divf %163, %166 : vector<16x8xf32>
      %c2_106 = arith.constant 2 : index
      %c0_107 = arith.constant 0 : index
      %c0_108 = arith.constant 0 : index
      %168 = vector.load %arg12[%c2_106, %c0_107, %c0_108] : memref<4x16x8xf32, #tpu.memory_space<vmem>>, vector<1x16x8xf32>
      %169 = vector.shape_cast %168 : vector<1x16x8xf32> to vector<16x8xf32>
      %c2_109 = arith.constant 2 : index
      %c0_110 = arith.constant 0 : index
      %c0_111 = arith.constant 0 : index
      %170 = vector.load %arg11[%c2_109, %c0_110, %c0_111] : memref<4x16x1xf32, #tpu.memory_space<vmem>>, vector<1x16x1xf32>
      %171 = vector.shape_cast %170 : vector<1x16x1xf32> to vector<16x1xf32>
      %172 = vector.broadcast %171 : vector<16x1xf32> to vector<16x8xf32>
      %173 = arith.divf %169, %172 : vector<16x8xf32>
      %c3_112 = arith.constant 3 : index
      %c0_113 = arith.constant 0 : index
      %c0_114 = arith.constant 0 : index
      %174 = vector.load %arg12[%c3_112, %c0_113, %c0_114] : memref<4x16x8xf32, #tpu.memory_space<vmem>>, vector<1x16x8xf32>
      %175 = vector.shape_cast %174 : vector<1x16x8xf32> to vector<16x8xf32>
      %c3_115 = arith.constant 3 : index
      %c0_116 = arith.constant 0 : index
      %c0_117 = arith.constant 0 : index
      %176 = vector.load %arg11[%c3_115, %c0_116, %c0_117] : memref<4x16x1xf32, #tpu.memory_space<vmem>>, vector<1x16x1xf32>
      %177 = vector.shape_cast %176 : vector<1x16x1xf32> to vector<16x1xf32>
      %178 = vector.broadcast %177 : vector<16x1xf32> to vector<16x8xf32>
      %179 = arith.divf %175, %178 : vector<16x8xf32>
      %180 = tpu.concatenate %161, %167, %173, %179 in 1 : vector<16x8xf32>, vector<16x8xf32>, vector<16x8xf32>, vector<16x8xf32> -> vector<16x32xf32>
      %181 = arith.truncf %180 : vector<16x32xf32> to vector<16x32xbf16>
      %c0_118 = arith.constant 0 : index
      %c0_119 = arith.constant 0 : index
      %182 = vector.load %arg7[%c0_118, %c0_119] : memref<32x32xbf16, #tpu.memory_space<vmem>>, vector<32x32xbf16>
      %cst_120 = arith.constant dense<0.000000e+00> : vector<16x32xf32>
      %183 = tpu.matmul %181, %182, %cst_120 {dimension_numbers = #tpu.dot_dimension_numbers<[1], [0], [0], [1], [0, 0, 1, 1], [], []>} : vector<16x32xbf16>, vector<32x32xbf16>, vector<16x32xf32> -> vector<16x32xf32>
      %c0_121 = arith.constant 0 : index
      %c0_122 = arith.constant 0 : index
      %184 = vector.load %arg8[%c0_121, %c0_122] : memref<1x32xf32, #tpu.memory_space<vmem>>, vector<1x32xf32>
      %185 = vector.broadcast %184 : vector<1x32xf32> to vector<16x32xf32>
      %186 = arith.addf %183, %185 : vector<16x32xf32>
      %c0_123 = arith.constant 0 : index
      %c0_124 = arith.constant 0 : index
      %c0_125 = arith.constant 0 : index
      %187 = vector.load %arg6[%c0_123, %c0_124, %c0_125] : memref<1x16x32xf32, #tpu.memory_space<vmem>>, vector<1x16x32xf32>
      %188 = vector.shape_cast %187 : vector<1x16x32xf32> to vector<16x32xf32>
      %189 = arith.addf %188, %186 : vector<16x32xf32>
      %c0_126 = arith.constant 0 : index
      %c0_127 = arith.constant 0 : index
      %c0_128 = arith.constant 0 : index
      %190 = vector.load %arg9[%c0_126, %c0_127, %c0_128] : memref<1x16x32xf32, #tpu.memory_space<vmem>>, vector<1x16x32xf32>
      %191 = vector.shape_cast %190 : vector<1x16x32xf32> to vector<16x32xf32>
      %192 = vector.shape_cast %189 : vector<16x32xf32> to vector<1x16x32xf32>
      tpu.vector_store %arg9[%c0_126, %c0_127, %c0_128], %192 {strides = array<i32>} : memref<1x16x32xf32, #tpu.memory_space<vmem>>, vector<1x16x32xf32>,
    } else {
    }
    return
  }
  func.func @transform_0(%arg0: i32, %arg1: i32, %arg2: i32) -> (i32, i32, i32) {
    %c0_i32 = arith.constant 0 : i32
    %c0_i32_0 = arith.constant 0 : i32
    return %arg0, %arg1, %c0_i32 : i32, i32, i32
  }
  func.func @transform_1(%arg0: i32, %arg1: i32, %arg2: i32) -> (i32, i32, i32) {
    %c0_i32 = arith.constant 0 : i32
    %c0_i32_0 = arith.constant 0 : i32
    return %arg0, %arg2, %c0_i32 : i32, i32, i32
  }
  func.func @transform_2(%arg0: i32, %arg1: i32, %arg2: i32) -> (i32, i32, i32) {
    %c0_i32 = arith.constant 0 : i32
    %c0_i32_0 = arith.constant 0 : i32
    return %arg0, %arg2, %c0_i32 : i32, i32, i32
  }
  func.func @transform_3(%arg0: i32, %arg1: i32, %arg2: i32) -> (i32, i32, i32) {
    %c0_i32 = arith.constant 0 : i32
    %c0_i32_0 = arith.constant 0 : i32
    return %arg0, %arg1, %c0_i32 : i32, i32, i32
  }
  func.func @transform_4(%arg0: i32, %arg1: i32, %arg2: i32) -> (i32, i32) {
    %c0_i32 = arith.constant 0 : i32
    %c0_i32_0 = arith.constant 0 : i32
    %c0_i32_1 = arith.constant 0 : i32
    return %c0_i32, %c0_i32_0 : i32, i32
  }
  func.func @transform_5(%arg0: i32, %arg1: i32, %arg2: i32) -> (i32, i32) {
    %c0_i32 = arith.constant 0 : i32
    %c0_i32_0 = arith.constant 0 : i32
    %c0_i32_1 = arith.constant 0 : i32
    return %c0_i32, %c0_i32_0 : i32, i32
  }
  func.func @transform_6(%arg0: i32, %arg1: i32, %arg2: i32) -> (i32, i32, i32) {
    %c0_i32 = arith.constant 0 : i32
    %c0_i32_0 = arith.constant 0 : i32
    return %arg0, %arg1, %c0_i32 : i32, i32, i32
  }
}

</mosaic_0001>

<bundles_post_ra>
// kernel: _lambda_.8
= control target key start
LH: loop header
LB: loop body
LE: loop exit
PB: predicated region body
PF: predicated region fallthrough
CT: control target
= control target key end

     0   :  { %vm25_vm0 = vcmask 261120   ;;  %v181_v15 = vmov 0.0   ;;  %vm182_vm1 = vmmov 0   ;;  %vm145_vm2 = vcmask 257024   ;;  %s245_s0 = inlined_call_operand.vmem [shape: f32[16,32], index: 0, kind: input, shape index: {}]   ;;  %s246_s3 = inlined_call_operand.vmem [shape: bf16[32,32], index: 3, kind: input, shape index: {}]   ;;  %s247_s1 = inlined_call_operand.vmem [shape: f32[1,32], index: 1, kind: input, shape index: {}]   ;;  %s248_s2 = inlined_call_operand.vmem [shape: f32[1,32], index: 2, kind: input, shape index: {}, may-alias: {2,4}]   ;;  %s249_s4 = inlined_call_operand.vmem [shape: f32[1,32], index: 4, kind: input, shape index: {}, may-alias: {2,4}]   ;;  %s250_s5 = inlined_call_operand.vmem [shape: bf16[16,32], index: 5, kind: output, shape index: {}]  }
   0x1   :  { %v21_v0 = vld [vmem:[%s245_s0] sm:$0xff]  ;;  %v22_v1 = vld [vmem:[%s245_s0 + $0x8] sm:$0xff]  ;;  %165 = vmatprep.subr.bf16.mxu0 %v181_v15  ;;  %169 = vmatprep.mubr.msk.bf16.mxu0 %vm182_vm1, %v181_v15 }
   0x2   :  { %v26_v2 = vsel %vm25_vm0, %v21_v0, 0.0  ;;  %v29_v3 = vsel %vm25_vm0, %v22_v1, 0.0  ;;  %v175_v14 = vld [vmem:[%s246_s3] sm:$0xff]   ;;  %v176_v16 = vld [vmem:[%s246_s3 + $0x8] sm:$0xff]  }
   0x3   :  { %27 = vadd.xlane.f32.xlu0 %v26_v2  ;;  %166 = vmatpush3.bf16.msra.mxu0 %v175_v14  ;;  %v152_v25 = vld [vmem:[%s247_s1] ss:$0 sm:$0xff] }
   0x4   :  { %167 = vmatprep.subr.bf16.mxu0 %v181_v15  ;;  %v153_v29 = vld [vmem:[%s248_s2] ss:$0 sm:$0xff] }
   0x5   :  { %v154_v34 = vld [vmem:[%s249_s4] ss:$0 sm:$0xff] }
   0x7   :  { %30 = vadd.xlane.f32.xlu0 %v29_v3  ;;  %168 = vmatpush3.bf16.msra.mxu0 %v176_v16 }
  0x90   :  { %v28_v4 = vpop.xlane.xlu0 %27 }
  0x91   :  { %v33_v5 = vmul.f32 0.03125, %v28_v4 }
  0x93   :  { %v35_v6 = vsub.f32 %v21_v0, %v33_v5 }
  0x94   :  { %v31_v7 = vpop.xlane.xlu0 %30 }
  0x95   :  { %v34_v8 = vmul.f32 0.03125, %v31_v7  ;;  %v37_v9 = vmul.f32 %v35_v6, %v35_v6 }
  0x97   :  { %v36_v10 = vsub.f32 %v22_v1, %v34_v8  ;;  %v39_v11 = vsel %vm25_vm0, %v37_v9, 0.0 }
  0x98   :  { %40 = vadd.xlane.f32.xlu1 %v39_v11 }
  0x99   :  { %v38_v12 = vmul.f32 %v36_v10, %v36_v10 }
  0x9b   :  { %v42_v13 = vsel %vm25_vm0, %v38_v12, 0.0 }
  0x9c   :  { %43 = vadd.xlane.f32.xlu1 %v42_v13 }
 0x125   :  { %v41_v17 = vpop.xlane.xlu1 %40 }
 0x126   :  { %v45_v18 = vmul.f32 0.03125, %v41_v17 }
 0x128   :  { %v47_v19 = vadd.f32 1e-05, %v45_v18 }
 0x129   :  { %v44_v20 = vpop.xlane.xlu1 %43 }
 0x12a   :  { %177 = vrsqrt.f32 %v47_v19  ;;  %v46_v21 = vmul.f32 0.03125, %v44_v20 }
 0x12c   :  { %v48_v22 = vadd.f32 1e-05, %v46_v21 }
 0x12e   :  { %179 = vrsqrt.f32 %v48_v22 }
 0x134   :  { %v178_v23 = vpop.eup %177 }
 0x135   :  { %v51_v24 = vmul.f32 %v178_v23, %v35_v6 }
 0x137   :  { %v59_v28 = vmul.f32 %v152_v25, %v51_v24 }
 0x138   :  { %v180_v26 = vpop.eup %179 }
 0x139   :  { %v52_v27 = vmul.f32 %v180_v26, %v36_v10  ;;  %v67_v31 = vadd.f32 %v153_v29, %v59_v28 }
 0x13b   :  { %v60_v30 = vmul.f32 %v152_v25, %v52_v27 }
 0x13d   :  { %v68_v32 = vadd.f32 %v153_v29, %v60_v30 }
 0x13f   :  { %v69_v33 = vpack.c.bf16 %v68_v32, %v67_v31 }
 0x141   :  { %170 = vmatmul.mubr.msk.bf16.vlgmr.msra.gmra.mrb[0].mxu0 %vm25_vm0, %v69_v33 }
 0x214   :  { %v130_v35 = vpop.f32.mrb[0].mxu0 }
 0x215   :  { %v131_v36 = vadd.f32 %v154_v34, %v130_v35  ;;  %v171_v37 = vpop.f32.mrb[1].mxu0 }
 0x216   :  { %v133_v38 = vpop.f32.mrb[2].mxu0 }
 0x217   :  { %v160_v39 = vpack.c.bf16 %v131_v36, %v131_v36  ;;  %v134_v40 = vadd.f32 %v154_v34, %v133_v38  ;;  %v172_v41 = vpop.f32.mrb[3].mxu0 }
 0x219   :  { %146 = vst.msk [vmem:[%s250_s5] sm:$0xf] %vm145_vm2, %v160_v39  ;;  %v161_v42 = vpack.c.bf16 %v134_v40, %v134_v40 }
 0x21b   :  { %147 = vst.msk [vmem:[%s250_s5 + $0x4] sm:$0xf] %vm145_vm2, %v161_v42 }

// kernel: _lambda_.6
= control target key start
LH: loop header
LB: loop body
LE: loop exit
PB: predicated region body
PF: predicated region fallthrough
CT: control target
= control target key end

     0   :  { %vm34_vm0 = vcmask 261120   ;;  %v302_v15 = vmov 0.0   ;;  %vm303_vm1 = vmmov 0   ;;  %vm218_vm2 = vcmask 257024   ;;  %s304_s26 = smov 96   ;;  %s415_s0 = inlined_call_operand.vmem [shape: f32[16,32], index: 0, kind: input, shape index: {}]   ;;  %s416_s3 = inlined_call_operand.vmem [shape: bf16[32,64], index: 3, kind: input, shape index: {}]   ;;  %s417_s5 = inlined_call_operand.vmem [shape: bf16[32,32], index: 5, kind: input, shape index: {}]   ;;  %s418_s1 = inlined_call_operand.vmem [shape: f32[1,32], index: 1, kind: input, shape index: {}]   ;;  %s419_s2 = inlined_call_operand.vmem [shape: f32[1,32], index: 2, kind: input, shape index: {}, may-alias: {2,6}]   ;;  %s420_s4 = inlined_call_operand.vmem [shape: f32[1,64], index: 4, kind: input, shape index: {}]   ;;  %s421_s6 = inlined_call_operand.vmem [shape: f32[1,32], index: 6, kind: input, shape index: {}, may-alias: {2,6}]   ;;  %s422_s7 = inlined_call_operand.vmem [shape: bf16[16,32], index: 7, kind: output, shape index: {0}]   ;;  %s423_s9 = inlined_call_operand.vmem [shape: bf16[16,32], index: 9, kind: output, shape index: {2}]   ;;  %s424_s8 = inlined_call_operand.vmem [shape: bf16[16,32], index: 8, kind: output, shape index: {1}]  }
   0x1   :  { %v30_v0 = vld [vmem:[%s415_s0] sm:$0xff]  ;;  %v31_v1 = vld [vmem:[%s415_s0 + $0x8] sm:$0xff]  ;;  %275 = vmatprep.subr.bf16.mxu0 %v302_v15  ;;  %283 = vmatprep.subr.bf16.mxu1 %v302_v15 }
   0x2   :  { %v35_v2 = vsel %vm34_vm0, %v30_v0, 0.0  ;;  %v38_v3 = vsel %vm34_vm0, %v31_v1, 0.0  ;;  %v294_v14 = vld [vmem:[%s416_s3] sm:$0xff]   ;;  %v296_v17 = vld [vmem:[%s416_s3 + $0x8] sm:$0xff]   ;;  %279 = vmatprep.mubr.msk.bf16.mxu0 %vm303_vm1, %v302_v15  ;;  %287 = vmatprep.mubr.msk.bf16.mxu1 %vm303_vm1, %v302_v15 }
   0x3   :  { %36 = vadd.xlane.f32.xlu0 %v35_v2  ;;  %v295_v16 = vld [vmem:[%s417_s5] sm:$0xff]   ;;  %276 = vmatpush3.bf16.msra.mxu0 %v294_v14  ;;  %v297_v18 = vld [vmem:[%s417_s5 + $0x8] sm:$0xff]  }
   0x4   :  { %284 = vmatpush3.bf16.msra.mxu1 %v295_v16  ;;  %277 = vmatprep.subr.bf16.mxu0 %v302_v15  ;;  %v251_v27 = vld [vmem:[%s418_s1] ss:$0 sm:$0xff] }
   0x5   :  { %285 = vmatprep.subr.bf16.mxu1 %v302_v15  ;;  %v252_v31 = vld [vmem:[%s419_s2] ss:$0 sm:$0xff] }
   0x6   :  { %v253_v36 = vld [vmem:[%s420_s4] ss:$0 sm:$0xff] }
   0x7   :  { %39 = vadd.xlane.f32.xlu0 %v38_v3  ;;  %278 = vmatpush3.bf16.msra.mxu0 %v296_v17  ;;  %v257_v37 = vld [vmem:[%s421_s6] ss:$0 sm:$0xff] }
   0x8   :  { %286 = vmatpush3.bf16.msra.mxu1 %v297_v18 }
  0x90   :  { %v37_v4 = vpop.xlane.xlu0 %36 }
  0x91   :  { %v42_v5 = vmul.f32 0.03125, %v37_v4 }
  0x93   :  { %v44_v6 = vsub.f32 %v30_v0, %v42_v5 }
  0x94   :  { %v40_v7 = vpop.xlane.xlu0 %39 }
  0x95   :  { %v43_v8 = vmul.f32 0.03125, %v40_v7  ;;  %v46_v9 = vmul.f32 %v44_v6, %v44_v6 }
  0x97   :  { %v45_v10 = vsub.f32 %v31_v1, %v43_v8  ;;  %v48_v11 = vsel %vm34_vm0, %v46_v9, 0.0 }
  0x98   :  { %49 = vadd.xlane.f32.xlu1 %v48_v11 }
  0x99   :  { %v47_v12 = vmul.f32 %v45_v10, %v45_v10 }
  0x9b   :  { %v51_v13 = vsel %vm34_vm0, %v47_v12, 0.0 }
  0x9c   :  { %52 = vadd.xlane.f32.xlu1 %v51_v13 }
 0x125   :  { %v50_v19 = vpop.xlane.xlu1 %49 }
 0x126   :  { %v54_v20 = vmul.f32 0.03125, %v50_v19 }
 0x128   :  { %v56_v21 = vadd.f32 1e-05, %v54_v20 }
 0x129   :  { %v53_v22 = vpop.xlane.xlu1 %52 }
 0x12a   :  { %298 = vrsqrt.f32 %v56_v21  ;;  %v55_v23 = vmul.f32 0.03125, %v53_v22 }
 0x12c   :  { %v57_v24 = vadd.f32 1e-05, %v55_v23 }
 0x12e   :  { %300 = vrsqrt.f32 %v57_v24 }
 0x134   :  { %v299_v25 = vpop.eup %298 }
 0x135   :  { %v60_v26 = vmul.f32 %v299_v25, %v44_v6 }
 0x137   :  { %v68_v30 = vmul.f32 %v251_v27, %v60_v26 }
 0x138   :  { %v301_v28 = vpop.eup %300 }
 0x139   :  { %v61_v29 = vmul.f32 %v301_v28, %v45_v10  ;;  %v76_v33 = vadd.f32 %v252_v31, %v68_v30 }
 0x13b   :  { %v69_v32 = vmul.f32 %v251_v27, %v61_v29 }
 0x13d   :  { %v77_v34 = vadd.f32 %v252_v31, %v69_v32 }
 0x13f   :  { %v78_v35 = vpack.c.bf16 %v77_v34, %v76_v33 }
 0x141   :  { %280 = vmatmul.mubr.msk.bf16.vlgmr.msra.gmra.mrb[0].mxu0 %vm34_vm0, %v78_v35  ;;  %288 = vmatmul.mubr.msk.bf16.vlgmr.msra.gmra.mrb[0].mxu1 %vm34_vm0, %v78_v35 }
 0x214   :  { %v139_v38 = vpop.f32.mrb[0].mxu0  ;;  %v203_v39 = vpop.f32.mrb[0].mxu1 }
 0x215   :  { %v140_v40 = vadd.f32 %v253_v36, %v139_v38  ;;  %v204_v41 = vadd.f32 %v257_v37, %v203_v39  ;;  %v281_v42 = vpop.f32.mrb[1].mxu0  ;;  %v289_v43 = vpop.f32.mrb[1].mxu1 }
 0x216   :  { %v142_v44 = vpop.f32.mrb[2].mxu0  ;;  %v206_v45 = vpop.f32.mrb[2].mxu1 }
 0x217   :  { %v265_v46 = vpack.c.bf16 %v140_v40, %v140_v40  ;;  %v267_v47 = vpack.c.bf16 %v204_v41, %v204_v41  ;;  %v143_v48 = vadd.f32 %v253_v36, %v142_v44  ;;  %v207_v49 = vadd.f32 %v257_v37, %v206_v45  ;;  %v282_v50 = vpop.f32.mrb[3].mxu0  ;;  %v290_v51 = vpop.f32.mrb[3].mxu1 }
 0x219   :  { %219 = vst.msk [vmem:[%s422_s7] sm:$0xf] %vm218_vm2, %v265_v46  ;;  %237 = vst.msk [vmem:[%s423_s9] sm:$0xf] %vm218_vm2, %v267_v47  ;;  %v266_v52 = vpack.c.bf16 %v143_v48, %v143_v48  ;;  %v268_v53 = vpack.c.bf16 %v207_v49, %v207_v49  ;;  %221 = vrot.lane.b32.xlu0 %v265_v46, %s304_s26 }
 0x21b   :  { %220 = vst.msk [vmem:[%s422_s7 + $0x4] sm:$0xf] %vm218_vm2, %v266_v52  ;;  %238 = vst.msk [vmem:[%s423_s9 + $0x4] sm:$0xf] %vm218_vm2, %v268_v53  ;;  %223 = vrot.lane.b32.xlu1 %v266_v52, %s304_s26 }
 0x28b   :  { %v222_v54 = vpop.permute.xlu0 %221 }
 0x28c   :  { %227 = vst.msk [vmem:[%s424_s8] sm:$0xf] %vm218_vm2, %v222_v54 }
 0x28d   :  { %v224_v55 = vpop.permute.xlu1 %223 }
 0x28e   :  { %228 = vst.msk [vmem:[%s424_s8 + $0x4] sm:$0xf] %vm218_vm2, %v224_v55 }

// kernel: _lambda_.9
= control target key start
LH: loop header
LB: loop body
LE: loop exit
PB: predicated region body
PF: predicated region fallthrough
CT: control target
= control target key end

     0   :  { %s702_s24 = smov 0   ;;  %s751_s0 = inlined_call_operand.vmem [shape: f32[64,32], index: 0, kind: input, shape index: {}]   ;;  %s752_s1 = inlined_call_operand.vmem [shape: f32[64,32], index: 1, kind: input, shape index: {}]   ;;  %s753_s2 = inlined_call_operand.vmem [shape: bf16[32,32], index: 2, kind: input, shape index: {}]   ;;  %s754_s3 = inlined_call_operand.vmem [shape: f32[1,32], index: 3, kind: input, shape index: {}, may-alias: {3,5}]   ;;  %s755_s4 = inlined_call_operand.vmem [shape: bf16[32,32], index: 4, kind: input, shape index: {}]   ;;  %s756_s5 = inlined_call_operand.vmem [shape: f32[1,32], index: 5, kind: input, shape index: {}, may-alias: {3,5}]   ;;  %s757_s6 = inlined_call_operand.vmem [shape: bf16[64,32], index: 6, kind: output, shape index: {0}]   ;;  %s758_s7 = inlined_call_operand.vmem [shape: bf16[64,32], index: 7, kind: output, shape index: {1}]  }
   0x1 LB: > { %s585_s25 = sadd.s32 4294967295, %s658_s24   ;;  %p589_p0 = scmp.ge.s32.totalorder %s658_s24, 1  ;;  %s658_s24 = sphi %s702_s24, %s18_s24  }
   0x2   : > { %p252_p1 = scmp.lt.s32.totalorder %s658_s24, 5 }
   0x4   : > { %p253_p2 = pnand %p589_p0, %p252_p1 }
   0x5   : > { %v648_v0 = vld [vmem:[%s755_s4] sm:$0xff] (!%p253_p2)   ;;  %v660_v1 = vmov (!%p253_p2), 0.0   ;;  %v650_v3 = vld [vmem:[%s755_s4 + $0x8] sm:$0xff] (!%p253_p2)   ;;  %vm661_vm0 = vmmov (!%p253_p2), 0   ;;  %s590_s9 = sshll.u32 (!%p253_p2), %s585_s25, 1  ;;  %vm350_vm1 = vcmask (!%p253_p2), 261120  }
   0x6   : > { %256 = sbr.rel (%p253_p2) target bundleno = 241 (0xf1), region = 44  ;;  %630 = vmatprep.subr.bf16.mxu1 (!%p253_p2), %v660_v1  ;;  %622 = vmatprep.subr.bf16.mxu0 (!%p253_p2), %v660_v1  ;;  %v649_v2 = vld [vmem:[%s753_s2] sm:$0xff] (!%p253_p2)   ;;  %v651_v4 = vld [vmem:[%s753_s2 + $0x8] sm:$0xff] (!%p253_p2)   ;;  %p295_p3 = scmp.lt.s32.totalorder (!%p253_p2), %s590_s9, 7  ;;  %vm470_vm2 = vcmask (!%p253_p2), 257024  }
   0x7   : > { %631 = vmatpush3.bf16.msra.mxu1 (!%p253_p2), %v648_v0  ;;  %634 = vmatprep.mubr.msk.bf16.mxu1 (!%p253_p2), %vm661_vm0, %v660_v1  ;;  %v602_v13 = vld [vmem:[%s756_s5] ss:$0 sm:$0xff] (!%p253_p2) }
   0x8   : > { %623 = vmatpush3.bf16.msra.mxu0 (!%p253_p2), %v649_v2  ;;  %632 = vmatprep.subr.bf16.mxu1 (!%p253_p2), %v660_v1  ;;  %v598_v17 = vld [vmem:[%s754_s3] ss:$0 sm:$0xff] (!%p253_p2) }
   0x9   : > { %624 = vmatprep.subr.bf16.mxu0 (!%p253_p2), %v660_v1  ;;  %626 = vmatprep.mubr.msk.bf16.mxu0 (!%p253_p2), %vm661_vm0, %v660_v1 }
   0xb   : > { %633 = vmatpush3.bf16.msra.mxu1 (!%p253_p2), %v650_v3 }
   0xc   : > { %625 = vmatpush3.bf16.msra.mxu0 (!%p253_p2), %v651_v4 }
   0xd   : > { %s760_s9 = smov (!%p295_p3, %s590_s9), 7 }
   0xe   : > { %s591_s12 = sshll.u32 %s760_s9, 3  ;;  %s595_s21 = sshll.u32 %s760_s9, 2 }
   0xf   : > { %s298_s15 = scalar_lea.vmem %s751_s0, %s591_s12  ;;  %s304_s18 = scalar_lea.vmem %s752_s1, %s591_s12 }
  0x10   : > { %v319_v5 = vld [vmem:[%s298_s15] sm:$0xff]  ;;  %v320_v6 = vld [vmem:[%s298_s15 + $0x8] sm:$0xff]  ;;  %s316_s27 = scalar_lea.vmem %s758_s7, %s595_s21  ;;  %s310_s30 = scalar_lea.vmem %s757_s6, %s595_s21 }
  0x11   : > { %v321_v7 = vld [vmem:[%s304_s18] sm:$0xff]  ;;  %v326_v8 = vpack.c.bf16 %v320_v6, %v319_v5  ;;  %v322_v9 = vld [vmem:[%s304_s18 + $0x8] sm:$0xff] }
  0x12   : > { %v323_v10 = vadd.f32 %v321_v7, %v319_v5  ;;  %v324_v11 = vadd.f32 %v322_v9, %v320_v6 }
  0x13   : > { %635 = vmatmul.mubr.msk.bf16.vlgmr.msra.gmra.mrb[0].mxu1 %vm350_vm1, %v326_v8 }
  0x14   : > { %v325_v12 = vpack.c.bf16 %v324_v11, %v323_v10 }
  0x16   : > { %627 = vmatmul.mubr.msk.bf16.vlgmr.msra.gmra.mrb[0].mxu0 %vm350_vm1, %v325_v12 }
  0xe6   : > { %v455_v14 = vpop.f32.mrb[0].mxu1 }
  0xe7   : > { %v456_v15 = vadd.f32 %v602_v13, %v455_v14  ;;  %v636_v16 = vpop.f32.mrb[1].mxu1 }
  0xe8   : > { %v458_v18 = vpop.f32.mrb[2].mxu1 }
  0xe9   : > { %v614_v19 = vpack.c.bf16 %v456_v15, %v456_v15  ;;  %v388_v20 = vpop.f32.mrb[0].mxu0  ;;  %v459_v21 = vadd.f32 %v602_v13, %v458_v18  ;;  %v637_v22 = vpop.f32.mrb[3].mxu1 }
  0xea   : > { %v389_v23 = vadd.f32 %v598_v17, %v388_v20  ;;  %v628_v24 = vpop.f32.mrb[1].mxu0 }
  0xeb   : > { %481 = vst.msk [vmem:[%s316_s27] sm:$0xf] %vm470_vm2, %v614_v19  ;;  %v615_v25 = vpack.c.bf16 %v459_v21, %v459_v21  ;;  %v391_v26 = vpop.f32.mrb[2].mxu0 }
  0xec   : > { %v612_v27 = vpack.c.bf16 %v389_v23, %v389_v23  ;;  %v392_v28 = vadd.f32 %v598_v17, %v391_v26  ;;  %v629_v29 = vpop.f32.mrb[3].mxu0 }
  0xed   : > { %482 = vst.msk [vmem:[%s316_s27 + $0x4] sm:$0xf] %vm470_vm2, %v615_v25 }
  0xee   : > { %471 = vst.msk [vmem:[%s310_s30] sm:$0xf] %vm470_vm2, %v612_v27  ;;  %v613_v30 = vpack.c.bf16 %v392_v28, %v392_v28 }
  0xf0   : > { %472 = vst.msk [vmem:[%s310_s30 + $0x4] sm:$0xf] %vm470_vm2, %v613_v30 }
  0xf1 PF: > { %s18_s24 = sadd.s32 1, %s658_s24  }
  0xf2   : > { %p15_p4 = scmp.ge.s32.totalorder %s18_s24, 6  }
  0xf4   :  { %17 = sbr.rel (!%p15_p4) target bundleno = 1 (0x1), region = 89 }

// kernel: _lambda_.7
= control target key start
LH: loop header
LB: loop body
LE: loop exit
PB: predicated region body
PF: predicated region fallthrough
CT: control target
= control target key end

     0   :  { %s1748_s21 = smov 0   ;;  %s1750_s22 = smov 0   ;;  %s2110_s0 = inlined_call_operand.vmem [shape: bf16[2,16,32], index: 0, kind: input, shape index: {}]   ;;  %s2111_s1 = inlined_call_operand.vmem [shape: bf16[2,16,32], index: 1, kind: input, shape index: {}]   ;;  %s2112_s2 = inlined_call_operand.vmem [shape: bf16[2,16,32], index: 2, kind: input, shape index: {}]   ;;  %s2113_s3 = inlined_call_operand.vmem [shape: f32[2,16,32], index: 3, kind: input, shape index: {}]   ;;  %s2114_s4 = inlined_call_operand.vmem [shape: bf16[32,32], index: 4, kind: input, shape index: {}]   ;;  %s2115_s5 = inlined_call_operand.vmem [shape: f32[1,32], index: 5, kind: input, shape index: {}]   ;;  %s2116_s6 = inlined_call_operand.vmem [shape: f32[2,16,32], index: 6, kind: output, shape index: {}]  }
   0x1   :  { %s1752_s23 = smov 0  }
   0x2 LB: > { %s35_s24 = sadd.s32 1, %s1697_s22  ;;  %p1467_p0 = scmp.ge.s32.totalorder %s1701_s23, 1  ;;  %s1701_s23 = sphi %s1752_s23, %s16_s23   ;;  %s1697_s22 = sphi %s1750_s22, %s2118_s22   ;;  %s1693_s21 = sphi %s1748_s21, %s2117_s21  }
   0x3   : > { %p37_p1 = scmp.ge.s32.totalorder %s35_s24, 2  ;;  %p291_p2 = scmp.lt.s32.totalorder %s1701_s23, 3 }
   0x5   : > { %s2120_s24 = smov (%p37_p1, %s35_s24), 0  ;;  %p292_p3 = pnand %p1467_p0, %p291_p2 }
   0x6   : > { %p357_p4 = scmp.lt.s32.totalorder (!%p292_p3), %s1693_s21, 1  ;;  %vm428_vm0 = vcmask (!%p292_p3), 64512   ;;  %v1703_v0 = vmov (!%p292_p3), 0.0   ;;  %vm1704_vm1 = vmmov (!%p292_p3), 0   ;;  %vm411_vm2 = vcmask (!%p292_p3), 7168   ;;  %s1707_s8 = smov (!%p292_p3), 120  }
   0x7   : > { %295 = sbr.rel (%p292_p3) target bundleno = 1697 (0x6a1), region = 44  ;;  %1519 = vmatprep.subr.bf16.mxu0 (!%p292_p3), %v1703_v0  ;;  %429 = vst.msk [vmem:[#allocation4] sm:$0xff] (!%p292_p3), %vm428_vm0, %v1703_v0  ;;  %430 = vst.msk [vmem:[#allocation4 + $0x8] sm:$0xff] (!%p292_p3), %vm428_vm0, %v1703_v0  ;;  %1521 = vmatprep.mubr.msk.bf16.mxu0 (!%p292_p3), %vm1704_vm1, %v1703_v0  ;;  %v1705_v4 = vmov (!%p292_p3), -inf   ;;  %v443_v5 = vlaneseq (!%p292_p3)  ;;  %vm511_vm4 = vcmask (!%p292_p3), 130048   ;;  %v1706_v15 = vmov (!%p292_p3), 0  }
   0x8   : > { %431 = vst.msk [vmem:[#allocation4 + $0x10] sm:$0xff] (!%p292_p3), %vm428_vm0, %v1703_v0  ;;  %432 = vst.msk [vmem:[#allocation4 + $0x18] sm:$0xff] (!%p292_p3), %vm428_vm0, %v1703_v0  ;;  %1525 = vmatprep.subr.bf16.mxu1 (!%p292_p3), %v1703_v0  ;;  %1527 = vmatprep.mubr.msk.bf16.mxu1 (!%p292_p3), %vm1704_vm1, %v1703_v0  ;;  %s1708_s12 = smov (!%p292_p3), 112   ;;  %s1709_s13 = smov (!%p292_p3), 104   ;;  %vm1241_vm5 = vcmask (!%p292_p3), 195584   ;;  %vm1268_vm6 = vcmask (!%p292_p3), 261120  }
   0x9   : > { %433 = vst.msk [vmem:[#allocation4 + $0x20] sm:$0xff] (!%p292_p3), %vm428_vm0, %v1703_v0  ;;  %434 = vst.msk [vmem:[#allocation4 + $0x28] sm:$0xff] (!%p292_p3), %vm428_vm0, %v1703_v0  ;;  %v1834_v6 = vand.u32 (!%p292_p3), 127, %v443_v5  ;;  %1609 = vset.pattern.permute.xlu1 (!%p292_p3), %v1706_v15  ;;  %1610 = vset.pattern.permute.xlu0 (!%p292_p3), %v1706_v15  ;;  %s1710_s16 = smov (!%p292_p3), 8   ;;  %s1711_s19 = smov (!%p292_p3), 16  }
   0xa   : > { %435 = vst.msk [vmem:[#allocation4 + $0x30] sm:$0xff] (!%p292_p3), %vm428_vm0, %v1703_v0  ;;  %436 = vst.msk [vmem:[#allocation4 + $0x38] sm:$0xff] (!%p292_p3), %vm428_vm0, %v1703_v0  ;;  %s1712_s20 = smov (!%p292_p3), 24  }
   0xb   : > { %412 = vst.msk [vmem:[#allocation2] sm:$0xff] (!%p292_p3), %vm411_vm2, %v1705_v4  ;;  %413 = vst.msk [vmem:[#allocation2 + $0x8] sm:$0xff] (!%p292_p3), %vm411_vm2, %v1705_v4  ;;  %vm448_vm3 = vcmp.lt.s32.totalorder (!%p292_p3), %v1834_v6, 8 }
   0xc   : > { %414 = vst.msk [vmem:[#allocation2 + $0x10] sm:$0xff] (!%p292_p3), %vm411_vm2, %v1705_v4  ;;  %415 = vst.msk [vmem:[#allocation2 + $0x18] sm:$0xff] (!%p292_p3), %vm411_vm2, %v1705_v4 }
   0xd   : > { %416 = vst.msk [vmem:[#allocation2 + $0x20] sm:$0xff] (!%p292_p3), %vm411_vm2, %v1705_v4  ;;  %417 = vst.msk [vmem:[#allocation2 + $0x28] sm:$0xff] (!%p292_p3), %vm411_vm2, %v1705_v4 }
   0xe   : > { %s2122_s21 = smov (!%p357_p4, %s1693_s21), 1  ;;  %418 = vst.msk [vmem:[#allocation2 + $0x30] sm:$0xff] %vm411_vm2, %v1705_v4  ;;  %419 = vst.msk [vmem:[#allocation2 + $0x38] sm:$0xff] %vm411_vm2, %v1705_v4 }
   0xf   : > { %s1792_s25 = sshll.u32 %s2122_s21, 3  ;;  %420 = vst.msk [vmem:[#allocation3] sm:$0xff] %vm411_vm2, %v1703_v0  ;;  %421 = vst.msk [vmem:[#allocation3 + $0x8] sm:$0xff] %vm411_vm2, %v1703_v0 }
  0x10   : > { %s374_s28 = scalar_lea.vmem %s2111_s1, %s1792_s25  ;;  %s364_s7 = scalar_lea.vmem %s2110_s0, %s1792_s25  ;;  %422 = vst.msk [vmem:[#allocation3 + $0x10] sm:$0xff] %vm411_vm2, %v1703_v0  ;;  %423 = vst.msk [vmem:[#allocation3 + $0x18] sm:$0xff] %vm411_vm2, %v1703_v0 }
  0x11   : > { %v1798_v1 = vld [vmem:[%s374_s28] sm:$0xff]   ;;  %424 = vst.msk [vmem:[#allocation3 + $0x20] sm:$0xff] %vm411_vm2, %v1703_v0  ;;  %425 = vst.msk [vmem:[#allocation3 + $0x28] sm:$0xff] %vm411_vm2, %v1703_v0  ;;  %s384_s11 = scalar_lea.vmem %s2112_s2, %s1792_s25  ;;  %s1498_s25 = sshll.u32 %s2122_s21, 4 }
  0x12   : > { %v464_v2 = vsel %vm428_vm0, %v1798_v1, 0  ;;  %v1627_v3 = vld [vmem:[%s364_s7] sm:$0xff]   ;;  %426 = vst.msk [vmem:[#allocation3 + $0x30] sm:$0xff] %vm411_vm2, %v1703_v0  ;;  %427 = vst.msk [vmem:[#allocation3 + $0x38] sm:$0xff] %vm411_vm2, %v1703_v0  ;;  %v1850_v19 = vld [vmem:[#allocation2 + $0x8] sm:$0xff]  ;;  %s394_s28 = scalar_lea.vmem %s2113_s3, %s1498_s25  ;;  %s404_s9 = scalar_lea.vmem %s2116_s6, %s1498_s25 }
  0x13   : > { %1520 = vmatpush3.bf16.xpose.msra.mxu0 %v464_v2  ;;  %v1845_v16 = vld [vmem:[#allocation2] sm:$0xff] }
  0x14   : > { %1537 = vmatprep.subr.bf16.mxu0 %v1703_v0  ;;  %v1870_v24 = vld [vmem:[%s384_s11] sm:$0xff]  }
  0x15   : > { %1526 = vmatpush3.bf16.msra.mxu1 %v1870_v24 }
  0x16   : > { %1531 = vmatprep.subr.bf16.mxu1 %v1703_v0 }
  0x1a   : > { %1522 = vmatmul.mubr.msk.bf16.vlgmr.msra.gmra.mrb[0].mxu0 %vm428_vm0, %v1627_v3 }
  0x1b   : > { %1539 = vmatprep.mubr.msk.bf16.mxu0 %vm1704_vm1, %v1703_v0 }
  0xed   : > { %v500_v7 = vpop.f32.mrb[0].mxu0 }
  0xee   : > { %v507_v8 = vsel %vm448_vm3, %v500_v7, -inf  ;;  %v1523_v9 = vpop.f32.mrb[1].mxu0 }
  0xef   : > { %v503_v10 = vpop.f32.mrb[2].mxu0  ;;  %v512_v11 = vsel %vm511_vm4, %v507_v8, -inf  ;;  %v1944_v9 = vld [vmem:[#allocation2 + $0x10] sm:$0xff] }
  0xf0   : > { %v508_v12 = vsel %vm448_vm3, %v503_v10, -inf  ;;  %513 = vmax.xlane.f32.xlu0 %v512_v11  ;;  %v1524_v13 = vpop.f32.mrb[3].mxu0  ;;  %v1946_v11 = vld [vmem:[#allocation2 + $0x18] sm:$0xff] }
  0xf1   : > { %v515_v14 = vsel %vm511_vm4, %v508_v12, -inf }
  0xf4   : > { %516 = vmax.xlane.f32.xlu0 %v515_v14 }
 0x10a   : > { %630 = vrot.lane.b32.xlu0 %v1798_v1, %s1707_s8 }
 0x17d   : > { %v514_v17 = vpop.xlane.xlu0 %513 }
 0x17e   : > { %v1848_v18 = vmax.f32 %v1845_v16, %v514_v17  ;;  %v1964_v17 = vld [vmem:[#allocation2 + $0x20] sm:$0xff] }
 0x180   : > { %v520_v20 = vsub.f32 %v1845_v16, %v1848_v18  ;;  %626 = vst.msk [vmem:[#allocation2] sm:$0xff] %vm411_vm2, %v1848_v18  ;;  %528 = vperm.xlu1 %1609, %v1848_v18  }
 0x181   : > { %v517_v21 = vpop.xlane.xlu0 %516 }
 0x182   : > { %v1858_v22 = vmax.f32 %v1850_v19, %v517_v21 }
 0x184   : > { %v521_v23 = vsub.f32 %v1850_v19, %v1858_v22  ;;  %627 = vst.msk [vmem:[#allocation2 + $0x8] sm:$0xff] %vm411_vm2, %v1858_v22  ;;  %533 = vperm.xlu1 %1609, %v1858_v22  }
 0x185   : > { %v631_v32 = vpop.permute.xlu0 %630 }
 0x186   : > { %v636_v35 = vsel %vm428_vm0, %v631_v32, 0 }
 0x188   : > { %628 = vrot.lane.b32.xlu1 %v1627_v3, %s1707_s8 }
 0x18c   : > { %800 = vrot.lane.b32.xlu1 %v1798_v1, %s1708_s12 }
 0x190   : > { %798 = vrot.lane.b32.xlu1 %v1627_v3, %s1708_s12 }
 0x194   : > { %970 = vrot.lane.b32.xlu1 %v1798_v1, %s1709_s13 }
 0x198   : > { %968 = vrot.lane.b32.xlu1 %v1627_v3, %s1709_s13 }
 0x1ff   : > { %v529_v25 = vpop.permute.xlu1 %528 }
 0x200   : > { %v536_v26 = vsub.f32 %v507_v8, %v529_v25  ;;  %v1968_v25 = vld [vmem:[#allocation2 + $0x28] sm:$0xff] }
 0x202   : > { %v538_v27 = vmul.f32 1.442695, %v536_v26 }
 0x203   : > { %v534_v28 = vpop.permute.xlu1 %533 }
 0x204   : > { %v537_v29 = vsub.f32 %v508_v12, %v534_v28  ;;  %1631 = vpow2.f32 %v538_v27 }
 0x206   : > { %v540_v30 = vmul.f32 1.442695, %v537_v29 }
 0x207   : > { %v629_v31 = vpop.permute.xlu1 %628 }
 0x208   : > { %1633 = vpow2.f32 %v540_v30 }
 0x20b   : > { %v801_v37 = vpop.permute.xlu1 %800 }
 0x20c   : > { %v806_v39 = vsel %vm428_vm0, %v801_v37, 0 }
 0x20e   : > { %v1880_v33 = vpop.eup %1631 }
 0x20f   : > { %v799_v38 = vpop.permute.xlu1 %798 }
 0x212   : > { %v1882_v34 = vpop.eup %1633 }
 0x213   : > { %v571_v36 = vpack.c.bf16 %v1882_v34, %v1880_v33  ;;  %v971_v40 = vpop.permute.xlu1 %970 }
 0x214   : > { %v976_v41 = vsel %vm428_vm0, %v971_v40, 0 }
 0x215   : > { %1528 = vmatmul.mubr.msk.bf16.vlgmr.msra.gmra.mrb[0].mxu1 %vm511_vm4, %v571_v36 }
 0x216   : > { %1532 = vmatpush3.bf16.xpose.msra.mxu1 %v636_v35  ;;  %1533 = vmatprep.mubr.msk.bf16.mxu1 %vm1704_vm1, %v1703_v0  ;;  %v1988_v35 = vld [vmem:[#allocation2 + $0x38] sm:$0xff] }
 0x217   : > { %1543 = vmatprep.subr.bf16.mxu1 %v1703_v0  ;;  %v969_v42 = vpop.permute.xlu1 %968 }
 0x21d   : > { %1534 = vmatmul.mubr.msk.bf16.vlgmr.msra.gmra.mrb[4].mxu1 %vm428_vm0, %v629_v31  ;;  %v1985_v31 = vld [vmem:[#allocation2 + $0x30] sm:$0xff] }
 0x21e   : > { %1544 = vmatpush3.bf16.xpose.msra.mxu1 %v806_v39  ;;  %1545 = vmatprep.mubr.msk.bf16.mxu1 %vm1704_vm1, %v1703_v0 }
 0x21f   : > { %1555 = vmatprep.subr.bf16.mxu1 %v1703_v0 }
 0x225   : > { %1546 = vmatmul.mubr.msk.bf16.vlgmr.msra.gmra.mrb[8].mxu1 %vm428_vm0, %v799_v38 }
 0x226   : > { %1556 = vmatpush3.bf16.xpose.msra.mxu1 %v976_v41  ;;  %1557 = vmatprep.mubr.msk.bf16.mxu1 %vm1704_vm1, %v1703_v0 }
 0x227   : > { %1567 = vmatprep.subr.bf16.mxu1 %v1703_v0 }
 0x22d   : > { %1558 = vmatmul.mubr.msk.bf16.vlgmr.msra.gmra.mrb[12].mxu1 %vm428_vm0, %v969_v42 }
 0x22e   : > { %1571 = vmatprep.mubr.msk.bf16.mxu1 %vm1704_vm1, %v1703_v0 }
 0x2e8   : > { %v1904_v43 = vpop.f32.mrb[0].mxu1 }
 0x2e9   : > { %v1529_v44 = vpop.f32.mrb[1].mxu1 }
 0x2ea   : > { %v1906_v45 = vpop.f32.mrb[2].mxu1 }
 0x2eb   : > { %v1530_v46 = vpop.f32.mrb[3].mxu1 }
 0x2f0   : > { %v672_v47 = vpop.f32.mrb[4].mxu1 }
 0x2f1   : > { %v1910_v48 = vsel %vm448_vm3, %v672_v47, -inf  ;;  %v1535_v49 = vpop.f32.mrb[5].mxu1 }
 0x2f2   : > { %v675_v50 = vpop.f32.mrb[6].mxu1  ;;  %v684_v51 = vsel %vm511_vm4, %v1910_v48, -inf }
 0x2f3   : > { %v1916_v52 = vsel %vm448_vm3, %v675_v50, -inf  ;;  %685 = vmax.xlane.f32.xlu1 %v684_v51  ;;  %v1536_v53 = vpop.f32.mrb[7].mxu1 }
 0x2f4   : > { %v687_v54 = vsel %vm511_vm4, %v1916_v52, -inf }
 0x2f5   : > { %688 = vmax.xlane.f32.xlu0 %v687_v54 }
 0x2f8   : > { %v842_v55 = vpop.f32.mrb[8].mxu1 }
 0x2f9   : > { %v1922_v56 = vsel %vm448_vm3, %v842_v55, -inf  ;;  %v1547_v57 = vpop.f32.mrb[9].mxu1 }
 0x2fa   : > { %v845_v58 = vpop.f32.mrb[10].mxu1  ;;  %v854_v59 = vsel %vm511_vm4, %v1922_v56, -inf }
 0x2fb   : > { %v1928_v60 = vsel %vm448_vm3, %v845_v58, -inf  ;;  %855 = vmax.xlane.f32.xlu0 %v854_v59  ;;  %v1548_v61 = vpop.f32.mrb[11].mxu1 }
 0x2fc   : > { %v857_v62 = vsel %vm511_vm4, %v1928_v60, -inf }
 0x2fd   : > { %858 = vmax.xlane.f32.xlu1 %v857_v62 }
 0x300   : > { %v1012_v63 = vpop.f32.mrb[12].mxu1 }
 0x301   : > { %v1934_v1 = vsel %vm448_vm3, %v1012_v63, -inf  ;;  %v1559_v2 = vpop.f32.mrb[13].mxu1 }
 0x302   : > { %v1015_v3 = vpop.f32.mrb[14].mxu1  ;;  %v1024_v4 = vsel %vm511_vm4, %v1934_v1, -inf }
 0x303   : > { %v1940_v5 = vsel %vm448_vm3, %v1015_v3, -inf  ;;  %1025 = vmax.xlane.f32.xlu0 %v1024_v4  ;;  %v1560_v7 = vpop.f32.mrb[15].mxu1 }
 0x304   : > { %v1027_v8 = vsel %vm511_vm4, %v1940_v5, -inf }
 0x305   : > { %1028 = vmax.xlane.f32.xlu1 %v1027_v8 }
 0x380   : > { %v686_v10 = vpop.xlane.xlu1 %685 }
 0x381   : > { %v1949_v12 = vmax.f32 %v1944_v9, %v686_v10 }
 0x382   : > { %v689_v13 = vpop.xlane.xlu0 %688 }
 0x383   : > { %v692_v6 = vsub.f32 %v1944_v9, %v1949_v12  ;;  %796 = vst.msk [vmem:[#allocation2 + $0x10] sm:$0xff] %vm411_vm2, %v1949_v12  ;;  %v1956_v14 = vmax.f32 %v1946_v11, %v689_v13  ;;  %700 = vperm.xlu0 %1610, %v1949_v12  }
 0x385   : > { %v693_v15 = vsub.f32 %v1946_v11, %v1956_v14  ;;  %797 = vst.msk [vmem:[#allocation2 + $0x18] sm:$0xff] %vm411_vm2, %v1956_v14  ;;  %705 = vperm.xlu1 %1609, %v1956_v14  }
 0x387   : > { %1085 = vrot.lane.b32.xlu0 %v1870_v24, %s1709_s13 }
 0x388   : > { %v856_v21 = vpop.xlane.xlu0 %855 }
 0x389   : > { %v1971_v26 = vmax.f32 %v1964_v17, %v856_v21 }
 0x38a   : > { %v859_v27 = vpop.xlane.xlu1 %858 }
 0x38b   : > { %v862_v28 = vsub.f32 %v1964_v17, %v1971_v26  ;;  %966 = vst.msk [vmem:[#allocation2 + $0x20] sm:$0xff] %vm411_vm2, %v1971_v26  ;;  %v1978_v29 = vmax.f32 %v1968_v25, %v859_v27  ;;  %870 = vperm.xlu1 %1609, %v1971_v26   ;;  %v715_v26 = vld [vmem:[#allocation3 + $0x10] sm:$0xff] }
 0x38d   : > { %v863_v30 = vsub.f32 %v1968_v25, %v1978_v29  ;;  %967 = vst.msk [vmem:[#allocation2 + $0x28] sm:$0xff] %vm411_vm2, %v1978_v29 }
 0x38f   : > { %875 = vperm.xlu1 %1609, %v1978_v29  }
 0x390   : > { %v1026_v32 = vpop.xlane.xlu0 %1025 }
 0x391   : > { %v1991_v36 = vmax.f32 %v1985_v31, %v1026_v32 }
 0x392   : > { %v1029_v37 = vpop.xlane.xlu1 %1028 }
 0x393   : > { %v1032_v38 = vsub.f32 %v1985_v31, %v1991_v36  ;;  %1136 = vst.msk [vmem:[#allocation2 + $0x30] sm:$0xff] %vm411_vm2, %v1991_v36  ;;  %v1998_v39 = vmax.f32 %v1988_v35, %v1029_v37  ;;  %1040 = vperm.xlu1 %1609, %v1991_v36   ;;  %v546_v37 = vsel %vm511_vm4, %v1880_v33, 0.0  ;;  %v694_v33 = vmul.f32 1.442695, %v692_v6 }
 0x394   : > { %v522_v36 = vmul.f32 1.442695, %v520_v20 }
 0x395   : > { %v1033_v40 = vsub.f32 %v1988_v35, %v1998_v39  ;;  %1137 = vst.msk [vmem:[#allocation2 + $0x38] sm:$0xff] %vm411_vm2, %v1998_v39  ;;  %v1034_v11 = vmul.f32 1.442695, %v1032_v38 }
 0x397   : > { %1045 = vperm.xlu1 %1609, %v1998_v39   ;;  %v1036_v9 = vmul.f32 1.442695, %v1033_v40  ;;  %v885_v40 = vld [vmem:[#allocation3 + $0x20] sm:$0xff] }
 0x39b   : > { %745 = vrot.lane.b32.xlu1 %v1870_v24, %s1707_s8 }
 0x39f   : > { %915 = vrot.lane.b32.xlu1 %v1870_v24, %s1708_s12 }
 0x402   : > { %v701_v41 = vpop.permute.xlu0 %700 }
 0x403   : > { %v708_v42 = vsub.f32 %v1910_v48, %v701_v41 }
 0x404   : > { %v706_v44 = vpop.permute.xlu1 %705 }
 0x405   : > { %v710_v46 = vmul.f32 1.442695, %v708_v42  ;;  %v709_v47 = vsub.f32 %v1916_v52, %v706_v44  ;;  %v549_v42 = vsel %vm511_vm4, %v1882_v34, 0.0  ;;  %v866_v34 = vmul.f32 1.442695, %v863_v30 }
 0x406   : > { %v1086_v32 = vpop.permute.xlu0 %1085 }
 0x407   : > { %1635 = vpow2.f32 %v710_v46  ;;  %v712_v49 = vmul.f32 1.442695, %v709_v47  ;;  %v696_v46 = vmul.f32 1.442695, %v693_v15  ;;  %v864_v47 = vmul.f32 1.442695, %v862_v28 }
 0x408   : > { %v716_v28 = vld [vmem:[#allocation3 + $0x18] sm:$0xff] }
 0x409   : > { %1637 = vpow2.f32 %v712_v49  ;;  %v524_v49 = vmul.f32 1.442695, %v521_v23  ;;  %v542_v23 = vld [vmem:[#allocation3] sm:$0xff] }
 0x40a   : > { %v871_v50 = vpop.permute.xlu1 %870 }
 0x40b   : > { %v878_v51 = vsub.f32 %v1922_v56, %v871_v50 }
 0x40d   : > { %v880_v53 = vmul.f32 1.442695, %v878_v51 }
 0x40e   : > { %v876_v54 = vpop.permute.xlu1 %875 }
 0x40f   : > { %1639 = vpow2.f32 %v880_v53  ;;  %v879_v55 = vsub.f32 %v1928_v60, %v876_v54  ;;  %v886_v53 = vld [vmem:[#allocation3 + $0x28] sm:$0xff] }
 0x411   : > { %v1636_v57 = vpop.eup %1635  ;;  %v882_v24 = vmul.f32 1.442695, %v879_v55 }
 0x412   : > { %v1041_v58 = vpop.permute.xlu1 %1040  ;;  %v719_v48 = vsel %vm511_vm4, %v1636_v57, 0.0 }
 0x413   : > { %v1638_v59 = vpop.eup %1637  ;;  %1641 = vpow2.f32 %v882_v24  ;;  %v1048_v52 = vsub.f32 %v1934_v1, %v1041_v58  ;;  %720 = vadd.xlane.f32.xlu1 %v719_v48  ;;  %v1056_v48 = vld [vmem:[#allocation3 + $0x38] sm:$0xff] }
 0x414   : > { %v722_v61 = vsel %vm511_vm4, %v1638_v59, 0.0  ;;  %v744_v7 = vpack.c.bf16 %v1638_v59, %v1636_v57  ;;  %v1055_v57 = vld [vmem:[#allocation3 + $0x30] sm:$0xff] }
 0x415   : > { %v1050_v62 = vmul.f32 1.442695, %v1048_v52  ;;  %723 = vadd.xlane.f32.xlu0 %v722_v61 }
 0x416   : > { %v1046_v56 = vpop.permute.xlu1 %1045 }
 0x417   : > { %1643 = vpow2.f32 %v1050_v62  ;;  %v1049_v63 = vsub.f32 %v1940_v5, %v1046_v56 }
 0x419   : > { %v1640_v2 = vpop.eup %1639  ;;  %v1052_v60 = vmul.f32 1.442695, %v1049_v63 }
 0x41a   : > { %v746_v3 = vpop.permute.xlu1 %745  ;;  %v889_v4 = vsel %vm511_vm4, %v1640_v2, 0.0 }
 0x41b   : > { %1645 = vpow2.f32 %v1052_v60  ;;  %890 = vadd.xlane.f32.xlu0 %v889_v4  ;;  %1538 = vmatpush3.bf16.msra.mxu0 %v746_v3  ;;  %v543_v60 = vld [vmem:[#allocation3 + $0x8] sm:$0xff] }
 0x41c   : > { %1549 = vmatprep.subr.bf16.mxu0 %v1703_v0  ;;  %1647 = vpow2.f32 %v696_v46 }
 0x41d   : > { %v1642_v1 = vpop.eup %1641  ;;  %1649 = vpow2.f32 %v694_v33 }
 0x41e   : > { %1540 = vmatmul.mubr.msk.bf16.vlgmr.msra.gmra.mrb[4].mxu0 %vm511_vm4, %v744_v7  ;;  %v892_v8 = vsel %vm511_vm4, %v1642_v1, 0.0  ;;  %v916_v10 = vpop.permute.xlu1 %915  ;;  %v914_v21 = vpack.c.bf16 %v1642_v1, %v1640_v2  ;;  %1651 = vpow2.f32 %v864_v47 }
 0x41f   : > { %893 = vadd.xlane.f32.xlu1 %v892_v8  ;;  %1550 = vmatpush3.bf16.msra.mxu0 %v916_v10  ;;  %1653 = vpow2.f32 %v866_v34 }
 0x420   : > { %1551 = vmatprep.mubr.msk.bf16.mxu0 %vm1704_vm1, %v1703_v0  ;;  %1561 = vmatprep.subr.bf16.mxu0 %v1703_v0  ;;  %1655 = vpow2.f32 %v1034_v11 }
 0x421   : > { %v1644_v5 = vpop.eup %1643  ;;  %1657 = vpow2.f32 %v1036_v9 }
 0x422   : > { %v1059_v13 = vsel %vm511_vm4, %v1644_v5, 0.0  ;;  %1659 = vpow2.f32 %v522_v36 }
 0x423   : > { %1060 = vadd.xlane.f32.xlu0 %v1059_v13  ;;  %1661 = vpow2.f32 %v524_v49 }
 0x425   : > { %v1646_v27 = vpop.eup %1645 }
 0x426   : > { %1552 = vmatmul.mubr.msk.bf16.vlgmr.msra.gmra.mrb[8].mxu0 %vm511_vm4, %v914_v21  ;;  %v1062_v41 = vsel %vm511_vm4, %v1646_v27, 0.0  ;;  %v1084_v44 = vpack.c.bf16 %v1646_v27, %v1644_v5  ;;  %v1648_v12 = vpop.eup %1647 }
 0x427   : > { %547 = vadd.xlane.f32.xlu0 %v546_v37  ;;  %1063 = vadd.xlane.f32.xlu1 %v1062_v41  ;;  %v1650_v6 = vpop.eup %1649  ;;  %v718_v35 = vmul.f32 %v1648_v12, %v716_v28  ;;  %v731_v41 = vld [vmem:[#allocation4 + $0x18] sm:$0xff] }
 0x428   : > { %1562 = vmatpush3.bf16.msra.mxu0 %v1086_v32  ;;  %1563 = vmatprep.mubr.msk.bf16.mxu0 %vm1704_vm1, %v1703_v0  ;;  %v1652_v14 = vpop.eup %1651  ;;  %v717_v29 = vmul.f32 %v1650_v6, %v715_v26  ;;  %v730_v32 = vld [vmem:[#allocation4 + $0x10] sm:$0xff] }
 0x429   : > { %v1654_v15 = vpop.eup %1653  ;;  %v887_v50 = vmul.f32 %v1652_v14, %v885_v40  ;;  %v1071_v40 = vld [vmem:[#allocation4 + $0x38] sm:$0xff] }
 0x42a   : > { %v1656_v17 = vpop.eup %1655  ;;  %v888_v16 = vmul.f32 %v1654_v15, %v886_v53 }
 0x42b   : > { %550 = vadd.xlane.f32.xlu1 %v549_v42  ;;  %v1658_v25 = vpop.eup %1657  ;;  %v1057_v58 = vmul.f32 %v1656_v17, %v1055_v57 }
 0x42c   : > { %v1660_v19 = vpop.eup %1659  ;;  %v1058_v62 = vmul.f32 %v1658_v25, %v1056_v48 }
 0x42d   : > { %v544_v61 = vmul.f32 %v1660_v19, %v542_v23  ;;  %v1662_v56 = vpop.eup %1661 }
 0x42e   : > { %1564 = vmatmul.mubr.msk.bf16.vlgmr.msra.gmra.mrb[12].mxu0 %vm511_vm4, %v1084_v44  ;;  %v545_v1 = vmul.f32 %v1662_v56, %v543_v60 }
 0x43c   : > { %739 = vperm.xlu1 %1609, %v1648_v12  }
 0x43d   : > { %734 = vperm.xlu0 %1610, %v1650_v6   ;;  %v900_v6 = vld [vmem:[#allocation4 + $0x20] sm:$0xff] }
 0x440   : > { %904 = vperm.xlu1 %1609, %v1652_v14  }
 0x441   : > { %909 = vperm.xlu0 %1610, %v1654_v15   ;;  %v901_v15 = vld [vmem:[#allocation4 + $0x28] sm:$0xff] }
 0x444   : > { %1074 = vperm.xlu1 %1609, %v1656_v17  }
 0x445   : > { %1079 = vperm.xlu0 %1610, %v1658_v25  }
 0x4a0   : > { %v721_v30 = vpop.xlane.xlu1 %720 }
 0x4a1   : > { %v725_v31 = vadd.f32 %v721_v30, %v717_v29 }
 0x4a2   : > { %v724_v38 = vpop.xlane.xlu0 %723 }
 0x4a3   : > { %727 = vst.msk [vmem:[#allocation3 + $0x10] sm:$0xff] %vm411_vm2, %v725_v31  ;;  %v726_v39 = vadd.f32 %v724_v38, %v718_v35  ;;  %v1070_v38 = vld [vmem:[#allocation4 + $0x30] sm:$0xff] }
 0x4a5   : > { %728 = vst.msk [vmem:[#allocation3 + $0x18] sm:$0xff] %vm411_vm2, %v726_v39 }
 0x4a8   : > { %v891_v51 = vpop.xlane.xlu0 %890 }
 0x4a9   : > { %v895_v54 = vadd.f32 %v891_v51, %v887_v50 }
 0x4aa   : > { %v1161_v55 = vld [vmem:[#allocation3 + $0x10] sm:$0xff] }
 0x4ab   : > { %897 = vst.msk [vmem:[#allocation3 + $0x20] sm:$0xff] %vm411_vm2, %v895_v54  ;;  %1165 = vperm.xlu1 %1609, %v1161_v55  }
 0x4ac   : > { %v894_v18 = vpop.xlane.xlu1 %893  ;;  %v1162_v20 = vld [vmem:[#allocation3 + $0x18] sm:$0xff] }
 0x4ad   : > { %v896_v24 = vadd.f32 %v894_v18, %v888_v16  ;;  %1170 = vperm.xlu0 %1610, %v1162_v20  }
 0x4af   : > { %898 = vst.msk [vmem:[#allocation3 + $0x28] sm:$0xff] %vm411_vm2, %v896_v24 }
 0x4b0   : > { %v1061_v22 = vpop.xlane.xlu0 %1060 }
 0x4b1   : > { %v1065_v59 = vadd.f32 %v1061_v22, %v1057_v58 }
 0x4b2   : > { %v1179_v52 = vld [vmem:[#allocation3 + $0x20] sm:$0xff] }
 0x4b3   : > { %1067 = vst.msk [vmem:[#allocation3 + $0x30] sm:$0xff] %vm411_vm2, %v1065_v59  ;;  %1183 = vperm.xlu1 %1609, %v1179_v52  }
 0x4b4   : > { %v548_v63 = vpop.xlane.xlu0 %547  ;;  %v1064_v2 = vpop.xlane.xlu1 %1063 }
 0x4b5   : > { %v552_v3 = vadd.f32 %v548_v63, %v544_v61  ;;  %v1066_v4 = vadd.f32 %v1064_v2, %v1058_v62  ;;  %v1629_v63 = vld [vmem:[%s2114_s4] sm:$0xff]  }
 0x4b6   : > { %v1180_v7 = vld [vmem:[#allocation3 + $0x28] sm:$0xff]  ;;  %v557_v2 = vld [vmem:[#allocation4] sm:$0xff]  ;;  %1568 = vmatpush3.bf16.msra.mxu1 %v1629_v63 }
 0x4b7   : > { %555 = vst.msk [vmem:[#allocation3] sm:$0xff] %vm411_vm2, %v552_v3  ;;  %1068 = vst.msk [vmem:[#allocation3 + $0x38] sm:$0xff] %vm411_vm2, %v1066_v4  ;;  %1188 = vperm.xlu0 %1610, %v1180_v7   ;;  %1569 = vmatprep.subr.bf16.mxu1 %v1703_v0 }
 0x4b8   : > { %v551_v8 = vpop.xlane.xlu1 %550 }
 0x4b9   : > { %v553_v10 = vadd.f32 %v551_v8, %v545_v1  ;;  %v558_v1 = vld [vmem:[#allocation4 + $0x8] sm:$0xff] }
 0x4ba   : > { %v1197_v5 = vld [vmem:[#allocation3 + $0x30] sm:$0xff] }
 0x4bb   : > { %556 = vst.msk [vmem:[#allocation3 + $0x8] sm:$0xff] %vm411_vm2, %v553_v10  ;;  %1201 = vperm.xlu1 %1609, %v1197_v5  }
 0x4bc   : > { %v735_v37 = vpop.permute.xlu0 %734  ;;  %v740_v42 = vpop.permute.xlu1 %739 }
 0x4bd   : > { %v742_v44 = vmul.f32 %v735_v37, %v730_v32  ;;  %v743_v33 = vmul.f32 %v740_v42, %v731_v41 }
 0x4be   : > { %v1198_v13 = vld [vmem:[#allocation3 + $0x38] sm:$0xff]  ;;  %v1143_v21 = vld [vmem:[#allocation3] sm:$0xff] }
 0x4bf   : > { %561 = vperm.xlu1 %1609, %v1660_v19   ;;  %1206 = vperm.xlu0 %1610, %v1198_v13  }
 0x4c0   : > { %v905_v14 = vpop.permute.xlu1 %904  ;;  %v910_v17 = vpop.permute.xlu0 %909 }
 0x4c1   : > { %v912_v25 = vmul.f32 %v905_v14, %v900_v6  ;;  %v913_v28 = vmul.f32 %v910_v17, %v901_v15 }
 0x4c2   : > { %v1144_v27 = vld [vmem:[#allocation3 + $0x8] sm:$0xff] }
 0x4c3   : > { %1147 = vperm.xlu1 %1609, %v1143_v21   ;;  %566 = vperm.xlu0 %1610, %v1662_v56   ;;  %v1630_v21 = vld [vmem:[%s2114_s4 + $0x8] sm:$0xff]  }
 0x4c4   : > { %v1075_v39 = vpop.permute.xlu1 %1074  ;;  %v1080_v49 = vpop.permute.xlu0 %1079  ;;  %1570 = vmatpush3.bf16.msra.mxu1 %v1630_v21 }
 0x4c5   : > { %v1082_v50 = vmul.f32 %v1075_v39, %v1070_v38  ;;  %v1083_v53 = vmul.f32 %v1080_v49, %v1071_v40 }
 0x4c7   : > { %1152 = vperm.xlu0 %1610, %v1144_v27  }
 0x4f1   : > { %v785_v46 = vpop.f32.mrb[4].mxu0 }
 0x4f2   : > { %v792_v47 = vadd.f32 %v785_v46, %v742_v44  ;;  %v1541_v34 = vpop.f32.mrb[5].mxu0 }
 0x4f3   : > { %v788_v11 = vpop.f32.mrb[6].mxu0 }
 0x4f4   : > { %794 = vst.msk [vmem:[#allocation4 + $0x10] sm:$0xff] %vm428_vm0, %v792_v47  ;;  %v793_v9 = vadd.f32 %v788_v11, %v743_v33  ;;  %v1542_v12 = vpop.f32.mrb[7].mxu0 }
 0x4f6   : > { %795 = vst.msk [vmem:[#allocation4 + $0x18] sm:$0xff] %vm428_vm0, %v793_v9 }
 0x4f9   : > { %v955_v26 = vpop.f32.mrb[8].mxu0 }
 0x4fa   : > { %v962_v29 = vadd.f32 %v955_v26, %v912_v25  ;;  %v1553_v30 = vpop.f32.mrb[9].mxu0 }
 0x4fb   : > { %v958_v31 = vpop.f32.mrb[10].mxu0  ;;  %v1159_v48 = vld [vmem:[#allocation4 + $0x10] sm:$0xff] }
 0x4fc   : > { %964 = vst.msk [vmem:[#allocation4 + $0x20] sm:$0xff] %vm428_vm0, %v962_v29  ;;  %v963_v35 = vadd.f32 %v958_v31, %v913_v28  ;;  %v1554_v36 = vpop.f32.mrb[11].mxu0 }
 0x4fd   : > { %v1160_v59 = vld [vmem:[#allocation4 + $0x18] sm:$0xff] }
 0x4fe   : > { %965 = vst.msk [vmem:[#allocation4 + $0x28] sm:$0xff] %vm428_vm0, %v963_v35 }
 0x501   : > { %v1125_v51 = vpop.f32.mrb[12].mxu0 }
 0x502   : > { %v1132_v54 = vadd.f32 %v1125_v51, %v1082_v50  ;;  %v1565_v55 = vpop.f32.mrb[13].mxu0 }
 0x503   : > { %v1128_v16 = vpop.f32.mrb[14].mxu0  ;;  %v1177_v5 = vld [vmem:[#allocation4 + $0x20] sm:$0xff] }
 0x504   : > { %1134 = vst.msk [vmem:[#allocation4 + $0x30] sm:$0xff] %vm428_vm0, %v1132_v54  ;;  %v1133_v18 = vadd.f32 %v1128_v16, %v1083_v53  ;;  %v1566_v20 = vpop.f32.mrb[15].mxu0  ;;  %v1489_v16 = vld [vmem:[%s2115_s5] ss:$0 sm:$0xff] }
 0x505   : > { %v1178_v13 = vld [vmem:[#allocation4 + $0x28] sm:$0xff]  ;;  %v1313_v20 = vld [vmem:[%s394_s28] sm:$0xff] }
 0x506   : > { %1135 = vst.msk [vmem:[#allocation4 + $0x38] sm:$0xff] %vm428_vm0, %v1133_v18 }
 0x50b   : > { %v1195_v46 = vld [vmem:[#allocation4 + $0x30] sm:$0xff] }
 0x50d   : > { %v1196_v33 = vld [vmem:[#allocation4 + $0x38] sm:$0xff] }
 0x52a   : > { %v1166_v57 = vpop.permute.xlu1 %1165 }
 0x52b   : > { %1663 = vrcp.f32 %v1166_v57 }
 0x52c   : > { %v1171_v24 = vpop.permute.xlu0 %1170 }
 0x52d   : > { %1665 = vrcp.f32 %v1171_v24 }
 0x532   : > { %v1184_v58 = vpop.permute.xlu1 %1183 }
 0x533   : > { %1667 = vrcp.f32 %v1184_v58 }
 0x535   : > { %v1664_v19 = vpop.eup %1663 }
 0x536   : > { %v1189_v22 = vpop.permute.xlu0 %1188  ;;  %v1174_v52 = vmul.f32 %v1664_v19, %v1159_v48  ;;  %v1314_v19 = vld [vmem:[%s394_s28 + $0x8] sm:$0xff] }
 0x537   : > { %v1666_v23 = vpop.eup %1665  ;;  %1669 = vrcp.f32 %v1189_v22 }
 0x538   : > { %v1176_v61 = vmul.f32 %v1666_v23, %v1160_v59 }
 0x53a   : > { %v1202_v62 = vpop.permute.xlu1 %1201  ;;  %v1611_v56 = vpack.i.bf16 %v1176_v61, %v1174_v52 }
 0x53b   : > { %1671 = vrcp.f32 %v1202_v62 }
 0x53c   : > { %1612 = vrot.lane.b32.xlu1 %v1611_v56, %s1710_s16 }
 0x53d   : > { %v1668_v4 = vpop.eup %1667 }
 0x53e   : > { %v1207_v60 = vpop.permute.xlu0 %1206  ;;  %v562_v3 = vpop.permute.xlu1 %561  ;;  %v1192_v32 = vmul.f32 %v1668_v4, %v1177_v5 }
 0x53f   : > { %1673 = vrcp.f32 %v1207_v60  ;;  %v569_v7 = vmul.f32 %v562_v3, %v557_v2 }
 0x541   : > { %v1670_v8 = vpop.eup %1669  ;;  %v622_v10 = vadd.f32 %v1904_v43, %v569_v7 }
 0x542   : > { %v567_v27 = vpop.permute.xlu0 %566  ;;  %v1194_v37 = vmul.f32 %v1670_v8, %v1178_v13  ;;  %v1148_v9 = vpop.permute.xlu1 %1147 }
 0x543   : > { %624 = vst.msk [vmem:[#allocation4] sm:$0xff] %vm428_vm0, %v622_v10  ;;  %v570_v41 = vmul.f32 %v567_v27, %v558_v1  ;;  %1675 = vrcp.f32 %v1148_v9 }
 0x544   : > { %v1616_v0 = vpack.i.bf16 %v1194_v37, %v1192_v32 }
 0x545   : > { %v623_v42 = vadd.f32 %v1906_v45, %v570_v41  ;;  %v1672_v44 = vpop.eup %1671 }
 0x546   : > { %1617 = vrot.lane.b32.xlu0 %v1616_v0, %s1711_s19  ;;  %v1210_v47 = vmul.f32 %v1672_v44, %v1195_v46  ;;  %v1153_v12 = vpop.permute.xlu0 %1152 }
 0x547   : > { %625 = vst.msk [vmem:[#allocation4 + $0x8] sm:$0xff] %vm428_vm0, %v623_v42  ;;  %1677 = vrcp.f32 %v1153_v12 }
 0x549   : > { %v1674_v43 = vpop.eup %1673 }
 0x54a   : > { %v1212_v34 = vmul.f32 %v1674_v43, %v1196_v33  ;;  %v1141_v26 = vld [vmem:[#allocation4] sm:$0xff] }
 0x54c   : > { %v1621_v11 = vpack.i.bf16 %v1212_v34, %v1210_v47 }
 0x54d   : > { %v1676_v14 = vpop.eup %1675 }
 0x54e   : > { %1622 = vrot.lane.b32.xlu1 %v1621_v11, %s1712_s20  ;;  %v1142_v28 = vld [vmem:[#allocation4 + $0x8] sm:$0xff]  ;;  %v1156_v31 = vmul.f32 %v1676_v14, %v1141_v26 }
 0x551   : > { %v1678_v15 = vpop.eup %1677 }
 0x552   : > { %v1158_v35 = vmul.f32 %v1678_v15, %v1142_v28 }
 0x5ae   : > { %v1613_v6 = vpop.permute.xlu1 %1612 }
 0x5af   : > { %v1615_v17 = vunpack.i.h.bf16 %v1613_v6  ;;  %v1614_v25 = vunpack.i.l.bf16 %v1613_v6 }
 0x5b1   : > { %v1238_v38 = vsel %vm428_vm0, %v1158_v35, %v1615_v17  ;;  %v1237_v39 = vsel %vm428_vm0, %v1156_v31, %v1614_v25 }
 0x5b8   : > { %v1618_v45 = vpop.permute.xlu0 %1617 }
 0x5b9   : > { %v1620_v29 = vunpack.i.h.bf16 %v1618_v45  ;;  %v1619_v30 = vunpack.i.l.bf16 %v1618_v45 }
 0x5bb   : > { %v1240_v50 = vsel %vm511_vm4, %v1238_v38, %v1620_v29  ;;  %v1239_v51 = vsel %vm511_vm4, %v1237_v39, %v1619_v30 }
 0x5c0   : > { %v1623_v36 = vpop.permute.xlu1 %1622 }
 0x5c1   : > { %v1625_v40 = vunpack.i.h.bf16 %v1623_v36  ;;  %v1624_v49 = vunpack.i.l.bf16 %v1623_v36 }
 0x5c3   : > { %v1243_v53 = vsel %vm1241_vm5, %v1240_v50, %v1625_v40  ;;  %v1242_v54 = vsel %vm1241_vm5, %v1239_v51, %v1624_v49 }
 0x5c4   : > { %v1244_v55 = vpack.c.bf16 %v1243_v53, %v1242_v54 }
 0x5c6   : > { %1572 = vmatmul.mubr.msk.bf16.vlgmr.msra.gmra.mrb[16].mxu1 %vm1268_vm6, %v1244_v55 }
 0x699   : > { %v1306_v18 = vpop.f32.mrb[16].mxu1 }
 0x69a   : > { %v1307_v57 = vadd.f32 %v1489_v16, %v1306_v18  ;;  %v1573_v24 = vpop.f32.mrb[17].mxu1 }
 0x69b   : > { %v1309_v58 = vpop.f32.mrb[18].mxu1 }
 0x69c   : > { %v1315_v22 = vadd.f32 %v1313_v20, %v1307_v57  ;;  %v1310_v23 = vadd.f32 %v1489_v16, %v1309_v58  ;;  %v1574_v48 = vpop.f32.mrb[19].mxu1 }
 0x69e   : > { %1317 = vst.msk [vmem:[%s404_s9] sm:$0xff] %vm1268_vm6, %v1315_v22  ;;  %v1316_v59 = vadd.f32 %v1314_v19, %v1310_v23 }
 0x6a0   : > { %1318 = vst.msk [vmem:[%s404_s9 + $0x8] sm:$0xff] %vm1268_vm6, %v1316_v59 }
 0x6a1 PF: > { %s16_s23 = sadd.s32 1, %s1701_s23   ;;  %s2117_s21 = smov %s1697_s22 }
 0x6a2   : > { %p13_p5 = scmp.ge.s32.totalorder %s16_s23, 4   ;;  %s2118_s22 = smov %s2120_s24 }
 0x6a4   :  { %15 = sbr.rel (!%p13_p5) target bundleno = 2 (0x2), region = 100 }

// kernel: _lambda_.11
= control target key start
LH: loop header
LB: loop body
LE: loop exit
PB: predicated region body
PF: predicated region fallthrough
CT: control target
= control target key end

     0   :  { %vm32_vm0 = vcmask 261120   ;;  %s440_s0 = inlined_call_operand.vmem [shape: f32[16,32], index: 0, kind: input, shape index: {}]   ;;  %s441_s1 = inlined_call_operand.vmem [shape: f32[1,32], index: 1, kind: input, shape index: {}]   ;;  %s442_s2 = inlined_call_operand.vmem [shape: f32[1,32], index: 2, kind: input, shape index: {}, may-alias: {2,6}]   ;;  %s443_s3 = inlined_call_operand.vmem [shape: bf16[32,64], index: 3, kind: input, shape index: {}]   ;;  %s444_s4 = inlined_call_operand.vmem [shape: f32[1,64], index: 4, kind: input, shape index: {}]   ;;  %s445_s5 = inlined_call_operand.vmem [shape: bf16[64,32], index: 5, kind: input, shape index: {}]   ;;  %s446_s6 = inlined_call_operand.vmem [shape: f32[1,32], index: 6, kind: input, shape index: {}, may-alias: {2,6}]   ;;  %s447_s7 = inlined_call_operand.hbm [shape: f32[16,32], index: 7, kind: output, shape index: {}]  }
   0x1   :  { %v378_v0 = vld [vmem:[%s440_s0] sm:$0xff]  ;;  %v383_v1 = vld [vmem:[%s440_s0 + $0x8] sm:$0xff] }
   0x2   :  { %v33_v2 = vsel %vm32_vm0, %v378_v0, 0.0  ;;  %v36_v3 = vsel %vm32_vm0, %v383_v1, 0.0 }
   0x3   :  { %34 = vadd.xlane.f32.xlu0 %v33_v2 }
   0x4   :  { %12 = vsyncpa [#allocation3], 0  ;;  %v296_v14 = vld [vmem:[%s443_s3] sm:$0xff]   ;;  %v330_v15 = vmov 0.0   ;;  %v297_v16 = vld [vmem:[%s443_s3 + $0x8] sm:$0xff]   ;;  %vm331_vm1 = vmmov 0  }
   0x5   :  { %271 = vmatprep.subr.bf16.mxu0 %v330_v15  ;;  %279 = vmatprep.subr.bf16.mxu1 %v330_v15  ;;  %v298_v17 = vld [vmem:[%s445_s5] sm:$0xff]   ;;  %v299_v18 = vld [vmem:[%s445_s5 + $0x8] sm:$0xff]   ;;  %v300_v36 = vld [vmem:[%s445_s5 + $0x10] sm:$0xff]   ;;  %vm186_vm2 = vcmask 523264  }
   0x6   :  { %272 = vmatpush3.bf16.msra.mxu0 %v296_v14  ;;  %275 = vmatprep.mubr.msk.bf16.mxu0 %vm331_vm1, %v330_v15  ;;  %v251_v27 = vld [vmem:[%s441_s1] ss:$0 sm:$0xff]  ;;  %v301_v37 = vld [vmem:[%s445_s5 + $0x18] sm:$0xff]   ;;  %s332_s5 = smov [#allocation2]  }
   0x7   :  { %37 = vadd.xlane.f32.xlu0 %v36_v3  ;;  %273 = vmatprep.subr.bf16.mxu0 %v330_v15  ;;  %v252_v31 = vld [vmem:[%s442_s2] ss:$0 sm:$0xff] }
   0x8   :  { %287 = vmatprep.mubr.msk.bf16.mxu1 %vm331_vm1, %v330_v15  ;;  %280 = vmatpush3.bf16.msra.mxu1 %v298_v17  ;;  %v253_v38 = vld [vmem:[%s444_s4] ss:$0 sm:$0xff]  ;;  %s240_s4 = sshll.u32 %s332_s5, 4  ;;  %s241_s4 = int_to_ptr.vmem [resolvable:$true] %s240_s4 }
   0x9   :  { %281 = vmatprep.subr.bf16.mxu1 %v330_v15  ;;  %v257_v48 = vld [vmem:[%s446_s6] ss:$0 sm:$0xff]  ;;  %s306_s21 = scalar_lea.vmem %s241_s4, 256  ;;  %p311_p1 = scmp.lt.s32.totalorder %s241_s4, %s241_s4 }
   0xa   :  { %274 = vmatpush3.bf16.msra.mxu0 %v297_v16  ;;  %p307_p0 = scmp.ne.s32.totalorder %s241_s4, %s306_s21  ;;  %p312_p2 = scmp.lt.s32.totalorder %s306_s21, %s306_s21 }
   0xc   :  { %282 = vmatpush3.bf16.msra.mxu1 %v299_v18  ;;  %p313_p3 = por %p312_p2, %p311_p1 }
   0xd   :  { %283 = vmatprep.subr.bf16.mxu1 %v330_v15 }
   0xe   :  { %p314_p4 = pnand %p313_p3, %p307_p0 }
  0x10   :  { %284 = vmatpush3.bf16.msra.mxu1 %v300_v36 }
  0x11   :  { %285 = vmatprep.subr.bf16.mxu1 %v330_v15 }
  0x14   :  { %286 = vmatpush3.bf16.msra.mxu1 %v301_v37 }
  0x90   :  { %v35_v4 = vpop.xlane.xlu0 %34 }
  0x91   :  { %v40_v5 = vmul.f32 0.03125, %v35_v4 }
  0x93   :  { %v42_v6 = vsub.f32 %v378_v0, %v40_v5 }
  0x94   :  { %v38_v7 = vpop.xlane.xlu0 %37 }
  0x95   :  { %v41_v8 = vmul.f32 0.03125, %v38_v7  ;;  %v44_v9 = vmul.f32 %v42_v6, %v42_v6 }
  0x97   :  { %v43_v10 = vsub.f32 %v383_v1, %v41_v8  ;;  %v46_v11 = vsel %vm32_vm0, %v44_v9, 0.0 }
  0x98   :  { %47 = vadd.xlane.f32.xlu1 %v46_v11 }
  0x99   :  { %v45_v12 = vmul.f32 %v43_v10, %v43_v10 }
  0x9b   :  { %v49_v13 = vsel %vm32_vm0, %v45_v12, 0.0 }
  0x9c   :  { %50 = vadd.xlane.f32.xlu1 %v49_v13 }
 0x125   :  { %v48_v19 = vpop.xlane.xlu1 %47 }
 0x126   :  { %v52_v20 = vmul.f32 0.03125, %v48_v19 }
 0x128   :  { %v54_v21 = vadd.f32 1e-05, %v52_v20 }
 0x129   :  { %v51_v22 = vpop.xlane.xlu1 %50 }
 0x12a   :  { %302 = vrsqrt.f32 %v54_v21  ;;  %v53_v23 = vmul.f32 0.03125, %v51_v22 }
 0x12c   :  { %v55_v24 = vadd.f32 1e-05, %v53_v23 }
 0x12e   :  { %304 = vrsqrt.f32 %v55_v24 }
 0x134   :  { %v303_v25 = vpop.eup %302 }
 0x135   :  { %v58_v26 = vmul.f32 %v303_v25, %v42_v6 }
 0x137   :  { %v66_v30 = vmul.f32 %v251_v27, %v58_v26 }
 0x138   :  { %v305_v28 = vpop.eup %304 }
 0x139   :  { %v59_v29 = vmul.f32 %v305_v28, %v43_v10  ;;  %v74_v33 = vadd.f32 %v252_v31, %v66_v30 }
 0x13b   :  { %v67_v32 = vmul.f32 %v251_v27, %v59_v29 }
 0x13d   :  { %v75_v34 = vadd.f32 %v252_v31, %v67_v32 }
 0x13f   :  { %v76_v35 = vpack.c.bf16 %v75_v34, %v74_v33 }
 0x141   :  { %276 = vmatmul.mubr.msk.bf16.vlgmr.msra.gmra.mrb[0].mxu0 %vm32_vm0, %v76_v35 }
 0x214   :  { %v137_v39 = vpop.f32.mrb[0].mxu0 }
 0x215   :  { %v138_v40 = vadd.f32 %v253_v38, %v137_v39  ;;  %v277_v41 = vpop.f32.mrb[1].mxu0 }
 0x216   :  { %v140_v42 = vpop.f32.mrb[2].mxu0 }
 0x217   :  { %v141_v43 = vadd.f32 %v253_v38, %v140_v42  ;;  %v278_v44 = vpop.f32.mrb[3].mxu0  ;;  %v144_v45 = vmax.f32 %v138_v40, 0.0 }
 0x219   :  { %v145_v46 = vmax.f32 %v141_v43, 0.0 }
 0x21b   :  { %v146_v47 = vpack.c.bf16 %v145_v46, %v144_v45 }
 0x21d   :  { %288 = vmatmul.mubr.msk.bf16.vlgmr.msra.gmra.mrb[0].mxu1 %vm186_vm2, %v146_v47 }
 0x2f0   :  { %v224_v49 = vpop.f32.mrb[0].mxu1 }
 0x2f1   :  { %v225_v50 = vadd.f32 %v257_v48, %v224_v49  ;;  %v289_v51 = vpop.f32.mrb[1].mxu1 }
 0x2f2   :  { %v227_v52 = vpop.f32.mrb[2].mxu1 }
 0x2f3   :  { %v231_v53 = vadd.f32 %v225_v50, %v378_v0  ;;  %v228_v54 = vadd.f32 %v257_v48, %v227_v52  ;;  %v290_v55 = vpop.f32.mrb[3].mxu1 }
 0x2f5   :  { %233 = vst.msk [vmem:[#allocation2] sm:$0xff] %vm32_vm0, %v231_v53  ;;  %v232_v56 = vadd.f32 %v228_v54, %v383_v1 }
 0x2f7   :  { %234 = vst.msk [vmem:[#allocation2 + $0x8] sm:$0xff] %vm32_vm0, %v232_v56 }
 0x2f8   :  { %317 = shalt.err (!%p314_p4)
}
 0x2f9   :  { %s318_s23 = scalar_lea.hbm %s447_s7, 256 }
 0x2fa   :  { %p319_p5 = scmp.ne.s32.totalorder %s447_s7, %s318_s23  ;;  %p322_p6 = scmp.lt.u32.totalorder %s318_s23, %s447_s7 }
 0x2fc   :  { %p324_p7 = pnand %p322_p6, %p319_p5 }
 0x2fe   :  { %327 = shalt.err (!%p324_p7)
}
 0x2ff   :  { %s333_s0 = smov 128   ;;  %s334_s28 = smov 8  }
 0x300   :  { %246 = dma.vmem_to_hbm [thread:$0]  %s241_s4, 256, %s447_s7, [#allocation3], %s333_s0, %s333_s0, %s334_s28  }
 0x301   :  { %328 = dma.done.wait [#allocation3], 256  }
 0x302   :  { %329 = vsyncadd [#allocation3], 4294967040 }
 0x303   :  { %250 = vsyncpa [#allocation3], 1 }

// kernel: _lambda_.10
= control target key start
LH: loop header
LB: loop body
LE: loop exit
PB: predicated region body
PF: predicated region fallthrough
CT: control target
= control target key end

     0   :  { %s1782_s21 = smov 0   ;;  %s1784_s22 = smov 0   ;;  %s2102_s0 = inlined_call_operand.vmem [shape: bf16[2,16,32], index: 0, kind: input, shape index: {}]   ;;  %s2103_s1 = inlined_call_operand.vmem [shape: bf16[2,32,32], index: 1, kind: input, shape index: {}]   ;;  %s2104_s2 = inlined_call_operand.vmem [shape: bf16[2,32,32], index: 2, kind: input, shape index: {}]   ;;  %s2105_s3 = inlined_call_operand.vmem [shape: f32[2,16,32], index: 3, kind: input, shape index: {}]   ;;  %s2106_s4 = inlined_call_operand.vmem [shape: bf16[32,32], index: 4, kind: input, shape index: {}]   ;;  %s2107_s5 = inlined_call_operand.vmem [shape: f32[1,32], index: 5, kind: input, shape index: {}]   ;;  %s2108_s6 = inlined_call_operand.vmem [shape: f32[2,16,32], index: 6, kind: output, shape index: {}]  }
   0x1   :  { %s1786_s23 = smov 0   ;;  %s1788_s24 = smov 0  }
   0x2   :  { %s1790_s25 = smov 0  }
   0x3 LB: > { %s28_s26 = sadd.s32 1, %s1723_s23  ;;  %s35_s27 = sadd.s32 1, %s1727_s24  ;;  %s1731_s25 = sphi %s1790_s25, %s16_s25   ;;  %s1727_s24 = sphi %s1788_s24, %s2114_s24   ;;  %s1723_s23 = sphi %s1786_s23, %s2113_s23   ;;  %s1719_s22 = sphi %s1784_s22, %s2112_s22   ;;  %s1715_s21 = sphi %s1782_s21, %s2111_s21  }
   0x4   : > { %p29_p0 = scmp.ge.s32.totalorder %s28_s26, 2  ;;  %p1457_p1 = scmp.ge.s32.totalorder %s1731_s25, 1 }
   0x5   : > { %p291_p2 = scmp.lt.s32.totalorder %s1731_s25, 5 }
   0x6   : > { %s2116_s26 = smov (%p29_p0, %s28_s26), 0  ;;  %s2118_s27 = smov (!%p29_p0, %s35_s27), %s1727_s24 }
   0x7   : > { %p292_p3 = pnand %p1457_p1, %p291_p2  ;;  %p37_p4 = scmp.ge.s32.totalorder %s2118_s27, 2 }
   0x8   : > { %p357_p5 = scmp.lt.s32.totalorder (!%p292_p3), %s1719_s22, 1  ;;  %s1460_s28 = sshll.u32 (!%p292_p3), %s1715_s21, 1 }
   0x9   : > { %s2120_s27 = smov (%p37_p4, %s2118_s27), 0  ;;  %295 = sbr.rel (%p292_p3) target bundleno = 1710 (0x6ae), region = 44 }
   0xa   : > { %2109 = sst [smem:[#allocation5_spill]] %s2120_s27  ;;  %p369_p6 = scmp.lt.s32.totalorder (!%p292_p3), %s1460_s28, 3 }
   0xb   : > { %p1470_p7 = scmp.ne.s32.totalorder (!%p292_p3), %s1715_s21, 0 }
  0x10   : > { %s2122_s22 = smov (!%p357_p5, %s1719_s22), 1  ;;  %s2124_s28 = smov (!%p369_p6, %s1460_s28), 3 }
  0x11   : > { %s1489_s29 = sshll.u32 %s2122_s22, 3  ;;  %s1461_s30 = sshll.u32 %s2122_s22, 2  ;;  %vm411_vm0 = vcmask (!%p1470_p7), 7168   ;;  %vm428_vm1 = vcmask (!%p1470_p7), 64512   ;;  %v1733_v0 = vmov (!%p1470_p7), -inf   ;;  %v1734_v1 = vmov (!%p1470_p7), 0.0  }
  0x12   : > { %s1818_s9 = scalar_lea.vmem %s2102_s0, %s1489_s29  ;;  %s372_s10 = sadd.s32 %s1461_s30, %s2124_s28  ;;  %412 = vst.msk [vmem:[#allocation2] sm:$0xff] (!%p1470_p7), %vm411_vm0, %v1733_v0  ;;  %413 = vst.msk [vmem:[#allocation2 + $0x8] sm:$0xff] (!%p1470_p7), %vm411_vm0, %v1733_v0 }
  0x13   : > { %s1462_s11 = sshll.u32 %s372_s10, 2  ;;  %s1490_s12 = sshll.u32 %s2122_s22, 4  ;;  %414 = vst.msk [vmem:[#allocation2 + $0x10] sm:$0xff] (!%p1470_p7), %vm411_vm0, %v1733_v0  ;;  %415 = vst.msk [vmem:[#allocation2 + $0x18] sm:$0xff] (!%p1470_p7), %vm411_vm0, %v1733_v0 }
  0x14   : > { %s1823_s15 = scalar_lea.vmem %s2103_s1, %s1462_s11  ;;  %s1828_s18 = scalar_lea.vmem %s2104_s2, %s1462_s11  ;;  %416 = vst.msk [vmem:[#allocation2 + $0x20] sm:$0xff] (!%p1470_p7), %vm411_vm0, %v1733_v0  ;;  %417 = vst.msk [vmem:[#allocation2 + $0x28] sm:$0xff] (!%p1470_p7), %vm411_vm0, %v1733_v0 }
  0x15   : > { %s1833_s27 = scalar_lea.vmem %s2105_s3, %s1490_s12  ;;  %s1838_s28 = scalar_lea.vmem %s2108_s6, %s1490_s12  ;;  %418 = vst.msk [vmem:[#allocation2 + $0x30] sm:$0xff] (!%p1470_p7), %vm411_vm0, %v1733_v0  ;;  %419 = vst.msk [vmem:[#allocation2 + $0x38] sm:$0xff] (!%p1470_p7), %vm411_vm0, %v1733_v0 }
  0x16   : > { %410 = sbr.rel (%p1470_p7) target bundleno = 30 (0x1e), region = 48  ;;  %420 = vst.msk [vmem:[#allocation3] sm:$0xff] (!%p1470_p7), %vm411_vm0, %v1734_v1  ;;  %421 = vst.msk [vmem:[#allocation3 + $0x8] sm:$0xff] (!%p1470_p7), %vm411_vm0, %v1734_v1 }
  0x17   : > { %422 = vst.msk [vmem:[#allocation3 + $0x10] sm:$0xff] (!%p1470_p7), %vm411_vm0, %v1734_v1  ;;  %423 = vst.msk [vmem:[#allocation3 + $0x18] sm:$0xff] (!%p1470_p7), %vm411_vm0, %v1734_v1 }
  0x18   : > { %424 = vst.msk [vmem:[#allocation3 + $0x20] sm:$0xff] (!%p1470_p7), %vm411_vm0, %v1734_v1  ;;  %425 = vst.msk [vmem:[#allocation3 + $0x28] sm:$0xff] (!%p1470_p7), %vm411_vm0, %v1734_v1 }
  0x19   : > { %426 = vst.msk [vmem:[#allocation3 + $0x30] sm:$0xff] (!%p1470_p7), %vm411_vm0, %v1734_v1  ;;  %427 = vst.msk [vmem:[#allocation3 + $0x38] sm:$0xff] (!%p1470_p7), %vm411_vm0, %v1734_v1 }
  0x1a   : > { %429 = vst.msk [vmem:[#allocation4] sm:$0xff] (!%p1470_p7), %vm428_vm1, %v1734_v1  ;;  %430 = vst.msk [vmem:[#allocation4 + $0x8] sm:$0xff] (!%p1470_p7), %vm428_vm1, %v1734_v1 }
  0x1b   : > { %431 = vst.msk [vmem:[#allocation4 + $0x10] sm:$0xff] (!%p1470_p7), %vm428_vm1, %v1734_v1  ;;  %432 = vst.msk [vmem:[#allocation4 + $0x18] sm:$0xff] (!%p1470_p7), %vm428_vm1, %v1734_v1 }
  0x1c   : > { %433 = vst.msk [vmem:[#allocation4 + $0x20] sm:$0xff] (!%p1470_p7), %vm428_vm1, %v1734_v1  ;;  %434 = vst.msk [vmem:[#allocation4 + $0x28] sm:$0xff] (!%p1470_p7), %vm428_vm1, %v1734_v1 }
  0x1d   : > { %435 = vst.msk [vmem:[#allocation4 + $0x30] sm:$0xff] %vm428_vm1, %v1734_v1  ;;  %436 = vst.msk [vmem:[#allocation4 + $0x38] sm:$0xff] %vm428_vm1, %v1734_v1 }
  0x1e PF: > { %v1623_v2 = vld [vmem:[%s1823_s15] sm:$0xff]   ;;  %v1735_v3 = vmov 0.0   ;;  %vm453_vm2 = vcmask 64512   ;;  %vm1736_vm3 = vmmov 0   ;;  %vm503_vm4 = vcmask 130048   ;;  %s1738_s22 = smov 120  }
  0x1f   : > { %1511 = vmatprep.subr.bf16.mxu0 %v1735_v3  ;;  %1517 = vmatprep.subr.bf16.mxu1 %v1735_v3  ;;  %v458_v4 = vsel %vm453_vm2, %v1623_v2, 0  ;;  %v1624_v5 = vld [vmem:[%s1818_s9] sm:$0xff]   ;;  %v1737_v12 = vmov 0   ;;  %vm546_vm5 = vcmask 7168   ;;  %v1886_v16 = vld [vmem:[#allocation2 + $0x8] sm:$0xff]  ;;  %s1739_s30 = smov 112  }
  0x20   : > { %1513 = vmatprep.mubr.msk.bf16.mxu0 %vm1736_vm3, %v1735_v3  ;;  %1519 = vmatprep.mubr.msk.bf16.mxu1 %vm1736_vm3, %v1735_v3  ;;  %v1881_v13 = vld [vmem:[#allocation2] sm:$0xff]  ;;  %s1740_s8 = smov 104   ;;  %v672_v62 = vld [vmem:[#allocation2 + $0x10] sm:$0xff]  ;;  %v673_v0 = vld [vmem:[#allocation2 + $0x18] sm:$0xff]  ;;  %p1482_p8 = scmp.ne.s32.totalorder %s1715_s21, 1 }
  0x21   : > { %1512 = vmatpush3.bf16.xpose.msra.mxu0 %v458_v4  ;;  %1621 = vset.pattern.permute.xlu1 %v1737_v12  ;;  %v1903_v21 = vld [vmem:[%s1828_s18] sm:$0xff]   ;;  %vm1743_vm6 = vmmov (!%p1482_p8), 0   ;;  %s1744_s12 = smov (!%p1482_p8), 16   ;;  %s1745_s13 = smov (!%p1482_p8), 8   ;;  %vm1228_vm7 = vcmask (!%p1482_p8), 195584   ;;  %vm1255_vm8 = vcmask (!%p1482_p8), 261120  }
  0x22   : > { %1529 = vmatprep.subr.bf16.mxu0 %v1735_v3  ;;  %1622 = vset.pattern.permute.xlu0 %v1737_v12  ;;  %s1746_s14 = smov (!%p1482_p8), 24  }
  0x23   : > { %1518 = vmatpush3.bf16.msra.mxu1 %v1903_v21 }
  0x24   : > { %1523 = vmatprep.subr.bf16.mxu1 %v1735_v3 }
  0x28   : > { %1514 = vmatmul.mubr.msk.bf16.vlgmr.msra.gmra.mrb[0].mxu0 %vm453_vm2, %v1624_v5 }
  0x29   : > { %1531 = vmatprep.mubr.msk.bf16.mxu0 %vm1736_vm3, %v1735_v3 }
  0xfb   : > { %v494_v6 = vpop.f32.mrb[0].mxu0 }
  0xfc   : > { %v1515_v7 = vpop.f32.mrb[1].mxu0  ;;  %v504_v8 = vsel %vm503_vm4, %v494_v6, -inf }
  0xfd   : > { %505 = vmax.xlane.f32.xlu0 %v504_v8  ;;  %v497_v9 = vpop.f32.mrb[2].mxu0  ;;  %v841_v8 = vld [vmem:[#allocation2 + $0x28] sm:$0xff] }
  0xfe   : > { %v1516_v10 = vpop.f32.mrb[3].mxu0  ;;  %v507_v11 = vsel %vm503_vm4, %v497_v9, -inf }
 0x101   : > { %508 = vmax.xlane.f32.xlu0 %v507_v11 }
 0x117   : > { %622 = vrot.lane.b32.xlu0 %v1623_v2, %s1738_s22 }
 0x18a   : > { %v506_v14 = vpop.xlane.xlu0 %505 }
 0x18b   : > { %v1884_v15 = vmax.f32 %v1881_v13, %v506_v14  ;;  %v1966_v14 = vld [vmem:[#allocation2 + $0x30] sm:$0xff] }
 0x18d   : > { %v512_v17 = vsub.f32 %v1881_v13, %v1884_v15  ;;  %618 = vst.msk [vmem:[#allocation2] sm:$0xff] %vm546_vm5, %v1884_v15  ;;  %520 = vperm.xlu1 %1621, %v1884_v15  }
 0x18e   : > { %v509_v18 = vpop.xlane.xlu0 %508 }
 0x18f   : > { %v1894_v19 = vmax.f32 %v1886_v16, %v509_v18 }
 0x191   : > { %v513_v20 = vsub.f32 %v1886_v16, %v1894_v19  ;;  %619 = vst.msk [vmem:[#allocation2 + $0x8] sm:$0xff] %vm546_vm5, %v1894_v19  ;;  %525 = vperm.xlu1 %1621, %v1894_v19  }
 0x192   : > { %v623_v29 = vpop.permute.xlu0 %622 }
 0x193   : > { %v628_v32 = vsel %vm453_vm2, %v623_v29, 0  ;;  %v514_v29 = vmul.f32 1.442695, %v512_v17  ;;  %v516_v15 = vmul.f32 1.442695, %v513_v20 }
 0x195   : > { %620 = vrot.lane.b32.xlu1 %v1624_v5, %s1738_s22 }
 0x199   : > { %790 = vrot.lane.b32.xlu1 %v1623_v2, %s1739_s30 }
 0x19d   : > { %788 = vrot.lane.b32.xlu1 %v1624_v5, %s1739_s30 }
 0x1a1   : > { %958 = vrot.lane.b32.xlu1 %v1623_v2, %s1740_s8 }
 0x1a5   : > { %956 = vrot.lane.b32.xlu1 %v1624_v5, %s1740_s8 }
 0x20c   : > { %v521_v22 = vpop.permute.xlu1 %520 }
 0x20d   : > { %v528_v23 = vsub.f32 %v494_v6, %v521_v22  ;;  %v840_v6 = vld [vmem:[#allocation2 + $0x20] sm:$0xff]  ;;  %v1968_v22 = vld [vmem:[#allocation2 + $0x38] sm:$0xff] }
 0x20f   : > { %v530_v24 = vmul.f32 1.442695, %v528_v23 }
 0x210   : > { %v526_v25 = vpop.permute.xlu1 %525 }
 0x211   : > { %v529_v26 = vsub.f32 %v497_v9, %v526_v25  ;;  %1626 = vpow2.f32 %v530_v24 }
 0x213   : > { %v532_v27 = vmul.f32 1.442695, %v529_v26 }
 0x214   : > { %v621_v28 = vpop.permute.xlu1 %620 }
 0x215   : > { %1628 = vpow2.f32 %v532_v27 }
 0x216   : > { %1630 = vpow2.f32 %v514_v29  ;;  %v549_v29 = vld [vmem:[#allocation4] sm:$0xff] }
 0x218   : > { %v791_v34 = vpop.permute.xlu1 %790 }
 0x219   : > { %v796_v36 = vsel %vm453_vm2, %v791_v34, 0 }
 0x21b   : > { %v1911_v30 = vpop.eup %1626 }
 0x21c   : > { %v789_v35 = vpop.permute.xlu1 %788 }
 0x21f   : > { %v1913_v31 = vpop.eup %1628 }
 0x220   : > { %v563_v33 = vpack.c.bf16 %v1913_v31, %v1911_v30  ;;  %v959_v37 = vpop.permute.xlu1 %958 }
 0x221   : > { %v964_v38 = vsel %vm453_vm2, %v959_v37, 0 }
 0x222   : > { %1520 = vmatmul.mubr.msk.bf16.vlgmr.msra.gmra.mrb[0].mxu1 %vm503_vm4, %v563_v33 }
 0x223   : > { %1524 = vmatpush3.bf16.xpose.msra.mxu1 %v628_v32  ;;  %1525 = vmatprep.mubr.msk.bf16.mxu1 %vm1736_vm3, %v1735_v3 }
 0x224   : > { %1535 = vmatprep.subr.bf16.mxu1 %v1735_v3  ;;  %v957_v39 = vpop.permute.xlu1 %956 }
 0x22a   : > { %1526 = vmatmul.mubr.msk.bf16.vlgmr.msra.gmra.mrb[4].mxu1 %vm453_vm2, %v621_v28  ;;  %v541_v28 = vsel %vm503_vm4, %v1913_v31, 0.0  ;;  %v538_v31 = vsel %vm503_vm4, %v1911_v30, 0.0 }
 0x22b   : > { %1536 = vmatpush3.bf16.xpose.msra.mxu1 %v796_v36  ;;  %1537 = vmatprep.mubr.msk.bf16.mxu1 %vm1736_vm3, %v1735_v3  ;;  %v1995_v36 = vpop.eup %1630 }
 0x22c   : > { %1547 = vmatprep.subr.bf16.mxu1 %v1735_v3 }
 0x232   : > { %1538 = vmatmul.mubr.msk.bf16.vlgmr.msra.gmra.mrb[8].mxu1 %vm453_vm2, %v789_v35 }
 0x233   : > { %1548 = vmatpush3.bf16.xpose.msra.mxu1 %v964_v38  ;;  %1549 = vmatprep.mubr.msk.bf16.mxu1 %vm1736_vm3, %v1735_v3 }
 0x23a   : > { %1550 = vmatmul.mubr.msk.bf16.vlgmr.msra.gmra.mrb[12].mxu1 %vm453_vm2, %v957_v39 }
 0x2f5   : > { %v1932_v40 = vpop.f32.mrb[0].mxu1 }
 0x2f6   : > { %v1521_v41 = vpop.f32.mrb[1].mxu1 }
 0x2f7   : > { %v1934_v42 = vpop.f32.mrb[2].mxu1 }
 0x2f8   : > { %v1522_v43 = vpop.f32.mrb[3].mxu1 }
 0x2fd   : > { %v1936_v44 = vpop.f32.mrb[4].mxu1 }
 0x2fe   : > { %v1527_v45 = vpop.f32.mrb[5].mxu1  ;;  %v674_v46 = vsel %vm503_vm4, %v1936_v44, -inf }
 0x2ff   : > { %675 = vmax.xlane.f32.xlu1 %v674_v46  ;;  %v1940_v47 = vpop.f32.mrb[6].mxu1 }
 0x300   : > { %v1528_v48 = vpop.f32.mrb[7].mxu1  ;;  %v677_v49 = vsel %vm503_vm4, %v1940_v47, -inf }
 0x301   : > { %678 = vmax.xlane.f32.xlu0 %v677_v49 }
 0x305   : > { %v1944_v50 = vpop.f32.mrb[8].mxu1 }
 0x306   : > { %v1539_v51 = vpop.f32.mrb[9].mxu1  ;;  %v842_v52 = vsel %vm503_vm4, %v1944_v50, -inf }
 0x307   : > { %843 = vmax.xlane.f32.xlu0 %v842_v52  ;;  %v1948_v53 = vpop.f32.mrb[10].mxu1 }
 0x308   : > { %v1540_v54 = vpop.f32.mrb[11].mxu1  ;;  %v845_v55 = vsel %vm503_vm4, %v1948_v53, -inf }
 0x309   : > { %846 = vmax.xlane.f32.xlu1 %v845_v55 }
 0x30d   : > { %v1952_v56 = vpop.f32.mrb[12].mxu1 }
 0x30e   : > { %v1551_v57 = vpop.f32.mrb[13].mxu1  ;;  %v1010_v58 = vsel %vm503_vm4, %v1952_v56, -inf }
 0x30f   : > { %1011 = vmax.xlane.f32.xlu0 %v1010_v58  ;;  %v1956_v59 = vpop.f32.mrb[14].mxu1 }
 0x310   : > { %v1552_v60 = vpop.f32.mrb[15].mxu1  ;;  %v1013_v61 = vsel %vm503_vm4, %v1956_v59, -inf }
 0x311   : > { %1014 = vmax.xlane.f32.xlu1 %v1013_v61 }
 0x38c   : > { %v676_v63 = vpop.xlane.xlu1 %675 }
 0x38d   : > { %v680_v1 = vmax.f32 %v672_v62, %v676_v63 }
 0x38e   : > { %v679_v2 = vpop.xlane.xlu0 %678 }
 0x38f   : > { %786 = vst.msk [vmem:[#allocation2 + $0x10] sm:$0xff] %vm546_vm5, %v680_v1  ;;  %v681_v4 = vmax.f32 %v673_v0, %v679_v2  ;;  %690 = vperm.xlu0 %1622, %v680_v1   ;;  %v682_v32 = vsub.f32 %v672_v62, %v680_v1 }
 0x391   : > { %v683_v5 = vsub.f32 %v673_v0, %v681_v4  ;;  %787 = vst.msk [vmem:[#allocation2 + $0x18] sm:$0xff] %vm546_vm5, %v681_v4  ;;  %695 = vperm.xlu1 %1621, %v681_v4   ;;  %v684_v33 = vmul.f32 1.442695, %v682_v32 }
 0x393   : > { %1071 = vrot.lane.b32.xlu0 %v1903_v21, %s1740_s8  ;;  %1632 = vpow2.f32 %v684_v33  ;;  %v686_v17 = vmul.f32 1.442695, %v683_v5 }
 0x394   : > { %v844_v7 = vpop.xlane.xlu0 %843 }
 0x395   : > { %v848_v9 = vmax.f32 %v840_v6, %v844_v7 }
 0x396   : > { %v847_v10 = vpop.xlane.xlu1 %846 }
 0x397   : > { %954 = vst.msk [vmem:[#allocation2 + $0x20] sm:$0xff] %vm546_vm5, %v848_v9  ;;  %v849_v11 = vmax.f32 %v841_v8, %v847_v10  ;;  %858 = vperm.xlu1 %1621, %v848_v9   ;;  %v850_v34 = vsub.f32 %v840_v6, %v848_v9 }
 0x399   : > { %v851_v12 = vsub.f32 %v841_v8, %v849_v11  ;;  %955 = vst.msk [vmem:[#allocation2 + $0x28] sm:$0xff] %vm546_vm5, %v849_v11  ;;  %v852_v35 = vmul.f32 1.442695, %v850_v34 }
 0x39b   : > { %863 = vperm.xlu1 %1621, %v849_v11   ;;  %1634 = vpow2.f32 %v852_v35  ;;  %v854_v37 = vmul.f32 1.442695, %v851_v12 }
 0x39c   : > { %v1012_v18 = vpop.xlane.xlu0 %1011  ;;  %1636 = vpow2.f32 %v516_v15 }
 0x39d   : > { %v1971_v23 = vmax.f32 %v1966_v14, %v1012_v18  ;;  %1638 = vpow2.f32 %v686_v17 }
 0x39e   : > { %v1015_v24 = vpop.xlane.xlu1 %1014  ;;  %1640 = vpow2.f32 %v854_v37 }
 0x39f   : > { %v1018_v25 = vsub.f32 %v1966_v14, %v1971_v23  ;;  %1122 = vst.msk [vmem:[#allocation2 + $0x30] sm:$0xff] %vm546_vm5, %v1971_v23  ;;  %v1978_v26 = vmax.f32 %v1968_v22, %v1015_v24  ;;  %1026 = vperm.xlu1 %1621, %v1971_v23   ;;  %v535_v24 = vld [vmem:[#allocation3 + $0x8] sm:$0xff]  ;;  %v534_v23 = vld [vmem:[#allocation3] sm:$0xff] }
 0x3a1   : > { %v1019_v27 = vsub.f32 %v1968_v22, %v1978_v26  ;;  %1123 = vst.msk [vmem:[#allocation2 + $0x38] sm:$0xff] %vm546_vm5, %v1978_v26  ;;  %v1020_v18 = vmul.f32 1.442695, %v1018_v25  ;;  %v536_v25 = vmul.f32 %v1995_v36, %v534_v23 }
 0x3a3   : > { %1031 = vperm.xlu1 %1621, %v1978_v26   ;;  %v1022_v10 = vmul.f32 1.442695, %v1019_v27 }
 0x3a7   : > { %735 = vrot.lane.b32.xlu1 %v1903_v21, %s1738_s22 }
 0x3ab   : > { %903 = vrot.lane.b32.xlu1 %v1903_v21, %s1739_s30  ;;  %v1998_v21 = vpop.eup %1632 }
 0x3ac   : > { %v2003_v13 = vpop.eup %1634 }
 0x3ad   : > { %v2009_v38 = vpop.eup %1636 }
 0x3ae   : > { %v2012_v39 = vpop.eup %1638  ;;  %v537_v22 = vmul.f32 %v2009_v38, %v535_v24 }
 0x3af   : > { %v2015_v30 = vpop.eup %1640 }
 0x3b2   : > { %542 = vadd.xlane.f32.xlu0 %v541_v28 }
 0x3c8   : > { %553 = vperm.xlu0 %1622, %v1995_v36  }
 0x3cc   : > { %724 = vperm.xlu0 %1622, %v1998_v21  }
 0x3cf   : > { %539 = vadd.xlane.f32.xlu1 %v538_v31  ;;  %v550_v31 = vld [vmem:[#allocation4 + $0x8] sm:$0xff] }
 0x3d0   : > { %892 = vperm.xlu0 %1622, %v2003_v13  }
 0x3e0   : > { %558 = vperm.xlu1 %1621, %v2009_v38  }
 0x3e4   : > { %729 = vperm.xlu1 %1621, %v2012_v39  }
 0x3e8   : > { %897 = vperm.xlu1 %1621, %v2015_v30  }
 0x40e   : > { %v691_v41 = vpop.permute.xlu0 %690 }
 0x40f   : > { %v698_v16 = vsub.f32 %v1936_v44, %v691_v41 }
 0x410   : > { %v696_v19 = vpop.permute.xlu1 %695 }
 0x411   : > { %v700_v20 = vmul.f32 1.442695, %v698_v16  ;;  %v699_v43 = vsub.f32 %v1940_v47, %v696_v19 }
 0x412   : > { %v1072_v8 = vpop.permute.xlu0 %1071 }
 0x413   : > { %1642 = vpow2.f32 %v700_v20  ;;  %v702_v45 = vmul.f32 1.442695, %v699_v43  ;;  %v706_v20 = vld [vmem:[#allocation3 + $0x18] sm:$0xff] }
 0x415   : > { %1644 = vpow2.f32 %v702_v45 }
 0x416   : > { %v859_v46 = vpop.permute.xlu1 %858 }
 0x417   : > { %v866_v48 = vsub.f32 %v1944_v50, %v859_v46  ;;  %v708_v46 = vmul.f32 %v2012_v39, %v706_v20 }
 0x419   : > { %v868_v49 = vmul.f32 1.442695, %v866_v48 }
 0x41a   : > { %v864_v51 = vpop.permute.xlu1 %863 }
 0x41b   : > { %1646 = vpow2.f32 %v868_v49  ;;  %v867_v52 = vsub.f32 %v1948_v53, %v864_v51  ;;  %v873_v51 = vld [vmem:[#allocation3 + $0x20] sm:$0xff] }
 0x41d   : > { %v1643_v54 = vpop.eup %1642  ;;  %v870_v55 = vmul.f32 1.442695, %v867_v52 }
 0x41e   : > { %v1027_v57 = vpop.permute.xlu1 %1026  ;;  %v709_v44 = vsel %vm503_vm4, %v1643_v54, 0.0 }
 0x41f   : > { %v1645_v58 = vpop.eup %1644  ;;  %1648 = vpow2.f32 %v870_v55  ;;  %v1034_v47 = vsub.f32 %v1952_v56, %v1027_v57  ;;  %710 = vadd.xlane.f32.xlu1 %v709_v44  ;;  %v1041_v44 = vld [vmem:[#allocation3 + $0x30] sm:$0xff] }
 0x420   : > { %v712_v60 = vsel %vm503_vm4, %v1645_v58, 0.0  ;;  %v734_v61 = vpack.c.bf16 %v1645_v58, %v1643_v54  ;;  %v874_v54 = vld [vmem:[#allocation3 + $0x28] sm:$0xff] }
 0x421   : > { %v1036_v62 = vmul.f32 1.442695, %v1034_v47  ;;  %713 = vadd.xlane.f32.xlu0 %v712_v60  ;;  %v1042_v60 = vld [vmem:[#allocation3 + $0x38] sm:$0xff] }
 0x422   : > { %v1032_v50 = vpop.permute.xlu1 %1031 }
 0x423   : > { %1650 = vpow2.f32 %v1036_v62  ;;  %v1035_v63 = vsub.f32 %v1956_v59, %v1032_v50 }
 0x425   : > { %v1647_v53 = vpop.eup %1646  ;;  %v1038_v0 = vmul.f32 1.442695, %v1035_v63  ;;  %v720_v63 = vld [vmem:[#allocation4 + $0x10] sm:$0xff] }
 0x426   : > { %v736_v1 = vpop.permute.xlu1 %735  ;;  %v877_v2 = vsel %vm503_vm4, %v1647_v53, 0.0 }
 0x427   : > { %1652 = vpow2.f32 %v1038_v0  ;;  %878 = vadd.xlane.f32.xlu1 %v877_v2  ;;  %1530 = vmatpush3.bf16.msra.mxu0 %v736_v1 }
 0x428   : > { %1541 = vmatprep.subr.bf16.mxu0 %v1735_v3  ;;  %1654 = vpow2.f32 %v1022_v10 }
 0x429   : > { %v1649_v56 = vpop.eup %1648  ;;  %1656 = vpow2.f32 %v1020_v18 }
 0x42a   : > { %1532 = vmatmul.mubr.msk.bf16.vlgmr.msra.gmra.mrb[4].mxu0 %vm503_vm4, %v734_v61  ;;  %v880_v4 = vsel %vm503_vm4, %v1649_v56, 0.0  ;;  %v904_v5 = vpop.permute.xlu1 %903  ;;  %v902_v6 = vpack.c.bf16 %v1649_v56, %v1647_v53  ;;  %v721_v53 = vld [vmem:[#allocation4 + $0x18] sm:$0xff] }
 0x42b   : > { %881 = vadd.xlane.f32.xlu0 %v880_v4  ;;  %1542 = vmatpush3.bf16.msra.mxu0 %v904_v5 }
 0x42c   : > { %1543 = vmatprep.mubr.msk.bf16.mxu0 %vm1736_vm3, %v1735_v3  ;;  %1553 = vmatprep.subr.bf16.mxu0 %v1735_v3 }
 0x42d   : > { %v1651_v59 = vpop.eup %1650 }
 0x42e   : > { %v1045_v7 = vsel %vm503_vm4, %v1651_v59, 0.0 }
 0x42f   : > { %1046 = vadd.xlane.f32.xlu1 %v1045_v7  ;;  %v889_v7 = vld [vmem:[#allocation4 + $0x28] sm:$0xff] }
 0x431   : > { %v1653_v9 = vpop.eup %1652 }
 0x432   : > { %1544 = vmatmul.mubr.msk.bf16.vlgmr.msra.gmra.mrb[8].mxu0 %vm503_vm4, %v902_v6  ;;  %v1048_v11 = vsel %vm503_vm4, %v1653_v9, 0.0  ;;  %v1070_v12 = vpack.c.bf16 %v1653_v9, %v1651_v59  ;;  %v1655_v26 = vpop.eup %1654  ;;  %v888_v59 = vld [vmem:[#allocation4 + $0x20] sm:$0xff] }
 0x433   : > { %1049 = vadd.xlane.f32.xlu0 %v1048_v11  ;;  %1554 = vmatpush3.bf16.msra.mxu0 %v1072_v8  ;;  %v1044_v62 = vmul.f32 %v1655_v26, %v1042_v60 }
 0x434   : > { %1555 = vmatprep.mubr.msk.bf16.mxu0 %vm1736_vm3, %v1735_v3  ;;  %v1657_v3 = vpop.eup %1656 }
 0x435   : > { %v1043_v39 = vmul.f32 %v1657_v3, %v1041_v44 }
 0x43a   : > { %1556 = vmatmul.mubr.msk.bf16.vlgmr.msra.gmra.mrb[12].mxu0 %vm503_vm4, %v1070_v12 }
 0x43f   : > { %v543_v27 = vpop.xlane.xlu0 %542 }
 0x440   : > { %v545_v28 = vadd.f32 %v543_v27, %v537_v22  ;;  %1065 = vperm.xlu1 %1621, %v1655_v26   ;;  %v1056_v26 = vld [vmem:[#allocation4 + $0x30] sm:$0xff] }
 0x442   : > { %548 = vst.msk [vmem:[#allocation3 + $0x8] sm:$0xff] %vm546_vm5, %v545_v28  ;;  %v1057_v28 = vld [vmem:[#allocation4 + $0x38] sm:$0xff] }
 0x447   : > { %v554_v32 = vpop.permute.xlu0 %553 }
 0x448   : > { %v561_v33 = vmul.f32 %v554_v32, %v549_v29 }
 0x449   : > { %1060 = vperm.xlu0 %1622, %v1657_v3  }
 0x44a   : > { %v614_v14 = vadd.f32 %v1932_v40, %v561_v33  ;;  %v705_v40 = vld [vmem:[#allocation3 + $0x10] sm:$0xff] }
 0x44b   : > { %v725_v41 = vpop.permute.xlu0 %724  ;;  %v707_v43 = vmul.f32 %v1998_v21, %v705_v40  ;;  %v876_v21 = vmul.f32 %v2015_v30, %v874_v54  ;;  %v1131_v40 = vld [vmem:[#allocation3 + $0x8] sm:$0xff] (!%p1482_p8) }
 0x44c   : > { %616 = vst.msk [vmem:[#allocation4] sm:$0xff] %vm453_vm2, %v614_v14  ;;  %v732_v0 = vmul.f32 %v725_v41, %v720_v63 }
 0x44f   : > { %v893_v19 = vpop.permute.xlu0 %892 }
 0x450   : > { %v900_v8 = vmul.f32 %v893_v19, %v888_v59 }
 0x45c   : > { %v540_v34 = vpop.xlane.xlu1 %539 }
 0x45d   : > { %v544_v35 = vadd.f32 %v540_v34, %v536_v25 }
 0x45f   : > { %547 = vst.msk [vmem:[#allocation3] sm:$0xff] %vm546_vm5, %v544_v35 }
 0x460   : > { %v559_v15 = vpop.permute.xlu1 %558 }
 0x461   : > { %v562_v17 = vmul.f32 %v559_v15, %v550_v31 }
 0x463   : > { %v615_v37 = vadd.f32 %v1934_v42, %v562_v17  ;;  %v875_v42 = vmul.f32 %v2003_v13, %v873_v51  ;;  %v1741_v17 = vmov (!%p1482_p8), 0   ;;  %v1742_v51 = vmov (!%p1482_p8), 0.0  }
 0x464   : > { %v730_v38 = vpop.permute.xlu1 %729  ;;  %1659 = vset.pattern.permute.xlu1 (!%p1482_p8), %v1741_v17  ;;  %1658 = vset.pattern.permute.xlu0 (!%p1482_p8), %v1741_v17 }
 0x465   : > { %617 = vst.msk [vmem:[#allocation4 + $0x8] sm:$0xff] %vm453_vm2, %v615_v37  ;;  %v733_v1 = vmul.f32 %v730_v38, %v721_v53  ;;  %1559 = vmatprep.subr.bf16.mxu0 (!%p1482_p8), %v1742_v51  ;;  %1563 = vmatprep.mubr.msk.bf16.mxu0 (!%p1482_p8), %vm1743_vm6, %v1742_v51 }
 0x466   : > { %v1130_v19 = vld [vmem:[#allocation3] sm:$0xff] (!%p1482_p8) }
 0x468   : > { %v898_v16 = vpop.permute.xlu1 %897 }
 0x469   : > { %v901_v10 = vmul.f32 %v898_v16, %v889_v7  ;;  %v1128_v7 = vld [vmem:[#allocation4] sm:$0xff] (!%p1482_p8) }
 0x4ac   : > { %v711_v36 = vpop.xlane.xlu1 %710 }
 0x4ad   : > { %v715_v45 = vadd.f32 %v711_v36, %v707_v43 }
 0x4ae   : > { %v714_v48 = vpop.xlane.xlu0 %713 }
 0x4af   : > { %717 = vst.msk [vmem:[#allocation3 + $0x10] sm:$0xff] %vm546_vm5, %v715_v45  ;;  %v716_v49 = vadd.f32 %v714_v48, %v708_v46 }
 0x4b1   : > { %718 = vst.msk [vmem:[#allocation3 + $0x18] sm:$0xff] %vm546_vm5, %v716_v49  ;;  %v1675_v49 = vld [vmem:[%s2106_s4] sm:$0xff] (!%p1482_p8)  }
 0x4b2   : > { %1560 = vmatpush3.bf16.msra.mxu0 (!%p1482_p8), %v1675_v49 }
 0x4b3   : > { %1561 = vmatprep.subr.bf16.mxu0 (!%p1482_p8), %v1742_v51 }
 0x4b4   : > { %v879_v52 = vpop.xlane.xlu1 %878 }
 0x4b5   : > { %v883_v55 = vadd.f32 %v879_v52, %v875_v42  ;;  %v1676_v42 = vld [vmem:[%s2106_s4 + $0x8] sm:$0xff] (!%p1482_p8)  }
 0x4b6   : > { %v1148_v15 = vld [vmem:[#allocation3 + $0x10] sm:$0xff] (!%p1482_p8)  ;;  %1562 = vmatpush3.bf16.msra.mxu0 (!%p1482_p8), %v1676_v42 }
 0x4b7   : > { %885 = vst.msk [vmem:[#allocation3 + $0x20] sm:$0xff] %vm546_vm5, %v883_v55  ;;  %1152 = vperm.xlu0 (!%p1482_p8), %1658, %v1148_v15   ;;  %v1300_v15 = vld [vmem:[%s1833_s27] sm:$0xff] (!%p1482_p8) }
 0x4b8   : > { %v882_v57 = vpop.xlane.xlu0 %881  ;;  %v1149_v38 = vld [vmem:[#allocation3 + $0x18] sm:$0xff] (!%p1482_p8) }
 0x4b9   : > { %v884_v58 = vadd.f32 %v882_v57, %v876_v21 }
 0x4bb   : > { %886 = vst.msk [vmem:[#allocation3 + $0x28] sm:$0xff] %vm546_vm5, %v884_v58  ;;  %1157 = vperm.xlu0 (!%p1482_p8), %1658, %v1149_v38  }
 0x4bc   : > { %v1047_v47 = vpop.xlane.xlu1 %1046 }
 0x4bd   : > { %v1051_v61 = vadd.f32 %v1047_v47, %v1043_v39 }
 0x4be   : > { %v1166_v31 = vld [vmem:[#allocation3 + $0x20] sm:$0xff] (!%p1482_p8) }
 0x4bf   : > { %1053 = vst.msk [vmem:[#allocation3 + $0x30] sm:$0xff] %vm546_vm5, %v1051_v61  ;;  %1170 = vperm.xlu1 (!%p1482_p8), %1659, %v1166_v31  }
 0x4c0   : > { %v1050_v13 = vpop.xlane.xlu0 %1049  ;;  %v1066_v29 = vpop.permute.xlu1 %1065 }
 0x4c1   : > { %v1052_v50 = vadd.f32 %v1050_v13, %v1044_v62  ;;  %v1069_v33 = vmul.f32 %v1066_v29, %v1057_v28 }
 0x4c2   : > { %v1167_v37 = vld [vmem:[#allocation3 + $0x28] sm:$0xff] (!%p1482_p8) }
 0x4c3   : > { %1054 = vst.msk [vmem:[#allocation3 + $0x38] sm:$0xff] %vm546_vm5, %v1052_v50  ;;  %1175 = vperm.xlu1 (!%p1482_p8), %1659, %v1167_v37  }
 0x4c6   : > { %v1184_v16 = vld [vmem:[#allocation3 + $0x30] sm:$0xff] (!%p1482_p8) }
 0x4c7   : > { %1188 = vperm.xlu0 (!%p1482_p8), %1658, %v1184_v16  }
 0x4c8   : > { %v1061_v27 = vpop.permute.xlu0 %1060 }
 0x4c9   : > { %v1068_v32 = vmul.f32 %v1061_v27, %v1056_v26 }
 0x4ca   : > { %v1185_v41 = vld [vmem:[#allocation3 + $0x38] sm:$0xff] (!%p1482_p8) }
 0x4cb   : > { %1193 = vperm.xlu1 (!%p1482_p8), %1659, %v1185_v41   ;;  %1134 = vperm.xlu0 (!%p1482_p8), %1658, %v1130_v19   ;;  %v1301_v41 = vld [vmem:[%s1833_s27 + $0x8] sm:$0xff] (!%p1482_p8) }
 0x4cf   : > { %1139 = vperm.xlu1 (!%p1482_p8), %1659, %v1131_v40  }
 0x4fd   : > { %v775_v30 = vpop.f32.mrb[4].mxu0 }
 0x4fe   : > { %v782_v2 = vadd.f32 %v775_v30, %v732_v0  ;;  %v1533_v56 = vpop.f32.mrb[5].mxu0 }
 0x4ff   : > { %v778_v4 = vpop.f32.mrb[6].mxu0 }
 0x500   : > { %784 = vst.msk [vmem:[#allocation4 + $0x10] sm:$0xff] %vm453_vm2, %v782_v2  ;;  %v783_v5 = vadd.f32 %v778_v4, %v733_v1  ;;  %v1534_v6 = vpop.f32.mrb[7].mxu0 }
 0x502   : > { %785 = vst.msk [vmem:[#allocation4 + $0x18] sm:$0xff] %vm453_vm2, %v783_v5 }
 0x505   : > { %v943_v9 = vpop.f32.mrb[8].mxu0 }
 0x506   : > { %v950_v11 = vadd.f32 %v943_v9, %v900_v8  ;;  %v1545_v12 = vpop.f32.mrb[9].mxu0  ;;  %v1129_v8 = vld [vmem:[#allocation4 + $0x8] sm:$0xff] (!%p1482_p8) }
 0x507   : > { %v946_v18 = vpop.f32.mrb[10].mxu0  ;;  %v1146_v57 = vld [vmem:[#allocation4 + $0x10] sm:$0xff] (!%p1482_p8) }
 0x508   : > { %952 = vst.msk [vmem:[#allocation4 + $0x20] sm:$0xff] %vm453_vm2, %v950_v11  ;;  %v951_v24 = vadd.f32 %v946_v18, %v901_v10  ;;  %v1546_v22 = vpop.f32.mrb[11].mxu0 }
 0x509   : > { %v1147_v44 = vld [vmem:[#allocation4 + $0x18] sm:$0xff] (!%p1482_p8) }
 0x50a   : > { %953 = vst.msk [vmem:[#allocation4 + $0x28] sm:$0xff] %vm453_vm2, %v951_v24 }
 0x50c   : > { %1127 = sbr.rel (%p1482_p8) target bundleno = 1710 (0x6ae), region = 52 }
 0x50d   : > { %v1111_v3 = vpop.f32.mrb[12].mxu0 }
 0x50e   : > { %v1118_v14 = vadd.f32 %v1111_v3, %v1068_v32  ;;  %v1557_v23 = vpop.f32.mrb[13].mxu0 }
 0x50f   : > { %v1114_v25 = vpop.f32.mrb[14].mxu0  ;;  %v1164_v54 = vld [vmem:[#allocation4 + $0x20] sm:$0xff] (!%p1482_p8) }
 0x510   : > { %1120 = vst.msk [vmem:[#allocation4 + $0x30] sm:$0xff] %vm453_vm2, %v1118_v14  ;;  %v1119_v34 = vadd.f32 %v1114_v25, %v1069_v33  ;;  %v1558_v35 = vpop.f32.mrb[15].mxu0 }
 0x511   : > { %v1165_v55 = vld [vmem:[#allocation4 + $0x28] sm:$0xff] (!%p1482_p8)  ;;  %v1483_v35 = vld [vmem:[%s2107_s5] ss:$0 sm:$0xff] (!%p1482_p8) }
 0x512   : > { %1121 = vst.msk [vmem:[#allocation4 + $0x38] sm:$0xff] %vm453_vm2, %v1119_v34 }
 0x517   : > { %v1182_v63 = vld [vmem:[#allocation4 + $0x30] sm:$0xff] }
 0x519   : > { %v1183_v13 = vld [vmem:[#allocation4 + $0x38] sm:$0xff] }
 0x536   : > { %v1153_v43 = vpop.permute.xlu0 %1152 }
 0x53a   : > { %v1158_v45 = vpop.permute.xlu0 %1157 }
 0x53e   : > { %v1171_v20 = vpop.permute.xlu1 %1170 }
 0x53f   : > { %1677 = vrcp.f32 %v1171_v20 }
 0x540   : > { %1679 = vrcp.f32 %v1153_v43 }
 0x542   : > { %v1176_v36 = vpop.permute.xlu1 %1175 }
 0x543   : > { %1681 = vrcp.f32 %v1176_v36 }
 0x544   : > { %1683 = vrcp.f32 %v1158_v45 }
 0x546   : > { %v1189_v48 = vpop.permute.xlu0 %1188 }
 0x549   : > { %v1678_v52 = vpop.eup %1677 }
 0x54a   : > { %v1194_v46 = vpop.permute.xlu1 %1193  ;;  %v1680_v21 = vpop.eup %1679  ;;  %v1179_v47 = vmul.f32 %v1678_v52, %v1164_v54 }
 0x54b   : > { %1685 = vrcp.f32 %v1194_v46  ;;  %v1161_v61 = vmul.f32 %v1680_v21, %v1146_v57  ;;  %v1135_v5 = vpop.permute.xlu0 %1134 }
 0x54c   : > { %1687 = vrcp.f32 %v1189_v48 }
 0x54d   : > { %v1682_v58 = vpop.eup %1681 }
 0x54e   : > { %v1684_v39 = vpop.eup %1683  ;;  %v1181_v60 = vmul.f32 %v1682_v58, %v1165_v55  ;;  %v1140_v4 = vpop.permute.xlu1 %1139 }
 0x54f   : > { %v1163_v62 = vmul.f32 %v1684_v39, %v1147_v44  ;;  %1689 = vrcp.f32 %v1140_v4 }
 0x550   : > { %v1665_v50 = vpack.i.bf16 %v1181_v60, %v1179_v47  ;;  %1691 = vrcp.f32 %v1135_v5 }
 0x551   : > { %v1660_v0 = vpack.i.bf16 %v1163_v62, %v1161_v61 }
 0x552   : > { %1666 = vrot.lane.b32.xlu1 %v1665_v50, %s1744_s12 }
 0x553   : > { %1661 = vrot.lane.b32.xlu0 %v1660_v0, %s1745_s13 }
 0x555   : > { %v1686_v53 = vpop.eup %1685 }
 0x556   : > { %v1688_v30 = vpop.eup %1687  ;;  %v1199_v1 = vmul.f32 %v1686_v53, %v1183_v13 }
 0x557   : > { %v1197_v2 = vmul.f32 %v1688_v30, %v1182_v63 }
 0x559   : > { %v1670_v56 = vpack.i.bf16 %v1199_v1, %v1197_v2  ;;  %v1690_v6 = vpop.eup %1689 }
 0x55a   : > { %v1692_v59 = vpop.eup %1691  ;;  %v1145_v24 = vmul.f32 %v1690_v6, %v1129_v8 }
 0x55b   : > { %1671 = vrot.lane.b32.xlu0 %v1670_v56, %s1746_s14  ;;  %v1143_v18 = vmul.f32 %v1692_v59, %v1128_v7 }
 0x5c4   : > { %v1667_v9 = vpop.permute.xlu1 %1666 }
 0x5c5   : > { %v1662_v10 = vpop.permute.xlu0 %1661  ;;  %v1669_v22 = vunpack.i.h.bf16 %v1667_v9  ;;  %v1668_v26 = vunpack.i.l.bf16 %v1667_v9 }
 0x5c6   : > { %v1664_v11 = vunpack.i.h.bf16 %v1662_v10  ;;  %v1663_v12 = vunpack.i.l.bf16 %v1662_v10 }
 0x5c8   : > { %v1224_v27 = vsel %vm453_vm2, %v1143_v18, %v1663_v12  ;;  %v1225_v28 = vsel %vm453_vm2, %v1145_v24, %v1664_v11 }
 0x5c9   : > { %v1226_v33 = vsel %vm503_vm4, %v1224_v27, %v1668_v26  ;;  %v1227_v14 = vsel %vm503_vm4, %v1225_v28, %v1669_v22 }
 0x5cd   : > { %v1672_v29 = vpop.permute.xlu0 %1671 }
 0x5ce   : > { %v1674_v32 = vunpack.i.h.bf16 %v1672_v29  ;;  %v1673_v3 = vunpack.i.l.bf16 %v1672_v29 }
 0x5d0   : > { %v1229_v23 = vsel %vm1228_vm7, %v1226_v33, %v1673_v3  ;;  %v1230_v25 = vsel %vm1228_vm7, %v1227_v14, %v1674_v32 }
 0x5d1   : > { %v1231_v34 = vpack.c.bf16 %v1230_v25, %v1229_v23 }
 0x5d3   : > { %1564 = vmatmul.mubr.msk.bf16.vlgmr.msra.gmra.mrb[0].mxu0 %vm1255_vm8, %v1231_v34 }
 0x6a6   : > { %v1293_v31 = vpop.f32.mrb[0].mxu0 }
 0x6a7   : > { %v1294_v17 = vadd.f32 %v1483_v35, %v1293_v31  ;;  %v1565_v37 = vpop.f32.mrb[1].mxu0 }
 0x6a8   : > { %v1296_v38 = vpop.f32.mrb[2].mxu0 }
 0x6a9   : > { %v1302_v16 = vadd.f32 %v1300_v15, %v1294_v17  ;;  %v1297_v40 = vadd.f32 %v1483_v35, %v1296_v38  ;;  %v1566_v19 = vpop.f32.mrb[3].mxu0 }
 0x6ab   : > { %1304 = vst.msk [vmem:[%s1838_s28] sm:$0xff] %vm1255_vm8, %v1302_v16  ;;  %v1303_v20 = vadd.f32 %v1301_v41, %v1297_v40 }
 0x6ad   : > { %1305 = vst.msk [vmem:[%s1838_s28 + $0x8] sm:$0xff] %vm1255_vm8, %v1303_v20 }
 0x6ae PF: > { %s16_s25 = sadd.s32 1, %s1731_s25   ;;  %s2110_s17 = sld [smem:[#allocation5_spill]] }
 0x6af   : > { %p13_p9 = scmp.ge.s32.totalorder %s16_s25, 6   ;;  %s2111_s21 = smov %s1723_s23 }
 0x6b0   : > { %s2112_s22 = smov %s1727_s24  ;;  %s2113_s23 = smov %s2116_s26 }
 0x6b1   :  { %15 = sbr.rel (!%p13_p9) target bundleno = 3 (0x3), region = 100 }
 0x6b4   : > { %s2114_s24 = smov %s2110_s17 }

</bundles_post_ra>
